<compile_context>
chip_gen: v7x
topology: tpu7x:2x2x1
jax: 0.10.0
libtpu: 0.0.40
codegen_flags: <defaults>
</compile_context>

<pallas_src>
import jax
import jax.numpy as jnp
import numpy as np
from jax import lax
from jax.experimental import pallas as pl
from jax.experimental.pallas import tpu as pltpu


# ----------------------------------------------------------------------------
# Kernel A: ConvTranspose2d(k=2, s=2) + bridge add, sub-pixel interleave fused
# ----------------------------------------------------------------------------
def _upsample_kernel(x_ref, w_ref, b_ref, br_ref, o_ref):
    # x_ref : (H, W, Cin)        one image
    # w_ref : (2, Cin, 2*Cout)   w_ref[di][:, dj*Cout + co] = W_t[ci, co, di, dj]
    # b_ref : (1, 2*Cout)        bias tiled over dj
    # br_ref: (H, 2, W, 2*Cout)  bridge viewed so reshape->(2H,2W,Cout) is free
    # o_ref : (H, 2, W, 2*Cout)  x_up + bridge in the same free-interleave view
    H, W, Cin = x_ref.shape
    C2 = w_ref.shape[2]                                   # 2*Cout
    x = x_ref[...].reshape(H * W, Cin)                    # leading-dim merge only
    for di in range(2):                                   # output-row parity
        y = jnp.dot(x, w_ref[di], preferred_element_type=jnp.float32) + b_ref[...]
        y = y.reshape(H, 1, W, C2) + br_ref[:, di:di + 1, :, :]
        o_ref[:, di:di + 1, :, :] = y.astype(o_ref.dtype)


def upsample_add_bridge(x_nhwc, w_t, b, bridge_nhwc):
    """x_nhwc: (N,H,W,Cin); w_t: ConvTranspose2d weight (Cin,Cout,2,2);
    b: (Cout,); bridge_nhwc: (N,2H,2W,Cout).  Returns x_up + bridge, NHWC."""
    N, H, W, Cin = x_nhwc.shape
    Cout = w_t.shape[1]
    C2 = 2 * Cout
    # columns ordered (dj, co) inside each row-parity di
    w_stacked = jnp.transpose(w_t, (2, 0, 3, 1)).reshape(2, Cin, C2)
    b2 = jnp.tile(b, 2).reshape(1, C2)
    # contiguous (free) view: bridge[n,2h+di,2w+dj,co] == br_v[n,h,di,w,dj*Cout+co]
    br_v = bridge_nhwc.reshape(N, H, 2, W, C2)

    y = pl.pallas_call(
        _upsample_kernel,
        out_shape=jax.ShapeDtypeStruct((N, H, 2, W, C2), x_nhwc.dtype),
        grid=(N,),
        in_specs=[
            pl.BlockSpec((None, H, W, Cin), lambda n: (n, 0, 0, 0)),
            pl.BlockSpec((2, Cin, C2), lambda n: (0, 0, 0)),
            pl.BlockSpec((1, C2), lambda n: (0, 0)),
            pl.BlockSpec((None, H, 2, W, C2), lambda n: (n, 0, 0, 0, 0)),
        ],
        out_specs=pl.BlockSpec((None, H, 2, W, C2), lambda n: (n, 0, 0, 0, 0)),
        compiler_params=pltpu.CompilerParams(dimension_semantics=("parallel",)),
    )(x_nhwc, w_stacked, b2, br_v)

    return y.reshape(N, 2 * H, 2 * W, Cout)               # contiguous -> zero-cost


# ----------------------------------------------------------------------------
# Kernel B: fused AttResBlock (extra_chn=0):  out = fm + conv2(lrelu(conv1(lrelu(fm))))
# ----------------------------------------------------------------------------
def _resblock_kernel(fm_ref, w1_ref, b1_ref, w2_ref, b2_ref, o_ref, apad_ref):
    # fm_ref/o_ref: (H2, W2, C); w*_ref: (3,3,C,C) HWIO; b*_ref: (1, C)
    # apad_ref    : (H2+2, W2+2, C) VMEM scratch — in-kernel zero padding
    H2, W2, C = o_ref.shape
    fm = fm_ref[...].astype(jnp.float32)
    apad_ref[...] = jnp.zeros_like(apad_ref)   # border stays 0 for both convs

    def conv3x3(a, w_ref, b_ref):
        # LeakyReLU applied ONCE to the whole tile, then 9 shifted-window matmuls
        # accumulating in f32 (lrelu(0)=0, so the zero border is correct padding).
        apad_ref[1:H2 + 1, 1:W2 + 1, :] = jnp.where(a >= 0, a, 0.2 * a)
        acc = jnp.zeros((H2 * W2, C), jnp.float32)
        for ky in range(3):
            for kx in range(3):
                patch = apad_ref[ky:ky + H2, kx:kx + W2, :]
                acc = acc + jnp.dot(patch.reshape(H2 * W2, C), w_ref[ky, kx],
                                    preferred_element_type=jnp.float32)
        return (acc + b_ref[...]).reshape(H2, W2, C)

    fea1 = conv3x3(fm, w1_ref, b1_ref)         # fea1 never touches HBM
    fea2 = conv3x3(fea1, w2_ref, b2_ref)
    o_ref[...] = (fm + fea2).astype(o_ref.dtype)   # residual from resident tile


def att_resblock(fm_nhwc, blk):
    """fm_nhwc: (N,H2,W2,C); blk: dict with HWIO weights w1,w2 and biases b1,b2."""
    N, H2, W2, C = fm_nhwc.shape
    return pl.pallas_call(
        _resblock_kernel,
        out_shape=jax.ShapeDtypeStruct((N, H2, W2, C), fm_nhwc.dtype),
        grid=(N,),
        in_specs=[
            pl.BlockSpec((None, H2, W2, C), lambda n: (n, 0, 0, 0)),
            pl.BlockSpec((3, 3, C, C), lambda n: (0, 0, 0, 0)),
            pl.BlockSpec((1, C), lambda n: (0, 0)),
            pl.BlockSpec((3, 3, C, C), lambda n: (0, 0, 0, 0)),
            pl.BlockSpec((1, C), lambda n: (0, 0)),
        ],
        out_specs=pl.BlockSpec((None, H2, W2, C), lambda n: (n, 0, 0, 0)),
        scratch_shapes=[pltpu.VMEM((H2 + 2, W2 + 2, C), jnp.float32)],
        compiler_params=pltpu.CompilerParams(dimension_semantics=("parallel",)),
    )(fm_nhwc, blk["w1"], blk["b1"].reshape(1, C),
      blk["w2"], blk["b2"].reshape(1, C))


# ----------------------------------------------------------------------------
# UpBlock forward
# ----------------------------------------------------------------------------
def upblock_forward(params, x_nchw, bridge_nchw):
    assert params["body"], "n_resblocks must be >= 1 (bridge add is fused into Kernel A)"
    # NCHW -> NHWC boundary glue (see TODO at top of file).
    x = jnp.transpose(x_nchw, (0, 2, 3, 1))
    bridge = jnp.transpose(bridge_nchw, (0, 2, 3, 1))

    fm = upsample_add_bridge(x, params["up_w"], params["up_b"], bridge)  # x_up + bridge
    for blk in params["body"]:
        fm = att_resblock(fm, blk)

    return jnp.transpose(fm, (0, 3, 1, 2))                # back to NCHW


# ----------------------------------------------------------------------------
# Deterministic parameter init (PyTorch layouts, converted for NHWC kernels)
# ----------------------------------------------------------------------------
def init_upblock(key, in_chn, out_chn, n_resblocks=1, scale=0.1):
    def nrm(key, shape):
        key, sub = jax.random.split(key)
        return scale * jax.random.normal(sub, shape, jnp.float32), key

    up_w, key = nrm(key, (in_chn, out_chn, 2, 2))   # ConvTranspose2d: (I, O, kH, kW)
    up_b, key = nrm(key, (out_chn,))
    body = []
    for _ in range(n_resblocks):
        w1, key = nrm(key, (out_chn, out_chn, 3, 3))  # Conv2d: (O, I, kH, kW)
        b1, key = nrm(key, (out_chn,))
        w2, key = nrm(key, (out_chn, out_chn, 3, 3))
        b2, key = nrm(key, (out_chn,))
        body.append(dict(
            w1=jnp.transpose(w1, (2, 3, 1, 0)), b1=b1,   # -> HWIO
            w2=jnp.transpose(w2, (2, 3, 1, 0)), b2=b2,
        ))
    return dict(up_w=up_w, up_b=up_b, body=body), key


# ----------------------------------------------------------------------------
# Pure-JAX reference (highest-precision path) for the correctness check
# ----------------------------------------------------------------------------
def ref_forward(params, x_nchw, bridge_nchw):
    x = jnp.transpose(x_nchw, (0, 2, 3, 1))
    bridge = jnp.transpose(bridge_nchw, (0, 2, 3, 1))
    wt = params["up_w"]
    N, H, W, Cin = x.shape
    Cout = wt.shape[1]
    t = jnp.einsum("nhwc,codq->nhwdqo", x, wt, precision=lax.Precision.HIGHEST)
    x_up = t.transpose(0, 1, 3, 2, 4, 5).reshape(N, 2 * H, 2 * W, Cout) + params["up_b"]

    def lrelu(v):
        return jnp.where(v >= 0, v, 0.2 * v)

    def conv3(a, w_hwio, b):
        return lax.conv_general_dilated(
            a, w_hwio, (1, 1), "SAME",
            dimension_numbers=("NHWC", "HWIO", "NHWC"),
            precision=lax.Precision.HIGHEST) + b

    out = x_up
    for ii, blk in enumerate(params["body"]):
        fm = out + bridge if ii == 0 else out
        fea1 = conv3(lrelu(fm), blk["w1"], blk["b1"])
        fea2 = conv3(lrelu(fea1), blk["w2"], blk["b2"])
        out = fm + fea2
    return jnp.transpose(out, (0, 3, 1, 2))


# ----------------------------------------------------------------------------
if __name__ == "__main__":
    key = jax.random.PRNGKey(0)
    N, IN_CHN, OUT_CHN, H, W = 2, 16, 8, 8, 8

    params, key = init_upblock(key, IN_CHN, OUT_CHN, n_resblocks=1)
    kx, kb = jax.random.split(key)
    x = jax.random.normal(kx, (N, IN_CHN, H, W), jnp.float32)            # NCHW
    bridge = jax.random.normal(kb, (N, OUT_CHN, 2 * H, 2 * W), jnp.float32)

    out = jax.jit(upblock_forward)(params, x, bridge)
    out = jax.block_until_ready(out)
    assert out.shape == (N, OUT_CHN, 2 * H, 2 * W), out.shape

    ref = ref_forward(params, x, bridge)
    # Tolerance tightened vs. the previous 5e-2; kept at 2e-2 because MXU f32
    # matmuls may be lowered as multi-pass bf16, which the HIGHEST-precision
    # XLA reference does not exactly reproduce.
    np.testing.assert_allclose(np.asarray(out), np.asarray(ref), atol=2e-2, rtol=2e-2)

    print("KERNEL_OK")
</pallas_src>

<mosaic_0001>
module attributes {stable_mosaic.version = 11 : i64} {
  func.func @_upsample_kernel(%arg0: i32, %arg1: memref<1x8x8x16xf32, #tpu.memory_space<vmem>>, %arg2: memref<2x16x16xf32, #tpu.memory_space<vmem>>, %arg3: memref<1x16xf32, #tpu.memory_space<vmem>>, %arg4: memref<1x8x2x8x16xf32, #tpu.memory_space<vmem>>, %arg5: memref<1x8x2x8x16xf32, #tpu.memory_space<vmem>>) attributes {dimension_semantics = [#tpu.dimension_semantics<parallel>], iteration_bounds = array<i64: 2>, scalar_prefetch = 0 : i64, scratch_operands = 0 : i64, tpu.core_type = #tpu.core_type<tc>, window_params = [{transform_indices = @transform_0, window_bounds = array<i64: 1, 8, 8, 16>}, {pipeline_mode = #tpu.pipeline_mode<synchronous>, transform_indices = @transform_1, window_bounds = array<i64: 2, 16, 16>}, {pipeline_mode = #tpu.pipeline_mode<synchronous>, transform_indices = @transform_2, window_bounds = array<i64: 1, 16>}, {transform_indices = @transform_3, window_bounds = array<i64: 1, 8, 2, 8, 16>}, {transform_indices = @transform_4, window_bounds = array<i64: 1, 8, 2, 8, 16>}]} {
    %c0 = arith.constant 0 : index
    %c0_0 = arith.constant 0 : index
    %c0_1 = arith.constant 0 : index
    %c0_2 = arith.constant 0 : index
    %0 = vector.load %arg1[%c0, %c0_0, %c0_1, %c0_2] : memref<1x8x8x16xf32, #tpu.memory_space<vmem>>, vector<1x8x8x16xf32>
    %1 = vector.shape_cast %0 : vector<1x8x8x16xf32> to vector<8x8x16xf32>
    %2 = vector.shape_cast %1 : vector<8x8x16xf32> to vector<64x16xf32>
    %c0_3 = arith.constant 0 : index
    %c0_4 = arith.constant 0 : index
    %c0_5 = arith.constant 0 : index
    %3 = vector.load %arg2[%c0_3, %c0_4, %c0_5] : memref<2x16x16xf32, #tpu.memory_space<vmem>>, vector<1x16x16xf32>
    %4 = vector.shape_cast %3 : vector<1x16x16xf32> to vector<16x16xf32>
    %cst = arith.constant dense<0.000000e+00> : vector<64x16xf32>
    %5 = tpu.matmul %2, %4, %cst {dimension_numbers = #tpu.dot_dimension_numbers<[1], [0], [0], [1], [0, 0, 1, 1], [], []>} : vector<64x16xf32>, vector<16x16xf32>, vector<64x16xf32> -> vector<64x16xf32>
    %c0_6 = arith.constant 0 : index
    %c0_7 = arith.constant 0 : index
    %6 = vector.load %arg3[%c0_6, %c0_7] : memref<1x16xf32, #tpu.memory_space<vmem>>, vector<1x16xf32>
    %7 = vector.broadcast %6 : vector<1x16xf32> to vector<64x16xf32>
    %8 = arith.addf %5, %7 : vector<64x16xf32>
    %9 = vector.shape_cast %8 : vector<64x16xf32> to vector<8x1x8x16xf32>
    %c0_8 = arith.constant 0 : index
    %c0_9 = arith.constant 0 : index
    %c0_10 = arith.constant 0 : index
    %c0_11 = arith.constant 0 : index
    %c0_12 = arith.constant 0 : index
    %10 = vector.load %arg4[%c0_8, %c0_9, %c0_10, %c0_11, %c0_12] : memref<1x8x2x8x16xf32, #tpu.memory_space<vmem>>, vector<1x8x1x8x16xf32>
    %11 = vector.shape_cast %10 : vector<1x8x1x8x16xf32> to vector<8x1x8x16xf32>
    %12 = arith.addf %9, %11 : vector<8x1x8x16xf32>
    %c0_13 = arith.constant 0 : index
    %c0_14 = arith.constant 0 : index
    %c0_15 = arith.constant 0 : index
    %c0_16 = arith.constant 0 : index
    %c0_17 = arith.constant 0 : index
    %13 = vector.load %arg5[%c0_13, %c0_14, %c0_15, %c0_16, %c0_17] : memref<1x8x2x8x16xf32, #tpu.memory_space<vmem>>, vector<1x8x1x8x16xf32>
    %14 = vector.shape_cast %13 : vector<1x8x1x8x16xf32> to vector<8x1x8x16xf32>
    %15 = vector.shape_cast %12 : vector<8x1x8x16xf32> to vector<1x8x1x8x16xf32>
    tpu.vector_store %arg5[%c0_13, %c0_14, %c0_15, %c0_16, %c0_17], %15 {strides = array<i32>} : memref<1x8x2x8x16xf32, #tpu.memory_space<vmem>>, vector<1x8x1x8x16xf32>,
    %c1 = arith.constant 1 : index
    %c0_18 = arith.constant 0 : index
    %c0_19 = arith.constant 0 : index
    %16 = vector.load %arg2[%c1, %c0_18, %c0_19] : memref<2x16x16xf32, #tpu.memory_space<vmem>>, vector<1x16x16xf32>
    %17 = vector.shape_cast %16 : vector<1x16x16xf32> to vector<16x16xf32>
    %cst_20 = arith.constant dense<0.000000e+00> : vector<64x16xf32>
    %18 = tpu.matmul %2, %17, %cst_20 {dimension_numbers = #tpu.dot_dimension_numbers<[1], [0], [0], [1], [0, 0, 1, 1], [], []>} : vector<64x16xf32>, vector<16x16xf32>, vector<64x16xf32> -> vector<64x16xf32>
    %c0_21 = arith.constant 0 : index
    %c0_22 = arith.constant 0 : index
    %19 = vector.load %arg3[%c0_21, %c0_22] : memref<1x16xf32, #tpu.memory_space<vmem>>, vector<1x16xf32>
    %20 = vector.broadcast %19 : vector<1x16xf32> to vector<64x16xf32>
    %21 = arith.addf %18, %20 : vector<64x16xf32>
    %22 = vector.shape_cast %21 : vector<64x16xf32> to vector<8x1x8x16xf32>
    %c0_23 = arith.constant 0 : index
    %c0_24 = arith.constant 0 : index
    %c1_25 = arith.constant 1 : index
    %c0_26 = arith.constant 0 : index
    %c0_27 = arith.constant 0 : index
    %23 = vector.load %arg4[%c0_23, %c0_24, %c1_25, %c0_26, %c0_27] : memref<1x8x2x8x16xf32, #tpu.memory_space<vmem>>, vector<1x8x1x8x16xf32>
    %24 = vector.shape_cast %23 : vector<1x8x1x8x16xf32> to vector<8x1x8x16xf32>
    %25 = arith.addf %22, %24 : vector<8x1x8x16xf32>
    %c0_28 = arith.constant 0 : index
    %c0_29 = arith.constant 0 : index
    %c1_30 = arith.constant 1 : index
    %c0_31 = arith.constant 0 : index
    %c0_32 = arith.constant 0 : index
    %26 = vector.load %arg5[%c0_28, %c0_29, %c1_30, %c0_31, %c0_32] : memref<1x8x2x8x16xf32, #tpu.memory_space<vmem>>, vector<1x8x1x8x16xf32>
    %27 = vector.shape_cast %26 : vector<1x8x1x8x16xf32> to vector<8x1x8x16xf32>
    %28 = vector.shape_cast %25 : vector<8x1x8x16xf32> to vector<1x8x1x8x16xf32>
    tpu.vector_store %arg5[%c0_28, %c0_29, %c1_30, %c0_31, %c0_32], %28 {strides = array<i32>} : memref<1x8x2x8x16xf32, #tpu.memory_space<vmem>>, vector<1x8x1x8x16xf32>,
    return
  }
  func.func @transform_0(%arg0: i32) -> (i32, i32, i32, i32) {
    %c0_i32 = arith.constant 0 : i32
    %c0_i32_0 = arith.constant 0 : i32
    %c0_i32_1 = arith.constant 0 : i32
    %c0_i32_2 = arith.constant 0 : i32
    return %arg0, %c0_i32, %c0_i32_0, %c0_i32_1 : i32, i32, i32, i32
  }
  func.func @transform_1(%arg0: i32) -> (i32, i32, i32) {
    %c0_i32 = arith.constant 0 : i32
    %c0_i32_0 = arith.constant 0 : i32
    %c0_i32_1 = arith.constant 0 : i32
    %c0_i32_2 = arith.constant 0 : i32
    return %c0_i32, %c0_i32_0, %c0_i32_1 : i32, i32, i32
  }
  func.func @transform_2(%arg0: i32) -> (i32, i32) {
    %c0_i32 = arith.constant 0 : i32
    %c0_i32_0 = arith.constant 0 : i32
    %c0_i32_1 = arith.constant 0 : i32
    return %c0_i32, %c0_i32_0 : i32, i32
  }
  func.func @transform_3(%arg0: i32) -> (i32, i32, i32, i32, i32) {
    %c0_i32 = arith.constant 0 : i32
    %c0_i32_0 = arith.constant 0 : i32
    %c0_i32_1 = arith.constant 0 : i32
    %c0_i32_2 = arith.constant 0 : i32
    %c0_i32_3 = arith.constant 0 : i32
    return %arg0, %c0_i32, %c0_i32_0, %c0_i32_1, %c0_i32_2 : i32, i32, i32, i32, i32
  }
  func.func @transform_4(%arg0: i32) -> (i32, i32, i32, i32, i32) {
    %c0_i32 = arith.constant 0 : i32
    %c0_i32_0 = arith.constant 0 : i32
    %c0_i32_1 = arith.constant 0 : i32
    %c0_i32_2 = arith.constant 0 : i32
    %c0_i32_3 = arith.constant 0 : i32
    return %arg0, %c0_i32, %c0_i32_0, %c0_i32_1, %c0_i32_2 : i32, i32, i32, i32, i32
  }
}

module attributes {stable_mosaic.version = 11 : i64} {
  func.func @_resblock_kernel(%arg0: i32, %arg1: memref<1x16x16x8xf32, #tpu.memory_space<vmem>>, %arg2: memref<3x3x8x8xf32, #tpu.memory_space<vmem>>, %arg3: memref<1x8xf32, #tpu.memory_space<vmem>>, %arg4: memref<3x3x8x8xf32, #tpu.memory_space<vmem>>, %arg5: memref<1x8xf32, #tpu.memory_space<vmem>>, %arg6: memref<1x16x16x8xf32, #tpu.memory_space<vmem>>, %arg7: memref<18x18x8xf32, #tpu.memory_space<vmem>>) attributes {dimension_semantics = [#tpu.dimension_semantics<parallel>], iteration_bounds = array<i64: 2>, scalar_prefetch = 0 : i64, scratch_operands = 1 : i64, tpu.core_type = #tpu.core_type<tc>, window_params = [{transform_indices = @transform_0, window_bounds = array<i64: 1, 16, 16, 8>}, {pipeline_mode = #tpu.pipeline_mode<synchronous>, transform_indices = @transform_1, window_bounds = array<i64: 3, 3, 8, 8>}, {pipeline_mode = #tpu.pipeline_mode<synchronous>, transform_indices = @transform_2, window_bounds = array<i64: 1, 8>}, {pipeline_mode = #tpu.pipeline_mode<synchronous>, transform_indices = @transform_3, window_bounds = array<i64: 3, 3, 8, 8>}, {pipeline_mode = #tpu.pipeline_mode<synchronous>, transform_indices = @transform_4, window_bounds = array<i64: 1, 8>}, {transform_indices = @transform_5, window_bounds = array<i64: 1, 16, 16, 8>}]} {
    %c0 = arith.constant 0 : index
    %c0_0 = arith.constant 0 : index
    %c0_1 = arith.constant 0 : index
    %c0_2 = arith.constant 0 : index
    %0 = vector.load %arg1[%c0, %c0_0, %c0_1, %c0_2] : memref<1x16x16x8xf32, #tpu.memory_space<vmem>>, vector<1x16x16x8xf32>
    %1 = vector.shape_cast %0 : vector<1x16x16x8xf32> to vector<16x16x8xf32>
    %cst = arith.constant 0.000000e+00 : f32
    %2 = vector.broadcast %cst : f32 to vector<18x18x8xf32>
    %c0_3 = arith.constant 0 : index
    %c0_4 = arith.constant 0 : index
    %c0_5 = arith.constant 0 : index
    %3 = vector.load %arg7[%c0_3, %c0_4, %c0_5] : memref<18x18x8xf32, #tpu.memory_space<vmem>>, vector<18x18x8xf32>
    tpu.vector_store %arg7[%c0_3, %c0_4, %c0_5], %2 {strides = array<i32>} : memref<18x18x8xf32, #tpu.memory_space<vmem>>, vector<18x18x8xf32>,
    %cst_6 = arith.constant 0.000000e+00 : f32
    %4 = vector.broadcast %cst_6 : f32 to vector<16x16x8xf32>
    %5 = arith.cmpf oge, %1, %4 : vector<16x16x8xf32>
    %cst_7 = arith.constant 2.000000e-01 : f32
    %6 = vector.broadcast %cst_7 : f32 to vector<16x16x8xf32>
    %7 = arith.mulf %6, %1 : vector<16x16x8xf32>
    %8 = arith.select %5, %1, %7 : vector<16x16x8xi1>, vector<16x16x8xf32>
    %c1 = arith.constant 1 : index
    %c1_8 = arith.constant 1 : index
    %c0_9 = arith.constant 0 : index
    %9 = vector.load %arg7[%c1, %c1_8, %c0_9] : memref<18x18x8xf32, #tpu.memory_space<vmem>>, vector<16x16x8xf32>
    tpu.vector_store %arg7[%c1, %c1_8, %c0_9], %8 {strides = array<i32>} : memref<18x18x8xf32, #tpu.memory_space<vmem>>, vector<16x16x8xf32>,
    %cst_10 = arith.constant 0.000000e+00 : f32
    %10 = vector.broadcast %cst_10 : f32 to vector<256x8xf32>
    %c0_11 = arith.constant 0 : index
    %c0_12 = arith.constant 0 : index
    %c0_13 = arith.constant 0 : index
    %11 = vector.load %arg7[%c0_11, %c0_12, %c0_13] : memref<18x18x8xf32, #tpu.memory_space<vmem>>, vector<16x16x8xf32>
    %12 = vector.shape_cast %11 : vector<16x16x8xf32> to vector<256x8xf32>
    %c0_14 = arith.constant 0 : index
    %c0_15 = arith.constant 0 : index
    %c0_16 = arith.constant 0 : index
    %c0_17 = arith.constant 0 : index
    %13 = vector.load %arg2[%c0_14, %c0_15, %c0_16, %c0_17] : memref<3x3x8x8xf32, #tpu.memory_space<vmem>>, vector<1x1x8x8xf32>
    %14 = vector.shape_cast %13 : vector<1x1x8x8xf32> to vector<8x8xf32>
    %cst_18 = arith.constant dense<0.000000e+00> : vector<256x8xf32>
    %15 = tpu.matmul %12, %14, %cst_18 {dimension_numbers = #tpu.dot_dimension_numbers<[1], [0], [0], [1], [0, 0, 1, 1], [], []>} : vector<256x8xf32>, vector<8x8xf32>, vector<256x8xf32> -> vector<256x8xf32>
    %16 = arith.addf %10, %15 : vector<256x8xf32>
    %c0_19 = arith.constant 0 : index
    %c1_20 = arith.constant 1 : index
    %c0_21 = arith.constant 0 : index
    %17 = vector.load %arg7[%c0_19, %c1_20, %c0_21] : memref<18x18x8xf32, #tpu.memory_space<vmem>>, vector<16x16x8xf32>
    %18 = vector.shape_cast %17 : vector<16x16x8xf32> to vector<256x8xf32>
    %c0_22 = arith.constant 0 : index
    %c1_23 = arith.constant 1 : index
    %c0_24 = arith.constant 0 : index
    %c0_25 = arith.constant 0 : index
    %19 = vector.load %arg2[%c0_22, %c1_23, %c0_24, %c0_25] : memref<3x3x8x8xf32, #tpu.memory_space<vmem>>, vector<1x1x8x8xf32>
    %20 = vector.shape_cast %19 : vector<1x1x8x8xf32> to vector<8x8xf32>
    %cst_26 = arith.constant dense<0.000000e+00> : vector<256x8xf32>
    %21 = tpu.matmul %18, %20, %cst_26 {dimension_numbers = #tpu.dot_dimension_numbers<[1], [0], [0], [1], [0, 0, 1, 1], [], []>} : vector<256x8xf32>, vector<8x8xf32>, vector<256x8xf32> -> vector<256x8xf32>
    %22 = arith.addf %16, %21 : vector<256x8xf32>
    %c0_27 = arith.constant 0 : index
    %c2 = arith.constant 2 : index
    %c0_28 = arith.constant 0 : index
    %23 = vector.load %arg7[%c0_27, %c2, %c0_28] : memref<18x18x8xf32, #tpu.memory_space<vmem>>, vector<16x16x8xf32>
    %24 = vector.shape_cast %23 : vector<16x16x8xf32> to vector<256x8xf32>
    %c0_29 = arith.constant 0 : index
    %c2_30 = arith.constant 2 : index
    %c0_31 = arith.constant 0 : index
    %c0_32 = arith.constant 0 : index
    %25 = vector.load %arg2[%c0_29, %c2_30, %c0_31, %c0_32] : memref<3x3x8x8xf32, #tpu.memory_space<vmem>>, vector<1x1x8x8xf32>
    %26 = vector.shape_cast %25 : vector<1x1x8x8xf32> to vector<8x8xf32>
    %cst_33 = arith.constant dense<0.000000e+00> : vector<256x8xf32>
    %27 = tpu.matmul %24, %26, %cst_33 {dimension_numbers = #tpu.dot_dimension_numbers<[1], [0], [0], [1], [0, 0, 1, 1], [], []>} : vector<256x8xf32>, vector<8x8xf32>, vector<256x8xf32> -> vector<256x8xf32>
    %28 = arith.addf %22, %27 : vector<256x8xf32>
    %c1_34 = arith.constant 1 : index
    %c0_35 = arith.constant 0 : index
    %c0_36 = arith.constant 0 : index
    %29 = vector.load %arg7[%c1_34, %c0_35, %c0_36] : memref<18x18x8xf32, #tpu.memory_space<vmem>>, vector<16x16x8xf32>
    %30 = vector.shape_cast %29 : vector<16x16x8xf32> to vector<256x8xf32>
    %c1_37 = arith.constant 1 : index
    %c0_38 = arith.constant 0 : index
    %c0_39 = arith.constant 0 : index
    %c0_40 = arith.constant 0 : index
    %31 = vector.load %arg2[%c1_37, %c0_38, %c0_39, %c0_40] : memref<3x3x8x8xf32, #tpu.memory_space<vmem>>, vector<1x1x8x8xf32>
    %32 = vector.shape_cast %31 : vector<1x1x8x8xf32> to vector<8x8xf32>
    %cst_41 = arith.constant dense<0.000000e+00> : vector<256x8xf32>
    %33 = tpu.matmul %30, %32, %cst_41 {dimension_numbers = #tpu.dot_dimension_numbers<[1], [0], [0], [1], [0, 0, 1, 1], [], []>} : vector<256x8xf32>, vector<8x8xf32>, vector<256x8xf32> -> vector<256x8xf32>
    %34 = arith.addf %28, %33 : vector<256x8xf32>
    %c1_42 = arith.constant 1 : index
    %c1_43 = arith.constant 1 : index
    %c0_44 = arith.constant 0 : index
    %35 = vector.load %arg7[%c1_42, %c1_43, %c0_44] : memref<18x18x8xf32, #tpu.memory_space<vmem>>, vector<16x16x8xf32>
    %36 = vector.shape_cast %35 : vector<16x16x8xf32> to vector<256x8xf32>
    %c1_45 = arith.constant 1 : index
    %c1_46 = arith.constant 1 : index
    %c0_47 = arith.constant 0 : index
    %c0_48 = arith.constant 0 : index
    %37 = vector.load %arg2[%c1_45, %c1_46, %c0_47, %c0_48] : memref<3x3x8x8xf32, #tpu.memory_space<vmem>>, vector<1x1x8x8xf32>
    %38 = vector.shape_cast %37 : vector<1x1x8x8xf32> to vector<8x8xf32>
    %cst_49 = arith.constant dense<0.000000e+00> : vector<256x8xf32>
    %39 = tpu.matmul %36, %38, %cst_49 {dimension_numbers = #tpu.dot_dimension_numbers<[1], [0], [0], [1], [0, 0, 1, 1], [], []>} : vector<256x8xf32>, vector<8x8xf32>, vector<256x8xf32> -> vector<256x8xf32>
    %40 = arith.addf %34, %39 : vector<256x8xf32>
    %c1_50 = arith.constant 1 : index
    %c2_51 = arith.constant 2 : index
    %c0_52 = arith.constant 0 : index
    %41 = vector.load %arg7[%c1_50, %c2_51, %c0_52] : memref<18x18x8xf32, #tpu.memory_space<vmem>>, vector<16x16x8xf32>
    %42 = vector.shape_cast %41 : vector<16x16x8xf32> to vector<256x8xf32>
    %c1_53 = arith.constant 1 : index
    %c2_54 = arith.constant 2 : index
    %c0_55 = arith.constant 0 : index
    %c0_56 = arith.constant 0 : index
    %43 = vector.load %arg2[%c1_53, %c2_54, %c0_55, %c0_56] : memref<3x3x8x8xf32, #tpu.memory_space<vmem>>, vector<1x1x8x8xf32>
    %44 = vector.shape_cast %43 : vector<1x1x8x8xf32> to vector<8x8xf32>
    %cst_57 = arith.constant dense<0.000000e+00> : vector<256x8xf32>
    %45 = tpu.matmul %42, %44, %cst_57 {dimension_numbers = #tpu.dot_dimension_numbers<[1], [0], [0], [1], [0, 0, 1, 1], [], []>} : vector<256x8xf32>, vector<8x8xf32>, vector<256x8xf32> -> vector<256x8xf32>
    %46 = arith.addf %40, %45 : vector<256x8xf32>
    %c2_58 = arith.constant 2 : index
    %c0_59 = arith.constant 0 : index
    %c0_60 = arith.constant 0 : index
    %47 = vector.load %arg7[%c2_58, %c0_59, %c0_60] : memref<18x18x8xf32, #tpu.memory_space<vmem>>, vector<16x16x8xf32>
    %48 = vector.shape_cast %47 : vector<16x16x8xf32> to vector<256x8xf32>
    %c2_61 = arith.constant 2 : index
    %c0_62 = arith.constant 0 : index
    %c0_63 = arith.constant 0 : index
    %c0_64 = arith.constant 0 : index
    %49 = vector.load %arg2[%c2_61, %c0_62, %c0_63, %c0_64] : memref<3x3x8x8xf32, #tpu.memory_space<vmem>>, vector<1x1x8x8xf32>
    %50 = vector.shape_cast %49 : vector<1x1x8x8xf32> to vector<8x8xf32>
    %cst_65 = arith.constant dense<0.000000e+00> : vector<256x8xf32>
    %51 = tpu.matmul %48, %50, %cst_65 {dimension_numbers = #tpu.dot_dimension_numbers<[1], [0], [0], [1], [0, 0, 1, 1], [], []>} : vector<256x8xf32>, vector<8x8xf32>, vector<256x8xf32> -> vector<256x8xf32>
    %52 = arith.addf %46, %51 : vector<256x8xf32>
    %c2_66 = arith.constant 2 : index
    %c1_67 = arith.constant 1 : index
    %c0_68 = arith.constant 0 : index
    %53 = vector.load %arg7[%c2_66, %c1_67, %c0_68] : memref<18x18x8xf32, #tpu.memory_space<vmem>>, vector<16x16x8xf32>
    %54 = vector.shape_cast %53 : vector<16x16x8xf32> to vector<256x8xf32>
    %c2_69 = arith.constant 2 : index
    %c1_70 = arith.constant 1 : index
    %c0_71 = arith.constant 0 : index
    %c0_72 = arith.constant 0 : index
    %55 = vector.load %arg2[%c2_69, %c1_70, %c0_71, %c0_72] : memref<3x3x8x8xf32, #tpu.memory_space<vmem>>, vector<1x1x8x8xf32>
    %56 = vector.shape_cast %55 : vector<1x1x8x8xf32> to vector<8x8xf32>
    %cst_73 = arith.constant dense<0.000000e+00> : vector<256x8xf32>
    %57 = tpu.matmul %54, %56, %cst_73 {dimension_numbers = #tpu.dot_dimension_numbers<[1], [0], [0], [1], [0, 0, 1, 1], [], []>} : vector<256x8xf32>, vector<8x8xf32>, vector<256x8xf32> -> vector<256x8xf32>
    %58 = arith.addf %52, %57 : vector<256x8xf32>
    %c2_74 = arith.constant 2 : index
    %c2_75 = arith.constant 2 : index
    %c0_76 = arith.constant 0 : index
    %59 = vector.load %arg7[%c2_74, %c2_75, %c0_76] : memref<18x18x8xf32, #tpu.memory_space<vmem>>, vector<16x16x8xf32>
    %60 = vector.shape_cast %59 : vector<16x16x8xf32> to vector<256x8xf32>
    %c2_77 = arith.constant 2 : index
    %c2_78 = arith.constant 2 : index
    %c0_79 = arith.constant 0 : index
    %c0_80 = arith.constant 0 : index
    %61 = vector.load %arg2[%c2_77, %c2_78, %c0_79, %c0_80] : memref<3x3x8x8xf32, #tpu.memory_space<vmem>>, vector<1x1x8x8xf32>
    %62 = vector.shape_cast %61 : vector<1x1x8x8xf32> to vector<8x8xf32>
    %cst_81 = arith.constant dense<0.000000e+00> : vector<256x8xf32>
    %63 = tpu.matmul %60, %62, %cst_81 {dimension_numbers = #tpu.dot_dimension_numbers<[1], [0], [0], [1], [0, 0, 1, 1], [], []>} : vector<256x8xf32>, vector<8x8xf32>, vector<256x8xf32> -> vector<256x8xf32>
    %64 = arith.addf %58, %63 : vector<256x8xf32>
    %c0_82 = arith.constant 0 : index
    %c0_83 = arith.constant 0 : index
    %65 = vector.load %arg3[%c0_82, %c0_83] : memref<1x8xf32, #tpu.memory_space<vmem>>, vector<1x8xf32>
    %66 = vector.broadcast %65 : vector<1x8xf32> to vector<256x8xf32>
    %67 = arith.addf %64, %66 : vector<256x8xf32>
    %68 = vector.shape_cast %67 : vector<256x8xf32> to vector<16x16x8xf32>
    %cst_84 = arith.constant 0.000000e+00 : f32
    %69 = vector.broadcast %cst_84 : f32 to vector<16x16x8xf32>
    %70 = arith.cmpf oge, %68, %69 : vector<16x16x8xf32>
    %cst_85 = arith.constant 2.000000e-01 : f32
    %71 = vector.broadcast %cst_85 : f32 to vector<16x16x8xf32>
    %72 = arith.mulf %71, %68 : vector<16x16x8xf32>
    %73 = arith.select %70, %68, %72 : vector<16x16x8xi1>, vector<16x16x8xf32>
    %c1_86 = arith.constant 1 : index
    %c1_87 = arith.constant 1 : index
    %c0_88 = arith.constant 0 : index
    %74 = vector.load %arg7[%c1_86, %c1_87, %c0_88] : memref<18x18x8xf32, #tpu.memory_space<vmem>>, vector<16x16x8xf32>
    tpu.vector_store %arg7[%c1_86, %c1_87, %c0_88], %73 {strides = array<i32>} : memref<18x18x8xf32, #tpu.memory_space<vmem>>, vector<16x16x8xf32>,
    %cst_89 = arith.constant 0.000000e+00 : f32
    %75 = vector.broadcast %cst_89 : f32 to vector<256x8xf32>
    %c0_90 = arith.constant 0 : index
    %c0_91 = arith.constant 0 : index
    %c0_92 = arith.constant 0 : index
    %76 = vector.load %arg7[%c0_90, %c0_91, %c0_92] : memref<18x18x8xf32, #tpu.memory_space<vmem>>, vector<16x16x8xf32>
    %77 = vector.shape_cast %76 : vector<16x16x8xf32> to vector<256x8xf32>
    %c0_93 = arith.constant 0 : index
    %c0_94 = arith.constant 0 : index
    %c0_95 = arith.constant 0 : index
    %c0_96 = arith.constant 0 : index
    %78 = vector.load %arg4[%c0_93, %c0_94, %c0_95, %c0_96] : memref<3x3x8x8xf32, #tpu.memory_space<vmem>>, vector<1x1x8x8xf32>
    %79 = vector.shape_cast %78 : vector<1x1x8x8xf32> to vector<8x8xf32>
    %cst_97 = arith.constant dense<0.000000e+00> : vector<256x8xf32>
    %80 = tpu.matmul %77, %79, %cst_97 {dimension_numbers = #tpu.dot_dimension_numbers<[1], [0], [0], [1], [0, 0, 1, 1], [], []>} : vector<256x8xf32>, vector<8x8xf32>, vector<256x8xf32> -> vector<256x8xf32>
    %81 = arith.addf %75, %80 : vector<256x8xf32>
    %c0_98 = arith.constant 0 : index
    %c1_99 = arith.constant 1 : index
    %c0_100 = arith.constant 0 : index
    %82 = vector.load %arg7[%c0_98, %c1_99, %c0_100] : memref<18x18x8xf32, #tpu.memory_space<vmem>>, vector<16x16x8xf32>
    %83 = vector.shape_cast %82 : vector<16x16x8xf32> to vector<256x8xf32>
    %c0_101 = arith.constant 0 : index
    %c1_102 = arith.constant 1 : index
    %c0_103 = arith.constant 0 : index
    %c0_104 = arith.constant 0 : index
    %84 = vector.load %arg4[%c0_101, %c1_102, %c0_103, %c0_104] : memref<3x3x8x8xf32, #tpu.memory_space<vmem>>, vector<1x1x8x8xf32>
    %85 = vector.shape_cast %84 : vector<1x1x8x8xf32> to vector<8x8xf32>
    %cst_105 = arith.constant dense<0.000000e+00> : vector<256x8xf32>
    %86 = tpu.matmul %83, %85, %cst_105 {dimension_numbers = #tpu.dot_dimension_numbers<[1], [0], [0], [1], [0, 0, 1, 1], [], []>} : vector<256x8xf32>, vector<8x8xf32>, vector<256x8xf32> -> vector<256x8xf32>
    %87 = arith.addf %81, %86 : vector<256x8xf32>
    %c0_106 = arith.constant 0 : index
    %c2_107 = arith.constant 2 : index
    %c0_108 = arith.constant 0 : index
    %88 = vector.load %arg7[%c0_106, %c2_107, %c0_108] : memref<18x18x8xf32, #tpu.memory_space<vmem>>, vector<16x16x8xf32>
    %89 = vector.shape_cast %88 : vector<16x16x8xf32> to vector<256x8xf32>
    %c0_109 = arith.constant 0 : index
    %c2_110 = arith.constant 2 : index
    %c0_111 = arith.constant 0 : index
    %c0_112 = arith.constant 0 : index
    %90 = vector.load %arg4[%c0_109, %c2_110, %c0_111, %c0_112] : memref<3x3x8x8xf32, #tpu.memory_space<vmem>>, vector<1x1x8x8xf32>
    %91 = vector.shape_cast %90 : vector<1x1x8x8xf32> to vector<8x8xf32>
    %cst_113 = arith.constant dense<0.000000e+00> : vector<256x8xf32>
    %92 = tpu.matmul %89, %91, %cst_113 {dimension_numbers = #tpu.dot_dimension_numbers<[1], [0], [0], [1], [0, 0, 1, 1], [], []>} : vector<256x8xf32>, vector<8x8xf32>, vector<256x8xf32> -> vector<256x8xf32>
    %93 = arith.addf %87, %92 : vector<256x8xf32>
    %c1_114 = arith.constant 1 : index
    %c0_115 = arith.constant 0 : index
    %c0_116 = arith.constant 0 : index
    %94 = vector.load %arg7[%c1_114, %c0_115, %c0_116] : memref<18x18x8xf32, #tpu.memory_space<vmem>>, vector<16x16x8xf32>
    %95 = vector.shape_cast %94 : vector<16x16x8xf32> to vector<256x8xf32>
    %c1_117 = arith.constant 1 : index
    %c0_118 = arith.constant 0 : index
    %c0_119 = arith.constant 0 : index
    %c0_120 = arith.constant 0 : index
    %96 = vector.load %arg4[%c1_117, %c0_118, %c0_119, %c0_120] : memref<3x3x8x8xf32, #tpu.memory_space<vmem>>, vector<1x1x8x8xf32>
    %97 = vector.shape_cast %96 : vector<1x1x8x8xf32> to vector<8x8xf32>
    %cst_121 = arith.constant dense<0.000000e+00> : vector<256x8xf32>
    %98 = tpu.matmul %95, %97, %cst_121 {dimension_numbers = #tpu.dot_dimension_numbers<[1], [0], [0], [1], [0, 0, 1, 1], [], []>} : vector<256x8xf32>, vector<8x8xf32>, vector<256x8xf32> -> vector<256x8xf32>
    %99 = arith.addf %93, %98 : vector<256x8xf32>
    %c1_122 = arith.constant 1 : index
    %c1_123 = arith.constant 1 : index
    %c0_124 = arith.constant 0 : index
    %100 = vector.load %arg7[%c1_122, %c1_123, %c0_124] : memref<18x18x8xf32, #tpu.memory_space<vmem>>, vector<16x16x8xf32>
    %101 = vector.shape_cast %100 : vector<16x16x8xf32> to vector<256x8xf32>
    %c1_125 = arith.constant 1 : index
    %c1_126 = arith.constant 1 : index
    %c0_127 = arith.constant 0 : index
    %c0_128 = arith.constant 0 : index
    %102 = vector.load %arg4[%c1_125, %c1_126, %c0_127, %c0_128] : memref<3x3x8x8xf32, #tpu.memory_space<vmem>>, vector<1x1x8x8xf32>
    %103 = vector.shape_cast %102 : vector<1x1x8x8xf32> to vector<8x8xf32>
    %cst_129 = arith.constant dense<0.000000e+00> : vector<256x8xf32>
    %104 = tpu.matmul %101, %103, %cst_129 {dimension_numbers = #tpu.dot_dimension_numbers<[1], [0], [0], [1], [0, 0, 1, 1], [], []>} : vector<256x8xf32>, vector<8x8xf32>, vector<256x8xf32> -> vector<256x8xf32>
    %105 = arith.addf %99, %104 : vector<256x8xf32>
    %c1_130 = arith.constant 1 : index
    %c2_131 = arith.constant 2 : index
    %c0_132 = arith.constant 0 : index
    %106 = vector.load %arg7[%c1_130, %c2_131, %c0_132] : memref<18x18x8xf32, #tpu.memory_space<vmem>>, vector<16x16x8xf32>
    %107 = vector.shape_cast %106 : vector<16x16x8xf32> to vector<256x8xf32>
    %c1_133 = arith.constant 1 : index
    %c2_134 = arith.constant 2 : index
    %c0_135 = arith.constant 0 : index
    %c0_136 = arith.constant 0 : index
    %108 = vector.load %arg4[%c1_133, %c2_134, %c0_135, %c0_136] : memref<3x3x8x8xf32, #tpu.memory_space<vmem>>, vector<1x1x8x8xf32>
    %109 = vector.shape_cast %108 : vector<1x1x8x8xf32> to vector<8x8xf32>
    %cst_137 = arith.constant dense<0.000000e+00> : vector<256x8xf32>
    %110 = tpu.matmul %107, %109, %cst_137 {dimension_numbers = #tpu.dot_dimension_numbers<[1], [0], [0], [1], [0, 0, 1, 1], [], []>} : vector<256x8xf32>, vector<8x8xf32>, vector<256x8xf32> -> vector<256x8xf32>
    %111 = arith.addf %105, %110 : vector<256x8xf32>
    %c2_138 = arith.constant 2 : index
    %c0_139 = arith.constant 0 : index
    %c0_140 = arith.constant 0 : index
    %112 = vector.load %arg7[%c2_138, %c0_139, %c0_140] : memref<18x18x8xf32, #tpu.memory_space<vmem>>, vector<16x16x8xf32>
    %113 = vector.shape_cast %112 : vector<16x16x8xf32> to vector<256x8xf32>
    %c2_141 = arith.constant 2 : index
    %c0_142 = arith.constant 0 : index
    %c0_143 = arith.constant 0 : index
    %c0_144 = arith.constant 0 : index
    %114 = vector.load %arg4[%c2_141, %c0_142, %c0_143, %c0_144] : memref<3x3x8x8xf32, #tpu.memory_space<vmem>>, vector<1x1x8x8xf32>
    %115 = vector.shape_cast %114 : vector<1x1x8x8xf32> to vector<8x8xf32>
    %cst_145 = arith.constant dense<0.000000e+00> : vector<256x8xf32>
    %116 = tpu.matmul %113, %115, %cst_145 {dimension_numbers = #tpu.dot_dimension_numbers<[1], [0], [0], [1], [0, 0, 1, 1], [], []>} : vector<256x8xf32>, vector<8x8xf32>, vector<256x8xf32> -> vector<256x8xf32>
    %117 = arith.addf %111, %116 : vector<256x8xf32>
    %c2_146 = arith.constant 2 : index
    %c1_147 = arith.constant 1 : index
    %c0_148 = arith.constant 0 : index
    %118 = vector.load %arg7[%c2_146, %c1_147, %c0_148] : memref<18x18x8xf32, #tpu.memory_space<vmem>>, vector<16x16x8xf32>
    %119 = vector.shape_cast %118 : vector<16x16x8xf32> to vector<256x8xf32>
    %c2_149 = arith.constant 2 : index
    %c1_150 = arith.constant 1 : index
    %c0_151 = arith.constant 0 : index
    %c0_152 = arith.constant 0 : index
    %120 = vector.load %arg4[%c2_149, %c1_150, %c0_151, %c0_152] : memref<3x3x8x8xf32, #tpu.memory_space<vmem>>, vector<1x1x8x8xf32>
    %121 = vector.shape_cast %120 : vector<1x1x8x8xf32> to vector<8x8xf32>
    %cst_153 = arith.constant dense<0.000000e+00> : vector<256x8xf32>
    %122 = tpu.matmul %119, %121, %cst_153 {dimension_numbers = #tpu.dot_dimension_numbers<[1], [0], [0], [1], [0, 0, 1, 1], [], []>} : vector<256x8xf32>, vector<8x8xf32>, vector<256x8xf32> -> vector<256x8xf32>
    %123 = arith.addf %117, %122 : vector<256x8xf32>
    %c2_154 = arith.constant 2 : index
    %c2_155 = arith.constant 2 : index
    %c0_156 = arith.constant 0 : index
    %124 = vector.load %arg7[%c2_154, %c2_155, %c0_156] : memref<18x18x8xf32, #tpu.memory_space<vmem>>, vector<16x16x8xf32>
    %125 = vector.shape_cast %124 : vector<16x16x8xf32> to vector<256x8xf32>
    %c2_157 = arith.constant 2 : index
    %c2_158 = arith.constant 2 : index
    %c0_159 = arith.constant 0 : index
    %c0_160 = arith.constant 0 : index
    %126 = vector.load %arg4[%c2_157, %c2_158, %c0_159, %c0_160] : memref<3x3x8x8xf32, #tpu.memory_space<vmem>>, vector<1x1x8x8xf32>
    %127 = vector.shape_cast %126 : vector<1x1x8x8xf32> to vector<8x8xf32>
    %cst_161 = arith.constant dense<0.000000e+00> : vector<256x8xf32>
    %128 = tpu.matmul %125, %127, %cst_161 {dimension_numbers = #tpu.dot_dimension_numbers<[1], [0], [0], [1], [0, 0, 1, 1], [], []>} : vector<256x8xf32>, vector<8x8xf32>, vector<256x8xf32> -> vector<256x8xf32>
    %129 = arith.addf %123, %128 : vector<256x8xf32>
    %c0_162 = arith.constant 0 : index
    %c0_163 = arith.constant 0 : index
    %130 = vector.load %arg5[%c0_162, %c0_163] : memref<1x8xf32, #tpu.memory_space<vmem>>, vector<1x8xf32>
    %131 = vector.broadcast %130 : vector<1x8xf32> to vector<256x8xf32>
    %132 = arith.addf %129, %131 : vector<256x8xf32>
    %133 = vector.shape_cast %132 : vector<256x8xf32> to vector<16x16x8xf32>
    %134 = arith.addf %1, %133 : vector<16x16x8xf32>
    %c0_164 = arith.constant 0 : index
    %c0_165 = arith.constant 0 : index
    %c0_166 = arith.constant 0 : index
    %c0_167 = arith.constant 0 : index
    %135 = vector.load %arg6[%c0_164, %c0_165, %c0_166, %c0_167] : memref<1x16x16x8xf32, #tpu.memory_space<vmem>>, vector<1x16x16x8xf32>
    %136 = vector.shape_cast %135 : vector<1x16x16x8xf32> to vector<16x16x8xf32>
    %137 = vector.shape_cast %134 : vector<16x16x8xf32> to vector<1x16x16x8xf32>
    tpu.vector_store %arg6[%c0_164, %c0_165, %c0_166, %c0_167], %137 {strides = array<i32>} : memref<1x16x16x8xf32, #tpu.memory_space<vmem>>, vector<1x16x16x8xf32>,
    return
  }
  func.func @transform_0(%arg0: i32) -> (i32, i32, i32, i32) {
    %c0_i32 = arith.constant 0 : i32
    %c0_i32_0 = arith.constant 0 : i32
    %c0_i32_1 = arith.constant 0 : i32
    %c0_i32_2 = arith.constant 0 : i32
    return %arg0, %c0_i32, %c0_i32_0, %c0_i32_1 : i32, i32, i32, i32
  }
  func.func @transform_1(%arg0: i32) -> (i32, i32, i32, i32) {
    %c0_i32 = arith.constant 0 : i32
    %c0_i32_0 = arith.constant 0 : i32
    %c0_i32_1 = arith.constant 0 : i32
    %c0_i32_2 = arith.constant 0 : i32
    %c0_i32_3 = arith.constant 0 : i32
    return %c0_i32, %c0_i32_0, %c0_i32_1, %c0_i32_2 : i32, i32, i32, i32
  }
  func.func @transform_2(%arg0: i32) -> (i32, i32) {
    %c0_i32 = arith.constant 0 : i32
    %c0_i32_0 = arith.constant 0 : i32
    %c0_i32_1 = arith.constant 0 : i32
    return %c0_i32, %c0_i32_0 : i32, i32
  }
  func.func @transform_3(%arg0: i32) -> (i32, i32, i32, i32) {
    %c0_i32 = arith.constant 0 : i32
    %c0_i32_0 = arith.constant 0 : i32
    %c0_i32_1 = arith.constant 0 : i32
    %c0_i32_2 = arith.constant 0 : i32
    %c0_i32_3 = arith.constant 0 : i32
    return %c0_i32, %c0_i32_0, %c0_i32_1, %c0_i32_2 : i32, i32, i32, i32
  }
  func.func @transform_4(%arg0: i32) -> (i32, i32) {
    %c0_i32 = arith.constant 0 : i32
    %c0_i32_0 = arith.constant 0 : i32
    %c0_i32_1 = arith.constant 0 : i32
    return %c0_i32, %c0_i32_0 : i32, i32
  }
  func.func @transform_5(%arg0: i32) -> (i32, i32, i32, i32) {
    %c0_i32 = arith.constant 0 : i32
    %c0_i32_0 = arith.constant 0 : i32
    %c0_i32_1 = arith.constant 0 : i32
    %c0_i32_2 = arith.constant 0 : i32
    return %arg0, %c0_i32, %c0_i32_0, %c0_i32_1 : i32, i32, i32, i32
  }
}

</mosaic_0001>

<bundles_post_ra>
// kernel: tile.8
= control target key start
LH: loop header
LB: loop body
LE: loop exit
PB: predicated region body
PF: predicated region fallthrough
CT: control target
= control target key end

     0   :  { %s22_s0 = inlined_call_operand.vmem [shape: f32[8], index: 0, kind: input, shape index: {}]   ;;  %s23_s1 = inlined_call_operand.vmem [shape: f32[2,8], index: 1, kind: output, shape index: {}]  }
   0x1   :  { %v4_v0 = vld [vmem:[%s22_s0] ss:$0 sm:$0xff] }
   0x2   :  { %5 = vst [vmem:[%s23_s1] sm:$0x3] %v4_v0 }

// kernel: tile.9
= control target key start
LH: loop header
LB: loop body
LE: loop exit
PB: predicated region body
PF: predicated region fallthrough
CT: control target
= control target key end

     0   :  { %vm7_vm0 = vcmask 64512   ;;  %vm13_vm1 = vcmask 130112   ;;  %s39_s0 = inlined_call_operand.vmem [shape: f32[2,8], index: 0, kind: input, shape index: {}]   ;;  %s40_s1 = inlined_call_operand.vmem [shape: f32[1,16], index: 1, kind: output, shape index: {}]  }
   0x1   :  { %v4_v0 = vld [vmem:[%s39_s0] sm:$0x3]  ;;  %s22_s0 = smov 8  }
   0x2   :  { %5 = vst [vmem:[#allocation1] sm:$0x3] %v4_v0 }
   0x9   :  { %v10_v1 = vld [vmem:[#allocation1 + $0x1] sm:$0x1]   ;;  %v6_v2 = vld [vmem:[#allocation1] sm:$0x1]  }
   0xa   :  { %11 = vrot.lane.b32.xlu0 %v10_v1, %s22_s0  ;;  %8 = vst.msk [vmem:[#allocation0] sm:$0x1] %vm7_vm0, %v6_v2  }
  0x7c   :  { %v12_v3 = vpop.permute.xlu0 %11  }
  0x7d   :  { %14 = vst.msk [vmem:[#allocation0] sm:$0x1] %vm13_vm1, %v12_v3  }
  0x84   :  { %v18_v4 = vld [vmem:[#allocation0] sm:$0x1] }
  0x85   :  { %20 = vst [vmem:[%s40_s1] sm:$0x1] %v18_v4 }

// kernel: upblock_forward.2
= control target key start
LH: loop header
LB: loop body
LE: loop exit
PB: predicated region body
PF: predicated region fallthrough
CT: control target
= control target key end

     0   :  { %s750_s15 = smov 0   ;;  %s875_s0 = inlined_call_operand.vmem [shape: f32[2,8,8,16], index: 0, kind: input, shape index: {}]   ;;  %s876_s1 = inlined_call_operand.vmem [shape: f32[2,16,16], index: 1, kind: input, shape index: {}]   ;;  %s877_s2 = inlined_call_operand.vmem [shape: f32[1,16], index: 2, kind: input, shape index: {}]   ;;  %s878_s3 = inlined_call_operand.vmem [shape: f32[2,8,2,8,16], index: 3, kind: input, shape index: {}]   ;;  %s879_s4 = inlined_call_operand.vmem [shape: f32[2,8,2,8,16], index: 4, kind: output, shape index: {}]  }
   0x1 LB: > { %s597_s16 = sadd.s32 4294967295, %s723_s15   ;;  %p601_p0 = scmp.ge.s32.totalorder %s723_s15, 1  ;;  %s723_s15 = sphi %s750_s15, %s14_s15  }
   0x2   : > { %p172_p1 = scmp.lt.s32.totalorder %s723_s15, 3 }
   0x4   : > { %p173_p2 = pnand %p601_p0, %p172_p1 }
   0x5   : > { %v226_v0 = vld [vmem:[%s876_s1] sm:$0xff] (!%p173_p2)  ;;  %v227_v1 = vld [vmem:[%s876_s1 + $0x8] sm:$0xff] (!%p173_p2)  ;;  %v617_v2 = vld [vmem:[%s876_s1 + $0x10] sm:$0xff] (!%p173_p2)  ;;  %p203_p3 = scmp.lt.s32.totalorder (!%p173_p2), %s597_s16, 1  ;;  %vm235_vm0 = vcmask (!%p173_p2), 130048  }
   0x6   : > { %176 = sbr.rel (%p173_p2) target bundleno = 248 (0xf8), region = 36  ;;  %v701_v3 = vpack.c.bf16 (!%p173_p2), %v227_v1, %v226_v0  ;;  %v618_v4 = vld [vmem:[%s876_s1 + $0x18] sm:$0xff] (!%p173_p2)  ;;  %v801_v14 = vld [vmem:[%s877_s2] ss:$0 sm:$0xff] (!%p173_p2) }
   0x7   : > { %v705_v5 = vpack.c.bf16 (!%p173_p2), %v618_v4, %v617_v2 }
   0x8   : > { %702 = vmatprep.subr.bf16.mxu0 (!%p173_p2), %v701_v3 }
   0x9   : > { %706 = vmatprep.subr.bf16.mxu1 (!%p173_p2), %v705_v5  ;;  %704 = vmatpush3.bf16.msra.mxu0 (!%p173_p2), %v701_v3 }
   0xa   : > { %708 = vmatpush3.bf16.msra.mxu1 (!%p173_p2), %v705_v5 }
   0xd   : > { %s881_s16 = smov (!%p203_p3, %s597_s16), 1 }
   0xe   : > { %s646_s25 = sshll.u32 %s881_s16, 6  ;;  %s647_s29 = sshll.u32 %s881_s16, 7 }
   0xf   : > { %s207_s28 = scalar_lea.vmem %s875_s0, %s646_s25  ;;  %s796_s6 = scalar_lea.vmem %s878_s3, %s647_s29 }
  0x10   : > { %v218_v6 = vld [vmem:[%s207_s28] sm:$0xff]  ;;  %v219_v7 = vld [vmem:[%s207_s28 + $0x8] sm:$0xff]  ;;  %v220_v8 = vld [vmem:[%s207_s28 + $0x10] sm:$0xff]  ;;  %s812_s11 = scalar_lea.vmem %s879_s4, %s647_s29 }
  0x11   : > { %673 = vmatprep.mubr.msk.f32.mxu0 %vm235_vm0, %v218_v6  ;;  %689 = vmatprep.mubr.msk.f32.mxu1 %vm235_vm0, %v218_v6  ;;  %v221_v9 = vld [vmem:[%s207_s28 + $0x18] sm:$0xff]  ;;  %v222_v10 = vld [vmem:[%s207_s28 + $0x20] sm:$0xff]  ;;  %v223_v11 = vld [vmem:[%s207_s28 + $0x28] sm:$0xff] }
  0x12   : > { %674 = vmatmul.mubr.msk.f32.vlgmr.msra.gmra.mrb[0].mxu0 %vm235_vm0, %v219_v7  ;;  %690 = vmatmul.mubr.msk.f32.vlgmr.msra.gmra.mrb[0].mxu1 %vm235_vm0, %v219_v7  ;;  %v224_v12 = vld [vmem:[%s207_s28 + $0x30] sm:$0xff]  ;;  %v225_v13 = vld [vmem:[%s207_s28 + $0x38] sm:$0xff]  ;;  %v365_v22 = vld [vmem:[%s796_s6] sm:$0xff] }
  0x13   : > { %676 = vmatprep.mubr.msk.f32.mxu0 %vm235_vm0, %v220_v8  ;;  %692 = vmatprep.mubr.msk.f32.mxu1 %vm235_vm0, %v220_v8  ;;  %v366_v16 = vld [vmem:[%s796_s6 + $0x10] sm:$0xff]  ;;  %v629_v18 = vld [vmem:[%s796_s6 + $0x18] sm:$0xff]  ;;  %v628_v24 = vld [vmem:[%s796_s6 + $0x8] sm:$0xff] }
  0x14   : > { %v368_v32 = vld [vmem:[%s796_s6 + $0x30] sm:$0xff]  ;;  %v631_v34 = vld [vmem:[%s796_s6 + $0x38] sm:$0xff]  ;;  %v367_v38 = vld [vmem:[%s796_s6 + $0x20] sm:$0xff] }
  0x15   : > { %v630_v40 = vld [vmem:[%s796_s6 + $0x28] sm:$0xff]  ;;  %v370_v48 = vld [vmem:[%s796_s6 + $0x50] sm:$0xff]  ;;  %v633_v50 = vld [vmem:[%s796_s6 + $0x58] sm:$0xff] }
  0x16   : > { %677 = vmatmul.mubr.msk.f32.gmra.mrb[2].mxu0 %vm235_vm0, %v221_v9  ;;  %693 = vmatmul.mubr.msk.f32.gmra.mrb[2].mxu1 %vm235_vm0, %v221_v9  ;;  %v369_v54 = vld [vmem:[%s796_s6 + $0x40] sm:$0xff]  ;;  %v632_v56 = vld [vmem:[%s796_s6 + $0x48] sm:$0xff]  ;;  %v372_v0 = vld [vmem:[%s796_s6 + $0x70] sm:$0xff] }
  0x17   : > { %679 = vmatprep.mubr.msk.f32.mxu0 %vm235_vm0, %v222_v10  ;;  %695 = vmatprep.mubr.msk.f32.mxu1 %vm235_vm0, %v222_v10  ;;  %v635_v2 = vld [vmem:[%s796_s6 + $0x78] sm:$0xff]  ;;  %v371_v6 = vld [vmem:[%s796_s6 + $0x60] sm:$0xff]  ;;  %v634_v8 = vld [vmem:[%s796_s6 + $0x68] sm:$0xff] }
  0x1a   : > { %680 = vmatmul.mubr.msk.f32.gmra.mrb[4].mxu0 %vm235_vm0, %v223_v11  ;;  %696 = vmatmul.mubr.msk.f32.gmra.mrb[4].mxu1 %vm235_vm0, %v223_v11 }
  0x1b   : > { %682 = vmatprep.mubr.msk.f32.mxu0 %vm235_vm0, %v224_v12  ;;  %698 = vmatprep.mubr.msk.f32.mxu1 %vm235_vm0, %v224_v12 }
  0x1e   : > { %683 = vmatmul.mubr.msk.f32.gmra.mrb[6].mxu0 %vm235_vm0, %v225_v13  ;;  %699 = vmatmul.mubr.msk.f32.gmra.mrb[6].mxu1 %vm235_vm0, %v225_v13 }
  0xe5   : > { %v675_v15 = vpop.f32.mrb[0].mxu0  ;;  %v691_v17 = vpop.f32.mrb[0].mxu1 }
  0xe6   : > { %v332_v19 = vadd.f32 %v675_v15, %v801_v14  ;;  %v471_v20 = vadd.f32 %v691_v17, %v801_v14  ;;  %v326_v21 = vpop.f32.mrb[1].mxu0  ;;  %v465_v23 = vpop.f32.mrb[1].mxu1 }
  0xe7   : > { %v327_v25 = vadd.f32 %v801_v14, %v326_v21  ;;  %v466_v26 = vadd.f32 %v801_v14, %v465_v23 }
  0xe8   : > { %v374_v27 = vadd.f32 %v366_v16, %v332_v19  ;;  %v514_v28 = vadd.f32 %v629_v18, %v471_v20 }
  0xe9   : > { %v373_v29 = vadd.f32 %v365_v22, %v327_v25  ;;  %v513_v30 = vadd.f32 %v628_v24, %v466_v26  ;;  %v678_v31 = vpop.f32.mrb[2].mxu0  ;;  %v694_v33 = vpop.f32.mrb[2].mxu1 }
  0xea   : > { %382 = vst.msk [vmem:[%s812_s11 + $0x10] sm:$0xff] %vm235_vm0, %v374_v27  ;;  %637 = vst.msk [vmem:[%s812_s11 + $0x18] sm:$0xff] %vm235_vm0, %v514_v28  ;;  %v342_v35 = vadd.f32 %v678_v31, %v801_v14  ;;  %v481_v36 = vadd.f32 %v694_v33, %v801_v14  ;;  %v336_v37 = vpop.f32.mrb[3].mxu0  ;;  %v475_v39 = vpop.f32.mrb[3].mxu1 }
  0xeb   : > { %381 = vst.msk [vmem:[%s812_s11] sm:$0xff] %vm235_vm0, %v373_v29  ;;  %636 = vst.msk [vmem:[%s812_s11 + $0x8] sm:$0xff] %vm235_vm0, %v513_v30  ;;  %v337_v41 = vadd.f32 %v801_v14, %v336_v37  ;;  %v476_v42 = vadd.f32 %v801_v14, %v475_v39 }
  0xec   : > { %v376_v43 = vadd.f32 %v368_v32, %v342_v35  ;;  %v516_v44 = vadd.f32 %v631_v34, %v481_v36 }
  0xed   : > { %v375_v45 = vadd.f32 %v367_v38, %v337_v41  ;;  %v515_v46 = vadd.f32 %v630_v40, %v476_v42  ;;  %v681_v47 = vpop.f32.mrb[4].mxu0  ;;  %v697_v49 = vpop.f32.mrb[4].mxu1 }
  0xee   : > { %384 = vst.msk [vmem:[%s812_s11 + $0x30] sm:$0xff] %vm235_vm0, %v376_v43  ;;  %639 = vst.msk [vmem:[%s812_s11 + $0x38] sm:$0xff] %vm235_vm0, %v516_v44  ;;  %v352_v51 = vadd.f32 %v681_v47, %v801_v14  ;;  %v491_v52 = vadd.f32 %v697_v49, %v801_v14  ;;  %v346_v53 = vpop.f32.mrb[5].mxu0  ;;  %v485_v55 = vpop.f32.mrb[5].mxu1 }
  0xef   : > { %383 = vst.msk [vmem:[%s812_s11 + $0x20] sm:$0xff] %vm235_vm0, %v375_v45  ;;  %638 = vst.msk [vmem:[%s812_s11 + $0x28] sm:$0xff] %vm235_vm0, %v515_v46  ;;  %v347_v57 = vadd.f32 %v801_v14, %v346_v53  ;;  %v486_v58 = vadd.f32 %v801_v14, %v485_v55 }
  0xf0   : > { %v378_v59 = vadd.f32 %v370_v48, %v352_v51  ;;  %v518_v60 = vadd.f32 %v633_v50, %v491_v52 }
  0xf1   : > { %v377_v61 = vadd.f32 %v369_v54, %v347_v57  ;;  %v517_v62 = vadd.f32 %v632_v56, %v486_v58  ;;  %v684_v63 = vpop.f32.mrb[6].mxu0  ;;  %v700_v1 = vpop.f32.mrb[6].mxu1 }
  0xf2   : > { %386 = vst.msk [vmem:[%s812_s11 + $0x50] sm:$0xff] %vm235_vm0, %v378_v59  ;;  %641 = vst.msk [vmem:[%s812_s11 + $0x58] sm:$0xff] %vm235_vm0, %v518_v60  ;;  %v362_v3 = vadd.f32 %v684_v63, %v801_v14  ;;  %v501_v4 = vadd.f32 %v700_v1, %v801_v14  ;;  %v356_v5 = vpop.f32.mrb[7].mxu0  ;;  %v495_v7 = vpop.f32.mrb[7].mxu1 }
  0xf3   : > { %385 = vst.msk [vmem:[%s812_s11 + $0x40] sm:$0xff] %vm235_vm0, %v377_v61  ;;  %640 = vst.msk [vmem:[%s812_s11 + $0x48] sm:$0xff] %vm235_vm0, %v517_v62  ;;  %v357_v9 = vadd.f32 %v801_v14, %v356_v5  ;;  %v496_v10 = vadd.f32 %v801_v14, %v495_v7 }
  0xf4   : > { %v380_v11 = vadd.f32 %v372_v0, %v362_v3  ;;  %v520_v12 = vadd.f32 %v635_v2, %v501_v4 }
  0xf5   : > { %v379_v13 = vadd.f32 %v371_v6, %v357_v9  ;;  %v519_v15 = vadd.f32 %v634_v8, %v496_v10 }
  0xf6   : > { %388 = vst.msk [vmem:[%s812_s11 + $0x70] sm:$0xff] %vm235_vm0, %v380_v11  ;;  %643 = vst.msk [vmem:[%s812_s11 + $0x78] sm:$0xff] %vm235_vm0, %v520_v12 }
  0xf7   : > { %387 = vst.msk [vmem:[%s812_s11 + $0x60] sm:$0xff] %vm235_vm0, %v379_v13  ;;  %642 = vst.msk [vmem:[%s812_s11 + $0x68] sm:$0xff] %vm235_vm0, %v519_v15 }
  0xf8 PF: > { %s14_s15 = sadd.s32 1, %s723_s15  }
  0xf9   : > { %p11_p4 = scmp.ge.s32.totalorder %s14_s15, 4  }
  0xfb   :  { %13 = sbr.rel (!%p11_p4) target bundleno = 1 (0x1), region = 72 }

// kernel: upblock_forward.3
= control target key start
LH: loop header
LB: loop body
LE: loop exit
PB: predicated region body
PF: predicated region fallthrough
CT: control target
= control target key end

     0   :  { %s10297_s18 = smov 0   ;;  %s12230_s0 = inlined_call_operand.vmem [shape: f32[2,16,16,8], index: 0, kind: input, shape index: {}]   ;;  %s12231_s1 = inlined_call_operand.vmem [shape: f32[3,3,8,8], index: 1, kind: input, shape index: {}]   ;;  %s12232_s2 = inlined_call_operand.vmem [shape: f32[1,8], index: 2, kind: input, shape index: {}]   ;;  %s12233_s3 = inlined_call_operand.vmem [shape: f32[3,3,8,8], index: 3, kind: input, shape index: {}]   ;;  %s12234_s4 = inlined_call_operand.vmem [shape: f32[1,8], index: 4, kind: input, shape index: {}]   ;;  %s12235_s5 = inlined_call_operand.vmem [shape: f32[2,16,16,8], index: 5, kind: output, shape index: {}]  }
   0x1 LB: > { %s7604_s19 = sadd.s32 4294967295, %s10264_s18   ;;  %p7608_p0 = scmp.ge.s32.totalorder %s10264_s18, 1  ;;  %s10264_s18 = sphi %s10297_s18, %s15_s18  }
   0x2   : > { %p187_p1 = scmp.lt.s32.totalorder %s10264_s18, 3 }
   0x4   : > { %p188_p2 = pnand %p7608_p0, %p187_p1 }
   0x6   : > { %191 = sbr.rel (%p188_p2) target bundleno = 1571 (0x623), region = 40 }
   0xd   : > { %v7613_v0 = vld [vmem:[%s12231_s1 + $0x8] sm:$0xff]  ;;  %vm257_vm0 = vcmask 64512   ;;  %v10311_v1 = vld [vmem:[%s12231_s1] sm:$0xff]  ;;  %vm260_vm1 = vcmask 58368   ;;  %p10315_p3 = scmp.lt.s32.totalorder %s7604_s19, 1  ;;  %v10266_v2 = vmov 0.0  }
   0xe   : > { %8805 = vmatprep.subr.mxu0 %v7613_v0  ;;  %258 = vst.msk [vmem:[#allocation2] sm:$0xff] %vm257_vm0, %v10266_v2  ;;  %259 = vst.msk [vmem:[#allocation2 + $0x8] sm:$0xff] %vm257_vm0, %v10266_v2  ;;  %v10394_v8 = vld [vmem:[%s12231_s1 + $0x10] sm:$0xff] }
   0xf   : > { %262 = vst.msk [vmem:[#allocation2 + $0x18] sm:$0xff] %vm257_vm0, %v10266_v2  ;;  %263 = vst.msk [vmem:[#allocation2 + $0x20] sm:$0xff] %vm257_vm0, %v10266_v2  ;;  %8806 = vmatpush3.msra.mxu0 %v7613_v0  ;;  %s12485_s19 = smov (!%p10315_p3, %s7604_s19), 1 }
  0x10   : > { %265 = vst.msk [vmem:[#allocation2 + $0x30] sm:$0xff] %vm257_vm0, %v10266_v2  ;;  %266 = vst.msk [vmem:[#allocation2 + $0x38] sm:$0xff] %vm257_vm0, %v10266_v2  ;;  %8855 = vmatprep.subr.mxu0 %v10311_v1  ;;  %s8209_s25 = sshll.u32 %s12485_s19, 8 }
  0x11   : > { %268 = vst.msk [vmem:[#allocation2 + $0x48] sm:$0xff] %vm257_vm0, %v10266_v2  ;;  %269 = vst.msk [vmem:[#allocation2 + $0x50] sm:$0xff] %vm257_vm0, %v10266_v2  ;;  %s10386_s28 = scalar_lea.vmem %s12230_s0, %s8209_s25  ;;  %s12098_s23 = scalar_lea.vmem %s12235_s5, %s8209_s25 }
  0x12   : > { %271 = vst.msk [vmem:[#allocation2 + $0x60] sm:$0xff] %vm257_vm0, %v10266_v2  ;;  %272 = vst.msk [vmem:[#allocation2 + $0x68] sm:$0xff] %vm257_vm0, %v10266_v2  ;;  %v225_v3 = vld [vmem:[%s10386_s28] sm:$0xff]  ;;  %v226_v4 = vld [vmem:[%s10386_s28 + $0x8] sm:$0xff] }
  0x13   : > { %274 = vst.msk [vmem:[#allocation2 + $0x78] sm:$0xff] %vm257_vm0, %v10266_v2  ;;  %275 = vst.msk [vmem:[#allocation2 + $0x80] sm:$0xff] %vm257_vm0, %v10266_v2  ;;  %v227_v5 = vld [vmem:[%s10386_s28 + $0x10] sm:$0xff]  ;;  %vm313_vm2 = vcmp.ge.f32.partialorder %v225_v3, 0.0  ;;  %v345_v6 = vmul.f32 0.2, %v225_v3 }
  0x14   : > { %277 = vst.msk [vmem:[#allocation2 + $0x90] sm:$0xff] %vm257_vm0, %v10266_v2  ;;  %278 = vst.msk [vmem:[#allocation2 + $0x98] sm:$0xff] %vm257_vm0, %v10266_v2  ;;  %vm314_vm3 = vcmp.ge.f32.partialorder %v226_v4, 0.0  ;;  %v346_v7 = vmul.f32 0.2, %v226_v4  ;;  %vm315_vm4 = vcmp.ge.f32.partialorder %v227_v5, 0.0 }
  0x15   : > { %280 = vst.msk [vmem:[#allocation2 + $0xa8] sm:$0xff] %vm257_vm0, %v10266_v2  ;;  %281 = vst.msk [vmem:[#allocation2 + $0xb0] sm:$0xff] %vm257_vm0, %v10266_v2  ;;  %v475_v9 = vld [vmem:[#allocation2 + $0x1] sm:$0xff]  ;;  %v347_v11 = vmul.f32 0.2, %v227_v5  ;;  %v228_v12 = vld [vmem:[%s10386_s28 + $0x18] sm:$0xff]  ;;  %v377_v13 = vsel %vm313_vm2, %v225_v3, %v345_v6 }
  0x16   : > { %283 = vst.msk [vmem:[#allocation2 + $0xc0] sm:$0xff] %vm257_vm0, %v10266_v2  ;;  %284 = vst.msk [vmem:[#allocation2 + $0xc8] sm:$0xff] %vm257_vm0, %v10266_v2  ;;  %8807 = vmatprep.mubr.msk.f32.mxu0 %vm257_vm0, %v475_v9  ;;  %v378_v14 = vsel %vm314_vm3, %v226_v4, %v346_v7  ;;  %vm316_vm5 = vcmp.ge.f32.partialorder %v228_v12, 0.0  ;;  %v348_v15 = vmul.f32 0.2, %v228_v12  ;;  %v229_v16 = vld [vmem:[%s10386_s28 + $0x20] sm:$0xff] }
  0x17   : > { %286 = vst.msk [vmem:[#allocation2 + $0xd8] sm:$0xff] %vm257_vm0, %v10266_v2  ;;  %287 = vst.msk [vmem:[#allocation2 + $0xe0] sm:$0xff] %vm257_vm0, %v10266_v2  ;;  %v230_v17 = vld [vmem:[%s10386_s28 + $0x28] sm:$0xff]  ;;  %v231_v18 = vld [vmem:[%s10386_s28 + $0x30] sm:$0xff]  ;;  %v379_v19 = vsel %vm315_vm4, %v227_v5, %v347_v11  ;;  %vm317_vm6 = vcmp.ge.f32.partialorder %v229_v16, 0.0 }
  0x18   : > { %289 = vst.msk [vmem:[#allocation2 + $0xf0] sm:$0xff] %vm257_vm0, %v10266_v2  ;;  %290 = vst.msk [vmem:[#allocation2 + $0xf8] sm:$0xff] %vm257_vm0, %v10266_v2  ;;  %v349_v20 = vmul.f32 0.2, %v229_v16  ;;  %vm318_vm7 = vcmp.ge.f32.partialorder %v230_v17, 0.0  ;;  %v232_v21 = vld [vmem:[%s10386_s28 + $0x38] sm:$0xff]  ;;  %v380_v23 = vsel %vm316_vm5, %v228_v12, %v348_v15 }
  0x19   : > { %292 = vst.msk [vmem:[#allocation2 + $0x108] sm:$0xff] %vm257_vm0, %v10266_v2  ;;  %293 = vst.msk [vmem:[#allocation2 + $0x110] sm:$0xff] %vm257_vm0, %v10266_v2  ;;  %v233_v22 = vld [vmem:[%s10386_s28 + $0x40] sm:$0xff]  ;;  %v350_v24 = vmul.f32 0.2, %v230_v17  ;;  %vm319_vm8 = vcmp.ge.f32.partialorder %v231_v18, 0.0 }
  0x1a   : > { %295 = vst.msk [vmem:[#allocation2 + $0x120] sm:$0xff] %vm257_vm0, %v10266_v2  ;;  %296 = vst.msk [vmem:[#allocation2 + $0x128] sm:$0xff] %vm257_vm0, %v10266_v2  ;;  %v351_v25 = vmul.f32 0.2, %v231_v18  ;;  %v234_v26 = vld [vmem:[%s10386_s28 + $0x48] sm:$0xff]  ;;  %v381_v27 = vsel %vm317_vm6, %v229_v16, %v349_v20  ;;  %vm320_vm9 = vcmp.ge.f32.partialorder %v232_v21, 0.0 }
  0x1b   : > { %298 = vst.msk [vmem:[#allocation2 + $0x138] sm:$0xff] %vm257_vm0, %v10266_v2  ;;  %299 = vst.msk [vmem:[#allocation2 + $0x140] sm:$0xff] %vm257_vm0, %v10266_v2  ;;  %v352_v28 = vmul.f32 0.2, %v232_v21  ;;  %vm321_vm10 = vcmp.ge.f32.partialorder %v233_v22, 0.0  ;;  %v235_v29 = vld [vmem:[%s10386_s28 + $0x50] sm:$0xff]  ;;  %v382_v31 = vsel %vm318_vm7, %v230_v17, %v350_v24 }
  0x1c   : > { %301 = vst.msk [vmem:[#allocation2 + $0x150] sm:$0xff] %vm257_vm0, %v10266_v2  ;;  %302 = vst.msk [vmem:[#allocation2 + $0x158] sm:$0xff] %vm257_vm0, %v10266_v2  ;;  %v236_v30 = vld [vmem:[%s10386_s28 + $0x58] sm:$0xff]  ;;  %v383_v32 = vsel %vm319_vm8, %v231_v18, %v351_v25  ;;  %v353_v33 = vmul.f32 0.2, %v233_v22  ;;  %vm322_vm11 = vcmp.ge.f32.partialorder %v234_v26, 0.0 }
  0x1d   : > { %304 = vst.msk [vmem:[#allocation2 + $0x168] sm:$0xff] %vm257_vm0, %v10266_v2  ;;  %305 = vst.msk [vmem:[#allocation2 + $0x170] sm:$0xff] %vm257_vm0, %v10266_v2  ;;  %v237_v34 = vld [vmem:[%s10386_s28 + $0x60] sm:$0xff]  ;;  %v238_v35 = vld [vmem:[%s10386_s28 + $0x68] sm:$0xff]  ;;  %v384_v37 = vsel %vm320_vm9, %v232_v21, %v352_v28  ;;  %v354_v38 = vmul.f32 0.2, %v234_v26 }
  0x1e   : > { %307 = vst.msk [vmem:[#allocation2 + $0x180] sm:$0xff] %vm257_vm0, %v10266_v2  ;;  %308 = vst.msk [vmem:[#allocation2 + $0x188] sm:$0xff] %vm257_vm0, %v10266_v2  ;;  %v239_v36 = vld [vmem:[%s10386_s28 + $0x70] sm:$0xff]  ;;  %vm323_vm12 = vcmp.ge.f32.partialorder %v235_v29, 0.0  ;;  %v355_v39 = vmul.f32 0.2, %v235_v29  ;;  %v385_v41 = vsel %vm321_vm10, %v233_v22, %v353_v33 }
  0x1f   : > { %310 = vst.msk [vmem:[#allocation2 + $0x198] sm:$0xff] %vm257_vm0, %v10266_v2  ;;  %311 = vst.msk [vmem:[#allocation2 + $0x1a0] sm:$0xff] %vm257_vm0, %v10266_v2  ;;  %v240_v40 = vld [vmem:[%s10386_s28 + $0x78] sm:$0xff]  ;;  %vm324_vm13 = vcmp.ge.f32.partialorder %v236_v30, 0.0  ;;  %v356_v42 = vmul.f32 0.2, %v236_v30  ;;  %v386_v44 = vsel %vm322_vm11, %v234_v26, %v354_v38 }
  0x20   : > { %261 = vst.msk [vmem:[#allocation2 + $0x10] sm:$0x3] %vm260_vm1, %v10266_v2  ;;  %264 = vst.msk [vmem:[#allocation2 + $0x28] sm:$0x3] %vm260_vm1, %v10266_v2  ;;  %vm325_vm14 = vcmp.ge.f32.partialorder %v237_v34, 0.0  ;;  %v241_v43 = vld [vmem:[%s10386_s28 + $0x80] sm:$0xff]  ;;  %v387_v45 = vsel %vm323_vm12, %v235_v29, %v355_v39 }
  0x21   : > { %267 = vst.msk [vmem:[#allocation2 + $0x40] sm:$0x3] %vm260_vm1, %v10266_v2  ;;  %270 = vst.msk [vmem:[#allocation2 + $0x58] sm:$0x3] %vm260_vm1, %v10266_v2  ;;  %v357_v46 = vmul.f32 0.2, %v237_v34  ;;  %v388_v52 = vsel %vm324_vm13, %v236_v30, %v356_v42 }
  0x22   : > { %273 = vst.msk [vmem:[#allocation2 + $0x70] sm:$0x3] %vm260_vm1, %v10266_v2  ;;  %276 = vst.msk [vmem:[#allocation2 + $0x88] sm:$0x3] %vm260_vm1, %v10266_v2  ;;  %vm326_vm15 = vcmp.ge.f32.partialorder %v238_v35, 0.0  ;;  %v242_v47 = vld [vmem:[%s10386_s28 + $0x88] sm:$0xff] }
  0x23   : > { %279 = vst.msk [vmem:[#allocation2 + $0xa0] sm:$0x3] %vm260_vm1, %v10266_v2  ;;  %282 = vst.msk [vmem:[#allocation2 + $0xb8] sm:$0x3] %vm260_vm1, %v10266_v2  ;;  %v243_v48 = vld [vmem:[%s10386_s28 + $0x90] sm:$0xff]  ;;  %v244_v49 = vld [vmem:[%s10386_s28 + $0x98] sm:$0xff]  ;;  %v389_v55 = vsel %vm325_vm14, %v237_v34, %v357_v46 }
  0x24   : > { %285 = vst.msk [vmem:[#allocation2 + $0xd0] sm:$0x3] %vm260_vm1, %v10266_v2  ;;  %288 = vst.msk [vmem:[#allocation2 + $0xe8] sm:$0x3] %vm260_vm1, %v10266_v2  ;;  %v358_v53 = vmul.f32 0.2, %v238_v35 }
  0x25   : > { %291 = vst.msk [vmem:[#allocation2 + $0x100] sm:$0x3] %vm260_vm1, %v10266_v2  ;;  %294 = vst.msk [vmem:[#allocation2 + $0x118] sm:$0x3] %vm260_vm1, %v10266_v2  ;;  %vm328_vm2 = vcmp.ge.f32.partialorder %v240_v40, 0.0  ;;  %vm329_vm3 = vcmp.ge.f32.partialorder %v241_v43, 0.0 }
  0x26   : > { %297 = vst.msk [vmem:[#allocation2 + $0x130] sm:$0x3] %vm260_vm1, %v10266_v2  ;;  %300 = vst.msk [vmem:[#allocation2 + $0x148] sm:$0x3] %vm260_vm1, %v10266_v2  ;;  %v359_v56 = vmul.f32 0.2, %v239_v36  ;;  %v390_v58 = vsel %vm326_vm15, %v238_v35, %v358_v53 }
  0x27   : > { %303 = vst.msk [vmem:[#allocation2 + $0x160] sm:$0x3] %vm260_vm1, %v10266_v2  ;;  %306 = vst.msk [vmem:[#allocation2 + $0x178] sm:$0x3] %vm260_vm1, %v10266_v2  ;;  %v476_v10 = vld [vmem:[#allocation2 + $0x9] sm:$0xff]  ;;  %vm330_vm4 = vcmp.ge.f32.partialorder %v242_v47, 0.0 }
  0x28   : > { %309 = vst.msk [vmem:[#allocation2 + $0x190] sm:$0x3] %vm260_vm1, %v10266_v2  ;;  %312 = vst.msk [vmem:[#allocation2 + $0x1a8] sm:$0x3] %vm260_vm1, %v10266_v2  ;;  %8808 = vmatmul.mubr.msk.f32.vlgmr.msra.gmra.mrb[0].mxu0 %vm257_vm0, %v476_v10  ;;  %vm327_vm1 = vcmp.ge.f32.partialorder %v239_v36, 0.0  ;;  %v245_v61 = vld [vmem:[%s10386_s28 + $0xa0] sm:$0xff] }
  0x29   : > { %410 = vst.msk [vmem:[#allocation2 + $0x19] sm:$0xff] %vm257_vm0, %v377_v13  ;;  %411 = vst.msk [vmem:[#allocation2 + $0x21] sm:$0xff] %vm257_vm0, %v378_v14  ;;  %8856 = vmatpush3.msra.mxu0 %v10311_v1  ;;  %v360_v57 = vmul.f32 0.2, %v240_v40  ;;  %v361_v59 = vmul.f32 0.2, %v241_v43  ;;  %v391_v63 = vsel %vm327_vm1, %v239_v36, %v359_v56 }
  0x2a   : > { %412 = vst.msk [vmem:[#allocation2 + $0x31] sm:$0xff] %vm257_vm0, %v379_v19  ;;  %413 = vst.msk [vmem:[#allocation2 + $0x39] sm:$0xff] %vm257_vm0, %v380_v23  ;;  %8905 = vmatprep.subr.mxu0 %v10394_v8  ;;  %v362_v60 = vmul.f32 0.2, %v242_v47  ;;  %vm331_vm5 = vcmp.ge.f32.partialorder %v243_v48, 0.0  ;;  %v246_v2 = vld [vmem:[%s10386_s28 + $0xa8] sm:$0xff] }
  0x2b   : > { %414 = vst.msk [vmem:[#allocation2 + $0x49] sm:$0xff] %vm257_vm0, %v381_v27  ;;  %415 = vst.msk [vmem:[#allocation2 + $0x51] sm:$0xff] %vm257_vm0, %v382_v31  ;;  %v392_v0 = vsel %vm328_vm2, %v240_v40, %v360_v57  ;;  %v363_v1 = vmul.f32 0.2, %v243_v48  ;;  %v247_v3 = vld [vmem:[%s10386_s28 + $0xb0] sm:$0xff]  ;;  %v393_v5 = vsel %vm329_vm3, %v241_v43, %v361_v59  ;;  %vm332_vm6 = vcmp.ge.f32.partialorder %v244_v49, 0.0 }
  0x2c   : > { %416 = vst.msk [vmem:[#allocation2 + $0x61] sm:$0xff] %vm257_vm0, %v383_v32  ;;  %417 = vst.msk [vmem:[#allocation2 + $0x69] sm:$0xff] %vm257_vm0, %v384_v37  ;;  %v394_v6 = vsel %vm330_vm4, %v242_v47, %v362_v60  ;;  %v364_v7 = vmul.f32 0.2, %v244_v49  ;;  %v248_v9 = vld [vmem:[%s10386_s28 + $0xb8] sm:$0xff]  ;;  %vm333_vm7 = vcmp.ge.f32.partialorder %v245_v61, 0.0 }
  0x2d   : > { %418 = vst.msk [vmem:[#allocation2 + $0x79] sm:$0xff] %vm257_vm0, %v385_v41  ;;  %419 = vst.msk [vmem:[#allocation2 + $0x81] sm:$0xff] %vm257_vm0, %v386_v44  ;;  %v395_v10 = vsel %vm331_vm5, %v243_v48, %v363_v1  ;;  %v365_v11 = vmul.f32 0.2, %v245_v61  ;;  %vm334_vm8 = vcmp.ge.f32.partialorder %v246_v2, 0.0  ;;  %v249_v12 = vld [vmem:[%s10386_s28 + $0xc0] sm:$0xff] }
  0x2e   : > { %420 = vst.msk [vmem:[#allocation2 + $0x91] sm:$0xff] %vm257_vm0, %v387_v45  ;;  %421 = vst.msk [vmem:[#allocation2 + $0x99] sm:$0xff] %vm257_vm0, %v388_v52  ;;  %v396_v13 = vsel %vm332_vm6, %v244_v49, %v364_v7  ;;  %v366_v14 = vmul.f32 0.2, %v246_v2  ;;  %vm335_vm9 = vcmp.ge.f32.partialorder %v247_v3, 0.0  ;;  %vm336_vm10 = vcmp.ge.f32.partialorder %v248_v9, 0.0 }
  0x2f   : > { %422 = vst.msk [vmem:[#allocation2 + $0xa9] sm:$0xff] %vm257_vm0, %v389_v55  ;;  %423 = vst.msk [vmem:[#allocation2 + $0xb1] sm:$0xff] %vm257_vm0, %v390_v58  ;;  %v367_v15 = vmul.f32 0.2, %v247_v3  ;;  %v397_v17 = vsel %vm333_vm7, %v245_v61, %v365_v11  ;;  %v368_v18 = vmul.f32 0.2, %v248_v9 }
  0x30   : > { %v10431_v50 = vld [vmem:[#allocation2 + $0x19] sm:$0xff]  ;;  %v10433_v51 = vld [vmem:[#allocation2 + $0x21] sm:$0xff]  ;;  %424 = vst.msk [vmem:[#allocation2 + $0xc1] sm:$0xff] %vm257_vm0, %v391_v63  ;;  %425 = vst.msk [vmem:[#allocation2 + $0xc9] sm:$0xff] %vm257_vm0, %v392_v0  ;;  %vm337_vm11 = vcmp.ge.f32.partialorder %v249_v12, 0.0  ;;  %v398_v20 = vsel %vm334_vm8, %v246_v2, %v366_v14 }
  0x31   : > { %8810 = vmatprep.mubr.msk.f32.mxu0 %vm257_vm0, %v10431_v50  ;;  %v10440_v54 = vld [vmem:[#allocation2 + $0x31] sm:$0xff]  ;;  %v10451_v62 = vld [vmem:[#allocation2 + $0x39] sm:$0xff]  ;;  %426 = vst.msk [vmem:[#allocation2 + $0xd9] sm:$0xff] %vm257_vm0, %v393_v5  ;;  %427 = vst.msk [vmem:[#allocation2 + $0xe1] sm:$0xff] %vm257_vm0, %v394_v6  ;;  %v399_v21 = vsel %vm335_vm9, %v247_v3, %v367_v15  ;;  %v369_v22 = vmul.f32 0.2, %v249_v12  ;;  %v400_v25 = vsel %vm336_vm10, %v248_v9, %v368_v18 }
  0x32   : > { %8811 = vmatmul.mubr.msk.f32.gmra.mrb[2].mxu0 %vm257_vm0, %v10433_v51  ;;  %v10458_v4 = vld [vmem:[#allocation2 + $0x49] sm:$0xff]  ;;  %428 = vst.msk [vmem:[#allocation2 + $0xf1] sm:$0xff] %vm257_vm0, %v395_v10  ;;  %v10473_v16 = vld [vmem:[#allocation2 + $0x51] sm:$0xff]  ;;  %429 = vst.msk [vmem:[#allocation2 + $0xf9] sm:$0xff] %vm257_vm0, %v396_v13 }
  0x33   : > { %8813 = vmatprep.mubr.msk.f32.mxu0 %vm257_vm0, %v10440_v54  ;;  %v10476_v19 = vld [vmem:[#allocation2 + $0x61] sm:$0xff]  ;;  %430 = vst.msk [vmem:[#allocation2 + $0x109] sm:$0xff] %vm257_vm0, %v397_v17  ;;  %v251_v24 = vld [vmem:[%s10386_s28 + $0xd0] sm:$0xff]  ;;  %431 = vst.msk [vmem:[#allocation2 + $0x111] sm:$0xff] %vm257_vm0, %v398_v20  ;;  %v401_v28 = vsel %vm337_vm11, %v249_v12, %v369_v22 }
  0x34   : > { %v250_v23 = vld [vmem:[%s10386_s28 + $0xc8] sm:$0xff]  ;;  %432 = vst.msk [vmem:[#allocation2 + $0x121] sm:$0xff] %vm257_vm0, %v399_v21  ;;  %vm339_vm13 = vcmp.ge.f32.partialorder %v251_v24, 0.0  ;;  %v252_v27 = vld [vmem:[%s10386_s28 + $0xd8] sm:$0xff]  ;;  %433 = vst.msk [vmem:[#allocation2 + $0x129] sm:$0xff] %vm257_vm0, %v400_v25 }
  0x35   : > { %vm338_vm12 = vcmp.ge.f32.partialorder %v250_v23, 0.0  ;;  %v370_v26 = vmul.f32 0.2, %v250_v23  ;;  %v371_v29 = vmul.f32 0.2, %v251_v24  ;;  %vm340_vm14 = vcmp.ge.f32.partialorder %v252_v27, 0.0 }
  0x36   : > { %8814 = vmatmul.mubr.msk.f32.gmra.mrb[4].mxu0 %vm257_vm0, %v10451_v62  ;;  %v372_v30 = vmul.f32 0.2, %v252_v27  ;;  %v10491_v31 = vld [vmem:[#allocation2 + $0x69] sm:$0xff]  ;;  %434 = vst.msk [vmem:[#allocation2 + $0x139] sm:$0xff] %vm257_vm0, %v401_v28  ;;  %v253_v33 = vld [vmem:[%s10386_s28 + $0xe0] sm:$0xff]  ;;  %v10508_v43 = vld [vmem:[#allocation2 + $0x91] sm:$0xff] }
  0x37   : > { %8816 = vmatprep.mubr.msk.f32.mxu0 %vm257_vm0, %v10458_v4  ;;  %v402_v32 = vsel %vm338_vm12, %v250_v23, %v370_v26  ;;  %v10495_v34 = vld [vmem:[#allocation2 + $0x79] sm:$0xff]  ;;  %v403_v35 = vsel %vm339_vm13, %v251_v24, %v371_v29  ;;  %vm341_vm15 = vcmp.ge.f32.partialorder %v253_v33, 0.0  ;;  %v373_v37 = vmul.f32 0.2, %v253_v33  ;;  %v254_v38 = vld [vmem:[%s10386_s28 + $0xe8] sm:$0xff]  ;;  %v10523_v46 = vld [vmem:[#allocation2 + $0xb1] sm:$0xff] }
  0x38   : > { %435 = vst.msk [vmem:[#allocation2 + $0x141] sm:$0xff] %vm257_vm0, %v402_v32  ;;  %v404_v36 = vsel %vm340_vm14, %v252_v27, %v372_v30  ;;  %436 = vst.msk [vmem:[#allocation2 + $0x151] sm:$0xff] %vm257_vm0, %v403_v35  ;;  %vm342_vm1 = vcmp.ge.f32.partialorder %v254_v38, 0.0  ;;  %v374_v39 = vmul.f32 0.2, %v254_v38  ;;  %v10505_v41 = vld [vmem:[#allocation2 + $0x81] sm:$0xff] }
  0x39   : > { %437 = vst.msk [vmem:[#allocation2 + $0x159] sm:$0xff] %vm257_vm0, %v404_v36  ;;  %v405_v40 = vsel %vm341_vm15, %v253_v33, %v373_v37  ;;  %v10515_v44 = vld [vmem:[#allocation2 + $0x99] sm:$0xff]  ;;  %v10517_v45 = vld [vmem:[#allocation2 + $0xa9] sm:$0xff]  ;;  %v10525_v47 = vld [vmem:[#allocation2 + $0xc1] sm:$0xff] }
  0x3a   : > { %8817 = vmatmul.mubr.msk.f32.gmra.mrb[6].mxu0 %vm257_vm0, %v10473_v16  ;;  %438 = vst.msk [vmem:[#allocation2 + $0x169] sm:$0xff] %vm257_vm0, %v405_v40  ;;  %v406_v42 = vsel %vm342_vm1, %v254_v38, %v374_v39  ;;  %v10531_v48 = vld [vmem:[#allocation2 + $0xc9] sm:$0xff]  ;;  %v10533_v49 = vld [vmem:[#allocation2 + $0xd9] sm:$0xff]  ;;  %v10539_v52 = vld [vmem:[#allocation2 + $0xe1] sm:$0xff] }
  0x3b   : > { %8819 = vmatprep.mubr.msk.f32.mxu0 %vm257_vm0, %v10476_v19  ;;  %439 = vst.msk [vmem:[#allocation2 + $0x171] sm:$0xff] %vm257_vm0, %v406_v42  ;;  %v10541_v53 = vld [vmem:[#allocation2 + $0xf1] sm:$0xff]  ;;  %v10547_v55 = vld [vmem:[#allocation2 + $0xf9] sm:$0xff]  ;;  %v10549_v56 = vld [vmem:[#allocation2 + $0x109] sm:$0xff] }
  0x3c   : > { %v10555_v57 = vld [vmem:[#allocation2 + $0x111] sm:$0xff]  ;;  %v10557_v58 = vld [vmem:[#allocation2 + $0x121] sm:$0xff]  ;;  %v10563_v59 = vld [vmem:[#allocation2 + $0x129] sm:$0xff] }
  0x3d   : > { %v10565_v60 = vld [vmem:[#allocation2 + $0x139] sm:$0xff]  ;;  %v443_v5 = vld [vmem:[#allocation2 + $0x8] sm:$0xff]  ;;  %v10605_v10 = vld [vmem:[#allocation2 + $0x30] sm:$0xff] }
  0x3e   : > { %8820 = vmatmul.mubr.msk.f32.gmra.mrb[8].mxu0 %vm257_vm0, %v10491_v31  ;;  %v442_v3 = vld [vmem:[#allocation2] sm:$0xff]  ;;  %v10592_v6 = vld [vmem:[#allocation2 + $0x18] sm:$0xff]  ;;  %v10614_v12 = vld [vmem:[#allocation2 + $0x48] sm:$0xff] }
  0x3f   : > { %8822 = vmatprep.mubr.msk.f32.mxu0 %vm257_vm0, %v10495_v34  ;;  %v10571_v61 = vld [vmem:[#allocation2 + $0x141] sm:$0xff]  ;;  %v10573_v63 = vld [vmem:[#allocation2 + $0x151] sm:$0xff] }
  0x40   : > { %v10579_v0 = vld [vmem:[#allocation2 + $0x159] sm:$0xff]  ;;  %v10628_v14 = vld [vmem:[#allocation2 + $0x68] sm:$0xff]  ;;  %v10638_v18 = vld [vmem:[#allocation2 + $0x90] sm:$0xff] }
  0x41   : > { %12347 = vst [vmem:[#allocation3_spill] sm:$0xff] %v10579_v0  ;;  %v10581_v1 = vld [vmem:[#allocation2 + $0x169] sm:$0xff]  ;;  %v10597_v7 = vld [vmem:[%s12231_s1 + $0x18] sm:$0xff]  ;;  %v10603_v9 = vld [vmem:[#allocation2 + $0x20] sm:$0xff] }
  0x42   : > { %8823 = vmatmul.mubr.msk.f32.gmra.mrb[10].mxu0 %vm257_vm0, %v10505_v41  ;;  %12348 = vst [vmem:[#allocation4_spill] sm:$0xff] %v10581_v1  ;;  %v10587_v2 = vld [vmem:[#allocation2 + $0x171] sm:$0xff]  ;;  %v10622_v13 = vld [vmem:[#allocation2 + $0x60] sm:$0xff]  ;;  %v10646_v21 = vld [vmem:[#allocation2 + $0xa8] sm:$0xff] }
  0x43   : > { %8825 = vmatprep.mubr.msk.f32.mxu0 %vm257_vm0, %v10508_v43  ;;  %12349 = vst [vmem:[#allocation5_spill] sm:$0xff] %v10587_v2  ;;  %v10612_v11 = vld [vmem:[#allocation2 + $0x38] sm:$0xff]  ;;  %v10636_v17 = vld [vmem:[#allocation2 + $0x80] sm:$0xff]  ;;  %v10652_v22 = vld [vmem:[#allocation2 + $0xb0] sm:$0xff] }
  0x44   : > { %v10630_v15 = vld [vmem:[#allocation2 + $0x78] sm:$0xff]  ;;  %v10654_v23 = vld [vmem:[#allocation2 + $0xc0] sm:$0xff]  ;;  %v10660_v24 = vld [vmem:[#allocation2 + $0xc8] sm:$0xff] }
  0x45   : > { %v10644_v20 = vld [vmem:[#allocation2 + $0x98] sm:$0xff]  ;;  %v10668_v26 = vld [vmem:[#allocation2 + $0xe0] sm:$0xff]  ;;  %v10670_v27 = vld [vmem:[#allocation2 + $0xf0] sm:$0xff] }
  0x46   : > { %8826 = vmatmul.mubr.msk.f32.gmra.mrb[12].mxu0 %vm257_vm0, %v10515_v44  ;;  %v10662_v25 = vld [vmem:[#allocation2 + $0xd8] sm:$0xff]  ;;  %v10678_v29 = vld [vmem:[#allocation2 + $0x108] sm:$0xff]  ;;  %v10684_v30 = vld [vmem:[#allocation2 + $0x110] sm:$0xff] }
  0x47   : > { %8828 = vmatprep.mubr.msk.f32.mxu0 %vm257_vm0, %v10517_v45  ;;  %v10676_v28 = vld [vmem:[#allocation2 + $0xf8] sm:$0xff]  ;;  %v10686_v32 = vld [vmem:[#allocation2 + $0x120] sm:$0xff]  ;;  %v10692_v33 = vld [vmem:[#allocation2 + $0x128] sm:$0xff] }
  0x48   : > { %v10694_v35 = vld [vmem:[#allocation2 + $0x138] sm:$0xff]  ;;  %v255_v36 = vld [vmem:[%s10386_s28 + $0xf0] sm:$0xff]  ;;  %v10702_v39 = vld [vmem:[#allocation2 + $0x140] sm:$0xff] }
  0x49   : > { %v375_v37 = vmul.f32 0.2, %v255_v36  ;;  %v256_v38 = vld [vmem:[%s10386_s28 + $0xf8] sm:$0xff]  ;;  %vm343_vm2 = vcmp.ge.f32.partialorder %v255_v36, 0.0  ;;  %v10704_v42 = vld [vmem:[#allocation2 + $0x150] sm:$0xff] }
  0x4a   : > { %8829 = vmatmul.mubr.msk.f32.gmra.mrb[14].mxu0 %vm257_vm0, %v10523_v46  ;;  %v376_v40 = vmul.f32 0.2, %v256_v38  ;;  %vm344_vm3 = vcmp.ge.f32.partialorder %v256_v38, 0.0 }
  0x4b   : > { %8831 = vmatprep.mubr.msk.f32.mxu0 %vm257_vm0, %v10525_v47 }
  0x4e   : > { %8832 = vmatmul.mubr.msk.f32.gmra.mrb[16].mxu0 %vm257_vm0, %v10531_v48 }
  0x4f   : > { %8834 = vmatprep.mubr.msk.f32.mxu0 %vm257_vm0, %v10533_v49 }
  0x52   : > { %8835 = vmatmul.mubr.msk.f32.gmra.mrb[18].mxu0 %vm257_vm0, %v10539_v52 }
  0x53   : > { %8837 = vmatprep.mubr.msk.f32.mxu0 %vm257_vm0, %v10541_v53 }
  0x56   : > { %8838 = vmatmul.mubr.msk.f32.gmra.mrb[20].mxu0 %vm257_vm0, %v10547_v55 }
  0x57   : > { %8840 = vmatprep.mubr.msk.f32.mxu0 %vm257_vm0, %v10549_v56 }
  0x5a   : > { %8841 = vmatmul.mubr.msk.f32.gmra.mrb[22].mxu0 %vm257_vm0, %v10555_v57 }
  0x5b   : > { %8843 = vmatprep.mubr.msk.f32.mxu0 %vm257_vm0, %v10557_v58 }
  0x5e   : > { %8844 = vmatmul.mubr.msk.f32.gmra.mrb[24].mxu0 %vm257_vm0, %v10563_v59 }
  0x5f   : > { %8846 = vmatprep.mubr.msk.f32.mxu0 %vm257_vm0, %v10565_v60 }
  0x62   : > { %8847 = vmatmul.mubr.msk.f32.gmra.mrb[26].mxu0 %vm257_vm0, %v10571_v61 }
  0x63   : > { %8849 = vmatprep.mubr.msk.f32.mxu0 %vm257_vm0, %v10573_v63 }
  0x66   : > { %8850 = vmatmul.mubr.msk.f32.gmra.mrb[28].mxu0 %vm257_vm0, %v10579_v0  ;;  %v10738_v0 = vld [vmem:[#allocation2 + $0x32] sm:$0xff] }
  0x67   : > { %8852 = vmatprep.mubr.msk.f32.mxu0 %vm257_vm0, %v10581_v1  ;;  %v10714_v1 = vld [vmem:[#allocation2 + $0x168] sm:$0xff]  ;;  %12352 = vst [vmem:[#allocation8_spill] sm:$0xff] %v10738_v0 }
  0x6a   : > { %8853 = vmatmul.mubr.msk.f32.gmra.mrb[30].mxu0 %vm257_vm0, %v10587_v2  ;;  %v10712_v2 = vld [vmem:[#allocation2 + $0x158] sm:$0xff] }
  0x6b   : > { %8857 = vmatprep.mubr.msk.f32.mxu0 %vm257_vm0, %v442_v3  ;;  %v407_v3 = vsel %vm343_vm2, %v255_v36, %v375_v37  ;;  %v10720_v36 = vld [vmem:[#allocation2 + $0x170] sm:$0xff]  ;;  %v1151_v37 = vld [vmem:[#allocation2 + $0x2] sm:$0xff] }
  0x6c   : > { %440 = vst.msk [vmem:[#allocation2 + $0x181] sm:$0xff] %vm257_vm0, %v407_v3  ;;  %v10730_v3 = vld [vmem:[%s12231_s1 + $0x20] sm:$0xff] }
  0x6e   : > { %8858 = vmatmul.mubr.msk.f32.vlgmr.msra.gmra.mrb[0].mxu0 %vm257_vm0, %v443_v5  ;;  %v408_v5 = vsel %vm344_vm3, %v256_v38, %v376_v40  ;;  %v1152_v38 = vld [vmem:[#allocation2 + $0xa] sm:$0xff]  ;;  %v10725_v40 = vld [vmem:[#allocation2 + $0x1a] sm:$0xff] }
  0x6f   : > { %8906 = vmatpush3.msra.mxu0 %v10394_v8  ;;  %8860 = vmatprep.mubr.msk.f32.mxu0 %vm257_vm0, %v10592_v6  ;;  %v10620_v8 = vld [vmem:[#allocation2 + $0x50] sm:$0xff]  ;;  %441 = vst.msk [vmem:[#allocation2 + $0x189] sm:$0xff] %vm257_vm0, %v408_v5  ;;  %12350 = vst [vmem:[#allocation6_spill] sm:$0xff] %v10725_v40  ;;  %v10736_v5 = vld [vmem:[#allocation2 + $0x22] sm:$0xff] }
  0x70   : > { %8955 = vmatprep.subr.mxu0 %v10597_v7  ;;  %12351 = vst [vmem:[#allocation7_spill] sm:$0xff] %v10736_v5 }
  0x72   : > { %8861 = vmatmul.mubr.msk.f32.gmra.mrb[2].mxu0 %vm257_vm0, %v10603_v9 }
  0x73   : > { %8863 = vmatprep.mubr.msk.f32.mxu0 %vm257_vm0, %v10605_v10 }
  0x76   : > { %8864 = vmatmul.mubr.msk.f32.gmra.mrb[4].mxu0 %vm257_vm0, %v10612_v11 }
  0x77   : > { %8866 = vmatprep.mubr.msk.f32.mxu0 %vm257_vm0, %v10614_v12 }
  0x7a   : > { %8867 = vmatmul.mubr.msk.f32.gmra.mrb[6].mxu0 %vm257_vm0, %v10620_v8 }
  0x7b   : > { %8869 = vmatprep.mubr.msk.f32.mxu0 %vm257_vm0, %v10622_v13 }
  0x7e   : > { %8870 = vmatmul.mubr.msk.f32.gmra.mrb[8].mxu0 %vm257_vm0, %v10628_v14 }
  0x7f   : > { %8872 = vmatprep.mubr.msk.f32.mxu0 %vm257_vm0, %v10630_v15 }
  0x82   : > { %8873 = vmatmul.mubr.msk.f32.gmra.mrb[10].mxu0 %vm257_vm0, %v10636_v17 }
  0x83   : > { %8875 = vmatprep.mubr.msk.f32.mxu0 %vm257_vm0, %v10638_v18 }
  0x86   : > { %8876 = vmatmul.mubr.msk.f32.gmra.mrb[12].mxu0 %vm257_vm0, %v10644_v20 }
  0x87   : > { %8878 = vmatprep.mubr.msk.f32.mxu0 %vm257_vm0, %v10646_v21 }
  0x8a   : > { %8879 = vmatmul.mubr.msk.f32.gmra.mrb[14].mxu0 %vm257_vm0, %v10652_v22 }
  0x8b   : > { %8881 = vmatprep.mubr.msk.f32.mxu0 %vm257_vm0, %v10654_v23 }
  0x8e   : > { %8882 = vmatmul.mubr.msk.f32.gmra.mrb[16].mxu0 %vm257_vm0, %v10660_v24 }
  0x8f   : > { %8884 = vmatprep.mubr.msk.f32.mxu0 %vm257_vm0, %v10662_v25 }
  0x92   : > { %8885 = vmatmul.mubr.msk.f32.gmra.mrb[18].mxu0 %vm257_vm0, %v10668_v26 }
  0x93   : > { %8887 = vmatprep.mubr.msk.f32.mxu0 %vm257_vm0, %v10670_v27 }
  0x96   : > { %8888 = vmatmul.mubr.msk.f32.gmra.mrb[20].mxu0 %vm257_vm0, %v10676_v28 }
  0x97   : > { %8890 = vmatprep.mubr.msk.f32.mxu0 %vm257_vm0, %v10678_v29 }
  0x9a   : > { %8891 = vmatmul.mubr.msk.f32.gmra.mrb[22].mxu0 %vm257_vm0, %v10684_v30 }
  0x9b   : > { %8893 = vmatprep.mubr.msk.f32.mxu0 %vm257_vm0, %v10686_v32 }
  0x9e   : > { %8894 = vmatmul.mubr.msk.f32.gmra.mrb[24].mxu0 %vm257_vm0, %v10692_v33 }
  0x9f   : > { %8896 = vmatprep.mubr.msk.f32.mxu0 %vm257_vm0, %v10694_v35 }
  0xa2   : > { %8897 = vmatmul.mubr.msk.f32.gmra.mrb[26].mxu0 %vm257_vm0, %v10702_v39 }
  0xa3   : > { %8899 = vmatprep.mubr.msk.f32.mxu0 %vm257_vm0, %v10704_v42 }
  0xa6   : > { %8900 = vmatmul.mubr.msk.f32.gmra.mrb[28].mxu0 %vm257_vm0, %v10712_v2 }
  0xa7   : > { %8902 = vmatprep.mubr.msk.f32.mxu0 %vm257_vm0, %v10714_v1 }
  0xaa   : > { %8903 = vmatmul.mubr.msk.f32.gmra.mrb[30].mxu0 %vm257_vm0, %v10720_v36 }
  0xab   : > { %8907 = vmatprep.mubr.msk.f32.mxu0 %vm257_vm0, %v1151_v37  ;;  %v10745_v37 = vld [vmem:[#allocation2 + $0x3a] sm:$0xff] }
  0xac   : > { %12353 = vst [vmem:[#allocation9_spill] sm:$0xff] %v10745_v37 }
  0xae   : > { %8908 = vmatmul.mubr.msk.f32.vlgmr.msra.gmra.mrb[0].mxu0 %vm257_vm0, %v1152_v38  ;;  %v10747_v38 = vld [vmem:[#allocation2 + $0x4a] sm:$0xff] }
  0xaf   : > { %8956 = vmatpush3.msra.mxu0 %v10597_v7  ;;  %8910 = vmatprep.mubr.msk.f32.mxu0 %vm257_vm0, %v10725_v40  ;;  %12354 = vst [vmem:[#allocation10_spill] sm:$0xff] %v10747_v38  ;;  %v10753_v7 = vld [vmem:[#allocation2 + $0x52] sm:$0xff]  ;;  %v10755_v40 = vld [vmem:[#allocation2 + $0x62] sm:$0xff] }
  0xb0   : > { %9005 = vmatprep.subr.mxu0 %v10730_v3  ;;  %12355 = vst [vmem:[#allocation11_spill] sm:$0xff] %v10753_v7  ;;  %12356 = vst [vmem:[#allocation12_spill] sm:$0xff] %v10755_v40 }
  0xb2   : > { %8911 = vmatmul.mubr.msk.f32.gmra.mrb[2].mxu0 %vm257_vm0, %v10736_v5  ;;  %v10763_v5 = vld [vmem:[#allocation2 + $0x7a] sm:$0xff] }
  0xb3   : > { %8913 = vmatprep.mubr.msk.f32.mxu0 %vm257_vm0, %v10738_v0  ;;  %v10761_v0 = vld [vmem:[#allocation2 + $0x6a] sm:$0xff]  ;;  %12358 = vst [vmem:[#allocation14_spill] sm:$0xff] %v10763_v5 }
  0xb4   : > { %12357 = vst [vmem:[#allocation13_spill] sm:$0xff] %v10761_v0 }
  0xb6   : > { %8914 = vmatmul.mubr.msk.f32.gmra.mrb[4].mxu0 %vm257_vm0, %v10745_v37  ;;  %v10771_v37 = vld [vmem:[#allocation2 + $0x92] sm:$0xff] }
  0xb7   : > { %8916 = vmatprep.mubr.msk.f32.mxu0 %vm257_vm0, %v10747_v38  ;;  %v10769_v38 = vld [vmem:[#allocation2 + $0x82] sm:$0xff]  ;;  %12360 = vst [vmem:[#allocation16_spill] sm:$0xff] %v10771_v37 }
  0xb8   : > { %12359 = vst [vmem:[#allocation15_spill] sm:$0xff] %v10769_v38 }
  0xba   : > { %8917 = vmatmul.mubr.msk.f32.gmra.mrb[6].mxu0 %vm257_vm0, %v10753_v7  ;;  %v10779_v7 = vld [vmem:[#allocation2 + $0xaa] sm:$0xff] }
  0xbb   : > { %8919 = vmatprep.mubr.msk.f32.mxu0 %vm257_vm0, %v10755_v40  ;;  %v10777_v40 = vld [vmem:[#allocation2 + $0x9a] sm:$0xff]  ;;  %12362 = vst [vmem:[#allocation18_spill] sm:$0xff] %v10779_v7 }
  0xbc   : > { %12361 = vst [vmem:[#allocation17_spill] sm:$0xff] %v10777_v40 }
  0xbe   : > { %8920 = vmatmul.mubr.msk.f32.gmra.mrb[8].mxu0 %vm257_vm0, %v10761_v0  ;;  %v10787_v0 = vld [vmem:[#allocation2 + $0xc2] sm:$0xff] }
  0xbf   : > { %8922 = vmatprep.mubr.msk.f32.mxu0 %vm257_vm0, %v10763_v5  ;;  %v10785_v5 = vld [vmem:[#allocation2 + $0xb2] sm:$0xff]  ;;  %12364 = vst [vmem:[#allocation20_spill] sm:$0xff] %v10787_v0 }
  0xc0   : > { %12363 = vst [vmem:[#allocation19_spill] sm:$0xff] %v10785_v5 }
  0xc2   : > { %8923 = vmatmul.mubr.msk.f32.gmra.mrb[10].mxu0 %vm257_vm0, %v10769_v38  ;;  %v10795_v38 = vld [vmem:[#allocation2 + $0xda] sm:$0xff] }
  0xc3   : > { %8925 = vmatprep.mubr.msk.f32.mxu0 %vm257_vm0, %v10771_v37  ;;  %v10793_v37 = vld [vmem:[#allocation2 + $0xca] sm:$0xff]  ;;  %12366 = vst [vmem:[#allocation22_spill] sm:$0xff] %v10795_v38 }
  0xc4   : > { %12365 = vst [vmem:[#allocation21_spill] sm:$0xff] %v10793_v37 }
  0xc6   : > { %8926 = vmatmul.mubr.msk.f32.gmra.mrb[12].mxu0 %vm257_vm0, %v10777_v40  ;;  %v10803_v40 = vld [vmem:[#allocation2 + $0xf2] sm:$0xff] }
  0xc7   : > { %8928 = vmatprep.mubr.msk.f32.mxu0 %vm257_vm0, %v10779_v7  ;;  %v10801_v7 = vld [vmem:[#allocation2 + $0xe2] sm:$0xff]  ;;  %12368 = vst [vmem:[#allocation24_spill] sm:$0xff] %v10803_v40 }
  0xc8   : > { %12367 = vst [vmem:[#allocation23_spill] sm:$0xff] %v10801_v7 }
  0xca   : > { %8929 = vmatmul.mubr.msk.f32.gmra.mrb[14].mxu0 %vm257_vm0, %v10785_v5  ;;  %v10811_v5 = vld [vmem:[#allocation2 + $0x10a] sm:$0xff] }
  0xcb   : > { %8931 = vmatprep.mubr.msk.f32.mxu0 %vm257_vm0, %v10787_v0  ;;  %v10809_v0 = vld [vmem:[#allocation2 + $0xfa] sm:$0xff]  ;;  %12370 = vst [vmem:[#allocation26_spill] sm:$0xff] %v10811_v5 }
  0xcc   : > { %12369 = vst [vmem:[#allocation25_spill] sm:$0xff] %v10809_v0 }
  0xce   : > { %8932 = vmatmul.mubr.msk.f32.gmra.mrb[16].mxu0 %vm257_vm0, %v10793_v37  ;;  %v10819_v37 = vld [vmem:[#allocation2 + $0x122] sm:$0xff] }
  0xcf   : > { %8934 = vmatprep.mubr.msk.f32.mxu0 %vm257_vm0, %v10795_v38  ;;  %v10817_v38 = vld [vmem:[#allocation2 + $0x112] sm:$0xff]  ;;  %12372 = vst [vmem:[#allocation28_spill] sm:$0xff] %v10819_v37 }
  0xd0   : > { %12371 = vst [vmem:[#allocation27_spill] sm:$0xff] %v10817_v38 }
  0xd2   : > { %8935 = vmatmul.mubr.msk.f32.gmra.mrb[18].mxu0 %vm257_vm0, %v10801_v7  ;;  %v10827_v7 = vld [vmem:[#allocation2 + $0x13a] sm:$0xff] }
  0xd3   : > { %8937 = vmatprep.mubr.msk.f32.mxu0 %vm257_vm0, %v10803_v40  ;;  %v10825_v40 = vld [vmem:[#allocation2 + $0x12a] sm:$0xff]  ;;  %12373 = vst [vmem:[#allocation29_spill] sm:$0xff] %v10827_v7 }
  0xd6   : > { %8938 = vmatmul.mubr.msk.f32.gmra.mrb[20].mxu0 %vm257_vm0, %v10809_v0  ;;  %v10835_v0 = vld [vmem:[#allocation2 + $0x152] sm:$0xff] }
  0xd7   : > { %8940 = vmatprep.mubr.msk.f32.mxu0 %vm257_vm0, %v10811_v5  ;;  %v10833_v5 = vld [vmem:[#allocation2 + $0x142] sm:$0xff]  ;;  %12374 = vst [vmem:[#allocation30_spill] sm:$0xff] %v10835_v0 }
  0xda   : > { %8941 = vmatmul.mubr.msk.f32.gmra.mrb[22].mxu0 %vm257_vm0, %v10817_v38  ;;  %v10843_v38 = vld [vmem:[#allocation2 + $0x16a] sm:$0xff] }
  0xdb   : > { %8943 = vmatprep.mubr.msk.f32.mxu0 %vm257_vm0, %v10819_v37  ;;  %v10841_v37 = vld [vmem:[#allocation2 + $0x15a] sm:$0xff]  ;;  %12375 = vst [vmem:[#allocation31_spill] sm:$0xff] %v10843_v38 }
  0xde   : > { %8944 = vmatmul.mubr.msk.f32.gmra.mrb[24].mxu0 %vm257_vm0, %v10825_v40 }
  0xdf   : > { %8946 = vmatprep.mubr.msk.f32.mxu0 %vm257_vm0, %v10827_v7  ;;  %v10849_v7 = vld [vmem:[#allocation2 + $0x172] sm:$0xff] }
  0xe2   : > { %8947 = vmatmul.mubr.msk.f32.gmra.mrb[26].mxu0 %vm257_vm0, %v10833_v5 }
  0xe3   : > { %8949 = vmatprep.mubr.msk.f32.mxu0 %vm257_vm0, %v10835_v0  ;;  %v7777_v0 = vld [vmem:[%s12231_s1 + $0x28] sm:$0xff] }
  0xe6   : > { %8950 = vmatmul.mubr.msk.f32.gmra.mrb[28].mxu0 %vm257_vm0, %v10841_v37 }
  0xe7   : > { %8952 = vmatprep.mubr.msk.f32.mxu0 %vm257_vm0, %v10843_v38 }
  0xea   : > { %8953 = vmatmul.mubr.msk.f32.gmra.mrb[30].mxu0 %vm257_vm0, %v10849_v7 }
  0xeb   : > { %8957 = vmatprep.mubr.msk.f32.mxu0 %vm257_vm0, %v10592_v6  ;;  %v10915_v6 = vld [vmem:[#allocation2 + $0x180] sm:$0xff] }
  0xee   : > { %8958 = vmatmul.mubr.msk.f32.vlgmr.msra.gmra.mrb[0].mxu0 %vm257_vm0, %v10603_v9  ;;  %v10921_v9 = vld [vmem:[#allocation2 + $0x188] sm:$0xff] }
  0xef   : > { %9006 = vmatpush3.msra.mxu0 %v10730_v3  ;;  %8960 = vmatprep.mubr.msk.f32.mxu0 %vm257_vm0, %v10605_v10  ;;  %v7810_v3 = vld [vmem:[%s12231_s1 + $0x30] sm:$0xff] }
  0xf0   : > { %9055 = vmatprep.subr.mxu0 %v7777_v0 }
  0xf2   : > { %8961 = vmatmul.mubr.msk.f32.gmra.mrb[2].mxu0 %vm257_vm0, %v10612_v11 }
  0xf3   : > { %8963 = vmatprep.mubr.msk.f32.mxu0 %vm257_vm0, %v10614_v12 }
  0xf6   : > { %8964 = vmatmul.mubr.msk.f32.gmra.mrb[4].mxu0 %vm257_vm0, %v10620_v8 }
  0xf7   : > { %8966 = vmatprep.mubr.msk.f32.mxu0 %vm257_vm0, %v10622_v13 }
  0xfa   : > { %8967 = vmatmul.mubr.msk.f32.gmra.mrb[6].mxu0 %vm257_vm0, %v10628_v14 }
  0xfb   : > { %8969 = vmatprep.mubr.msk.f32.mxu0 %vm257_vm0, %v10630_v15 }
  0xfe   : > { %8970 = vmatmul.mubr.msk.f32.gmra.mrb[8].mxu0 %vm257_vm0, %v10636_v17 }
  0xff   : > { %8972 = vmatprep.mubr.msk.f32.mxu0 %vm257_vm0, %v10638_v18 }
 0x102   : > { %8973 = vmatmul.mubr.msk.f32.gmra.mrb[10].mxu0 %vm257_vm0, %v10644_v20 }
 0x103   : > { %8975 = vmatprep.mubr.msk.f32.mxu0 %vm257_vm0, %v10646_v21 }
 0x106   : > { %8976 = vmatmul.mubr.msk.f32.gmra.mrb[12].mxu0 %vm257_vm0, %v10652_v22 }
 0x107   : > { %8978 = vmatprep.mubr.msk.f32.mxu0 %vm257_vm0, %v10654_v23 }
 0x10a   : > { %8979 = vmatmul.mubr.msk.f32.gmra.mrb[14].mxu0 %vm257_vm0, %v10660_v24 }
 0x10b   : > { %8981 = vmatprep.mubr.msk.f32.mxu0 %vm257_vm0, %v10662_v25 }
 0x10e   : > { %8982 = vmatmul.mubr.msk.f32.gmra.mrb[16].mxu0 %vm257_vm0, %v10668_v26 }
 0x10f   : > { %8984 = vmatprep.mubr.msk.f32.mxu0 %vm257_vm0, %v10670_v27 }
 0x112   : > { %8985 = vmatmul.mubr.msk.f32.gmra.mrb[18].mxu0 %vm257_vm0, %v10676_v28 }
 0x113   : > { %8987 = vmatprep.mubr.msk.f32.mxu0 %vm257_vm0, %v10678_v29 }
 0x116   : > { %8988 = vmatmul.mubr.msk.f32.gmra.mrb[20].mxu0 %vm257_vm0, %v10684_v30 }
 0x117   : > { %8990 = vmatprep.mubr.msk.f32.mxu0 %vm257_vm0, %v10686_v32 }
 0x11a   : > { %8991 = vmatmul.mubr.msk.f32.gmra.mrb[22].mxu0 %vm257_vm0, %v10692_v33 }
 0x11b   : > { %8993 = vmatprep.mubr.msk.f32.mxu0 %vm257_vm0, %v10694_v35 }
 0x11e   : > { %8994 = vmatmul.mubr.msk.f32.gmra.mrb[24].mxu0 %vm257_vm0, %v10702_v39 }
 0x11f   : > { %8996 = vmatprep.mubr.msk.f32.mxu0 %vm257_vm0, %v10704_v42 }
 0x122   : > { %8997 = vmatmul.mubr.msk.f32.gmra.mrb[26].mxu0 %vm257_vm0, %v10712_v2 }
 0x123   : > { %8999 = vmatprep.mubr.msk.f32.mxu0 %vm257_vm0, %v10714_v1 }
 0x126   : > { %9000 = vmatmul.mubr.msk.f32.gmra.mrb[28].mxu0 %vm257_vm0, %v10720_v36 }
 0x127   : > { %9002 = vmatprep.mubr.msk.f32.mxu0 %vm257_vm0, %v10915_v6 }
 0x12a   : > { %9003 = vmatmul.mubr.msk.f32.gmra.mrb[30].mxu0 %vm257_vm0, %v10921_v9 }
 0x12b   : > { %9007 = vmatprep.mubr.msk.f32.mxu0 %vm257_vm0, %v10431_v50  ;;  %v12376_v50 = vld [vmem:[#allocation3_spill] sm:$0xff] }
 0x12e   : > { %9008 = vmatmul.mubr.msk.f32.vlgmr.msra.gmra.mrb[0].mxu0 %vm257_vm0, %v10433_v51  ;;  %v12377_v51 = vld [vmem:[#allocation4_spill] sm:$0xff] }
 0x12f   : > { %9056 = vmatpush3.msra.mxu0 %v7777_v0  ;;  %9010 = vmatprep.mubr.msk.f32.mxu0 %vm257_vm0, %v10440_v54  ;;  %v10986_v54 = vld [vmem:[#allocation2 + $0x181] sm:$0xff] }
 0x130   : > { %9105 = vmatprep.subr.mxu0 %v7810_v3  ;;  %v12394_v0 = vld [vmem:[#allocation21_spill] sm:$0xff] }
 0x132   : > { %9011 = vmatmul.mubr.msk.f32.gmra.mrb[2].mxu0 %vm257_vm0, %v10451_v62  ;;  %v12378_v62 = vld [vmem:[#allocation5_spill] sm:$0xff] }
 0x133   : > { %9013 = vmatprep.mubr.msk.f32.mxu0 %vm257_vm0, %v10458_v4  ;;  %v10992_v4 = vld [vmem:[#allocation2 + $0x189] sm:$0xff] }
 0x136   : > { %9014 = vmatmul.mubr.msk.f32.gmra.mrb[4].mxu0 %vm257_vm0, %v10473_v16  ;;  %v12379_v16 = vld [vmem:[#allocation6_spill] sm:$0xff] }
 0x137   : > { %9016 = vmatprep.mubr.msk.f32.mxu0 %vm257_vm0, %v10476_v19  ;;  %v7843_v19 = vld [vmem:[%s12231_s1 + $0x38] sm:$0xff] }
 0x13a   : > { %9017 = vmatmul.mubr.msk.f32.gmra.mrb[6].mxu0 %vm257_vm0, %v10491_v31  ;;  %v12380_v31 = vld [vmem:[#allocation7_spill] sm:$0xff] }
 0x13b   : > { %9019 = vmatprep.mubr.msk.f32.mxu0 %vm257_vm0, %v10495_v34  ;;  %v12381_v34 = vld [vmem:[#allocation8_spill] sm:$0xff] }
 0x13e   : > { %9020 = vmatmul.mubr.msk.f32.gmra.mrb[8].mxu0 %vm257_vm0, %v10505_v41  ;;  %v12382_v41 = vld [vmem:[#allocation9_spill] sm:$0xff] }
 0x13f   : > { %9022 = vmatprep.mubr.msk.f32.mxu0 %vm257_vm0, %v10508_v43  ;;  %v12383_v43 = vld [vmem:[#allocation10_spill] sm:$0xff] }
 0x142   : > { %9023 = vmatmul.mubr.msk.f32.gmra.mrb[10].mxu0 %vm257_vm0, %v10515_v44  ;;  %v12384_v44 = vld [vmem:[#allocation11_spill] sm:$0xff] }
 0x143   : > { %9025 = vmatprep.mubr.msk.f32.mxu0 %vm257_vm0, %v10517_v45  ;;  %v12385_v45 = vld [vmem:[#allocation12_spill] sm:$0xff] }
 0x146   : > { %9026 = vmatmul.mubr.msk.f32.gmra.mrb[12].mxu0 %vm257_vm0, %v10523_v46  ;;  %v12386_v46 = vld [vmem:[#allocation13_spill] sm:$0xff] }
 0x147   : > { %9028 = vmatprep.mubr.msk.f32.mxu0 %vm257_vm0, %v10525_v47  ;;  %v12387_v47 = vld [vmem:[#allocation14_spill] sm:$0xff] }
 0x14a   : > { %9029 = vmatmul.mubr.msk.f32.gmra.mrb[14].mxu0 %vm257_vm0, %v10531_v48  ;;  %v12388_v48 = vld [vmem:[#allocation15_spill] sm:$0xff] }
 0x14b   : > { %9031 = vmatprep.mubr.msk.f32.mxu0 %vm257_vm0, %v10533_v49  ;;  %v12389_v49 = vld [vmem:[#allocation16_spill] sm:$0xff] }
 0x14e   : > { %9032 = vmatmul.mubr.msk.f32.gmra.mrb[16].mxu0 %vm257_vm0, %v10539_v52  ;;  %v12390_v52 = vld [vmem:[#allocation17_spill] sm:$0xff] }
 0x14f   : > { %9034 = vmatprep.mubr.msk.f32.mxu0 %vm257_vm0, %v10541_v53  ;;  %v12391_v53 = vld [vmem:[#allocation18_spill] sm:$0xff] }
 0x152   : > { %9035 = vmatmul.mubr.msk.f32.gmra.mrb[18].mxu0 %vm257_vm0, %v10547_v55  ;;  %v12392_v55 = vld [vmem:[#allocation19_spill] sm:$0xff] }
 0x153   : > { %9037 = vmatprep.mubr.msk.f32.mxu0 %vm257_vm0, %v10549_v56  ;;  %v12393_v56 = vld [vmem:[#allocation20_spill] sm:$0xff] }
 0x156   : > { %9038 = vmatmul.mubr.msk.f32.gmra.mrb[20].mxu0 %vm257_vm0, %v10555_v57 }
 0x157   : > { %9040 = vmatprep.mubr.msk.f32.mxu0 %vm257_vm0, %v10557_v58 }
 0x15a   : > { %9041 = vmatmul.mubr.msk.f32.gmra.mrb[22].mxu0 %vm257_vm0, %v10563_v59 }
 0x15b   : > { %9043 = vmatprep.mubr.msk.f32.mxu0 %vm257_vm0, %v10565_v60 }
 0x15e   : > { %9044 = vmatmul.mubr.msk.f32.gmra.mrb[24].mxu0 %vm257_vm0, %v10571_v61 }
 0x15f   : > { %9046 = vmatprep.mubr.msk.f32.mxu0 %vm257_vm0, %v10573_v63 }
 0x162   : > { %9047 = vmatmul.mubr.msk.f32.gmra.mrb[26].mxu0 %vm257_vm0, %v12376_v50 }
 0x163   : > { %9049 = vmatprep.mubr.msk.f32.mxu0 %vm257_vm0, %v12377_v51 }
 0x166   : > { %9050 = vmatmul.mubr.msk.f32.gmra.mrb[28].mxu0 %vm257_vm0, %v12378_v62 }
 0x167   : > { %9052 = vmatprep.mubr.msk.f32.mxu0 %vm257_vm0, %v10986_v54 }
 0x16a   : > { %9053 = vmatmul.mubr.msk.f32.gmra.mrb[30].mxu0 %vm257_vm0, %v10992_v4 }
 0x16b   : > { %9057 = vmatprep.mubr.msk.f32.mxu0 %vm257_vm0, %v12379_v16  ;;  %v12396_v16 = vld [vmem:[#allocation23_spill] sm:$0xff] }
 0x16e   : > { %9058 = vmatmul.mubr.msk.f32.vlgmr.msra.gmra.mrb[0].mxu0 %vm257_vm0, %v12380_v31  ;;  %v12397_v31 = vld [vmem:[#allocation24_spill] sm:$0xff] }
 0x16f   : > { %9106 = vmatpush3.msra.mxu0 %v7810_v3  ;;  %9060 = vmatprep.mubr.msk.f32.mxu0 %vm257_vm0, %v12381_v34  ;;  %v12395_v3 = vld [vmem:[#allocation22_spill] sm:$0xff] }
 0x170   : > { %9155 = vmatprep.subr.mxu0 %v7843_v19 }
 0x172   : > { %9061 = vmatmul.mubr.msk.f32.gmra.mrb[2].mxu0 %vm257_vm0, %v12382_v41 }
 0x173   : > { %9063 = vmatprep.mubr.msk.f32.mxu0 %vm257_vm0, %v12383_v43 }
 0x176   : > { %9064 = vmatmul.mubr.msk.f32.gmra.mrb[4].mxu0 %vm257_vm0, %v12384_v44 }
 0x177   : > { %9066 = vmatprep.mubr.msk.f32.mxu0 %vm257_vm0, %v12385_v45 }
 0x17a   : > { %9067 = vmatmul.mubr.msk.f32.gmra.mrb[6].mxu0 %vm257_vm0, %v12386_v46 }
 0x17b   : > { %9069 = vmatprep.mubr.msk.f32.mxu0 %vm257_vm0, %v12387_v47 }
 0x17e   : > { %9070 = vmatmul.mubr.msk.f32.gmra.mrb[8].mxu0 %vm257_vm0, %v12388_v48 }
 0x17f   : > { %9072 = vmatprep.mubr.msk.f32.mxu0 %vm257_vm0, %v12389_v49 }
 0x182   : > { %9073 = vmatmul.mubr.msk.f32.gmra.mrb[10].mxu0 %vm257_vm0, %v12390_v52  ;;  %v12398_v52 = vld [vmem:[#allocation25_spill] sm:$0xff] }
 0x183   : > { %9075 = vmatprep.mubr.msk.f32.mxu0 %vm257_vm0, %v12391_v53  ;;  %v12399_v53 = vld [vmem:[#allocation26_spill] sm:$0xff] }
 0x186   : > { %9076 = vmatmul.mubr.msk.f32.gmra.mrb[12].mxu0 %vm257_vm0, %v12392_v55  ;;  %v12400_v55 = vld [vmem:[#allocation27_spill] sm:$0xff] }
 0x187   : > { %9078 = vmatprep.mubr.msk.f32.mxu0 %vm257_vm0, %v12393_v56  ;;  %v12401_v56 = vld [vmem:[#allocation28_spill] sm:$0xff] }
 0x18a   : > { %9079 = vmatmul.mubr.msk.f32.gmra.mrb[14].mxu0 %vm257_vm0, %v12394_v0 }
 0x18b   : > { %9081 = vmatprep.mubr.msk.f32.mxu0 %vm257_vm0, %v12395_v3  ;;  %v12402_v3 = vld [vmem:[#allocation29_spill] sm:$0xff] }
 0x18e   : > { %9082 = vmatmul.mubr.msk.f32.gmra.mrb[16].mxu0 %vm257_vm0, %v12396_v16 }
 0x18f   : > { %9084 = vmatprep.mubr.msk.f32.mxu0 %vm257_vm0, %v12397_v31  ;;  %v12403_v31 = vld [vmem:[#allocation30_spill] sm:$0xff] }
 0x192   : > { %9085 = vmatmul.mubr.msk.f32.gmra.mrb[18].mxu0 %vm257_vm0, %v12398_v52 }
 0x193   : > { %9087 = vmatprep.mubr.msk.f32.mxu0 %vm257_vm0, %v12399_v53 }
 0x196   : > { %9088 = vmatmul.mubr.msk.f32.gmra.mrb[20].mxu0 %vm257_vm0, %v12400_v55  ;;  %v11057_v55 = vld [vmem:[#allocation2 + $0x182] sm:$0xff] }
 0x197   : > { %9090 = vmatprep.mubr.msk.f32.mxu0 %vm257_vm0, %v12401_v56 }
 0x19a   : > { %9091 = vmatmul.mubr.msk.f32.gmra.mrb[22].mxu0 %vm257_vm0, %v10825_v40 }
 0x19b   : > { %9093 = vmatprep.mubr.msk.f32.mxu0 %vm257_vm0, %v12402_v3  ;;  %v11063_v3 = vld [vmem:[#allocation2 + $0x18a] sm:$0xff] }
 0x19e   : > { %9094 = vmatmul.mubr.msk.f32.gmra.mrb[24].mxu0 %vm257_vm0, %v10833_v5 }
 0x19f   : > { %9096 = vmatprep.mubr.msk.f32.mxu0 %vm257_vm0, %v12403_v31 }
 0x1a2   : > { %9097 = vmatmul.mubr.msk.f32.gmra.mrb[26].mxu0 %vm257_vm0, %v10841_v37 }
 0x1a3   : > { %9099 = vmatprep.mubr.msk.f32.mxu0 %vm257_vm0, %v10843_v38  ;;  %v7876_v38 = vld [vmem:[%s12231_s1 + $0x40] sm:$0xff] }
 0x1a6   : > { %9100 = vmatmul.mubr.msk.f32.gmra.mrb[28].mxu0 %vm257_vm0, %v10849_v7 }
 0x1a7   : > { %9102 = vmatprep.mubr.msk.f32.mxu0 %vm257_vm0, %v11057_v55 }
 0x1aa   : > { %9103 = vmatmul.mubr.msk.f32.gmra.mrb[30].mxu0 %vm257_vm0, %v11063_v3 }
 0x1ab   : > { %9107 = vmatprep.mubr.msk.f32.mxu0 %vm257_vm0, %v10605_v10  ;;  %v2730_v10 = vld [vmem:[#allocation2 + $0x198] sm:$0xff] }
 0x1ae   : > { %9108 = vmatmul.mubr.msk.f32.vlgmr.msra.gmra.mrb[0].mxu0 %vm257_vm0, %v10612_v11  ;;  %v2731_v11 = vld [vmem:[#allocation2 + $0x1a0] sm:$0xff] }
 0x1af   : > { %9156 = vmatpush3.msra.mxu0 %v7843_v19  ;;  %9110 = vmatprep.mubr.msk.f32.mxu0 %vm257_vm0, %v10614_v12  ;;  %v3087_v12 = vld [vmem:[#allocation2 + $0x31] sm:$0xff] }
 0x1b0   : > { %9205 = vmatprep.subr.mxu0 %v7876_v38 }
 0x1b2   : > { %9111 = vmatmul.mubr.msk.f32.gmra.mrb[2].mxu0 %vm257_vm0, %v10620_v8  ;;  %v3090_v8 = vld [vmem:[#allocation2 + $0x51] sm:$0xff] }
 0x1b3   : > { %9113 = vmatprep.mubr.msk.f32.mxu0 %vm257_vm0, %v10622_v13  ;;  %v3091_v13 = vld [vmem:[#allocation2 + $0x61] sm:$0xff] }
 0x1b6   : > { %9114 = vmatmul.mubr.msk.f32.gmra.mrb[4].mxu0 %vm257_vm0, %v10628_v14  ;;  %v3092_v14 = vld [vmem:[#allocation2 + $0x69] sm:$0xff] }
 0x1b7   : > { %9116 = vmatprep.mubr.msk.f32.mxu0 %vm257_vm0, %v10630_v15  ;;  %v3093_v15 = vld [vmem:[#allocation2 + $0x79] sm:$0xff] }
 0x1ba   : > { %9117 = vmatmul.mubr.msk.f32.gmra.mrb[6].mxu0 %vm257_vm0, %v10636_v17  ;;  %v3094_v17 = vld [vmem:[#allocation2 + $0x81] sm:$0xff] }
 0x1bb   : > { %9119 = vmatprep.mubr.msk.f32.mxu0 %vm257_vm0, %v10638_v18  ;;  %v3095_v18 = vld [vmem:[#allocation2 + $0x91] sm:$0xff] }
 0x1be   : > { %9120 = vmatmul.mubr.msk.f32.gmra.mrb[8].mxu0 %vm257_vm0, %v10644_v20  ;;  %v3096_v20 = vld [vmem:[#allocation2 + $0x99] sm:$0xff] }
 0x1bf   : > { %9122 = vmatprep.mubr.msk.f32.mxu0 %vm257_vm0, %v10646_v21  ;;  %v3097_v21 = vld [vmem:[#allocation2 + $0xa9] sm:$0xff] }
 0x1c2   : > { %9123 = vmatmul.mubr.msk.f32.gmra.mrb[10].mxu0 %vm257_vm0, %v10652_v22  ;;  %v3098_v22 = vld [vmem:[#allocation2 + $0xb1] sm:$0xff] }
 0x1c3   : > { %9125 = vmatprep.mubr.msk.f32.mxu0 %vm257_vm0, %v10654_v23  ;;  %v3099_v23 = vld [vmem:[#allocation2 + $0xc1] sm:$0xff] }
 0x1c6   : > { %9126 = vmatmul.mubr.msk.f32.gmra.mrb[12].mxu0 %vm257_vm0, %v10660_v24  ;;  %v3100_v24 = vld [vmem:[#allocation2 + $0xc9] sm:$0xff] }
 0x1c7   : > { %9128 = vmatprep.mubr.msk.f32.mxu0 %vm257_vm0, %v10662_v25  ;;  %v3101_v25 = vld [vmem:[#allocation2 + $0xd9] sm:$0xff] }
 0x1ca   : > { %9129 = vmatmul.mubr.msk.f32.gmra.mrb[14].mxu0 %vm257_vm0, %v10668_v26  ;;  %v3102_v26 = vld [vmem:[#allocation2 + $0xe1] sm:$0xff] }
 0x1cb   : > { %9131 = vmatprep.mubr.msk.f32.mxu0 %vm257_vm0, %v10670_v27  ;;  %v3103_v27 = vld [vmem:[#allocation2 + $0xf1] sm:$0xff] }
 0x1ce   : > { %9132 = vmatmul.mubr.msk.f32.gmra.mrb[16].mxu0 %vm257_vm0, %v10676_v28  ;;  %v3104_v28 = vld [vmem:[#allocation2 + $0xf9] sm:$0xff] }
 0x1cf   : > { %9134 = vmatprep.mubr.msk.f32.mxu0 %vm257_vm0, %v10678_v29  ;;  %v3105_v29 = vld [vmem:[#allocation2 + $0x109] sm:$0xff] }
 0x1d2   : > { %9135 = vmatmul.mubr.msk.f32.gmra.mrb[18].mxu0 %vm257_vm0, %v10684_v30  ;;  %v12408_v30 = vld [vmem:[#allocation22_spill] sm:$0xff] }
 0x1d3   : > { %9137 = vmatprep.mubr.msk.f32.mxu0 %vm257_vm0, %v10686_v32  ;;  %v12409_v32 = vld [vmem:[#allocation24_spill] sm:$0xff] }
 0x1d6   : > { %9138 = vmatmul.mubr.msk.f32.gmra.mrb[20].mxu0 %vm257_vm0, %v10692_v33  ;;  %v12410_v33 = vld [vmem:[#allocation27_spill] sm:$0xff] }
 0x1d7   : > { %9140 = vmatprep.mubr.msk.f32.mxu0 %vm257_vm0, %v10694_v35  ;;  %v12411_v35 = vld [vmem:[#allocation29_spill] sm:$0xff] }
 0x1da   : > { %9141 = vmatmul.mubr.msk.f32.gmra.mrb[22].mxu0 %vm257_vm0, %v10702_v39  ;;  %v12412_v39 = vld [vmem:[#allocation31_spill] sm:$0xff] }
 0x1db   : > { %9143 = vmatprep.mubr.msk.f32.mxu0 %vm257_vm0, %v10704_v42  ;;  %v3504_v42 = vld [vmem:[#allocation2 + $0x19a] sm:$0xff] }
 0x1de   : > { %9144 = vmatmul.mubr.msk.f32.gmra.mrb[24].mxu0 %vm257_vm0, %v10712_v2  ;;  %v3088_v2 = vld [vmem:[#allocation2 + $0x39] sm:$0xff] }
 0x1df   : > { %9146 = vmatprep.mubr.msk.f32.mxu0 %vm257_vm0, %v10714_v1  ;;  %v3089_v1 = vld [vmem:[#allocation2 + $0x49] sm:$0xff] }
 0x1e2   : > { %9147 = vmatmul.mubr.msk.f32.gmra.mrb[26].mxu0 %vm257_vm0, %v10720_v36  ;;  %v3505_v36 = vld [vmem:[#allocation2 + $0x1a2] sm:$0xff] }
 0x1e3   : > { %9149 = vmatprep.mubr.msk.f32.mxu0 %vm257_vm0, %v10915_v6  ;;  %v11254_v6 = vld [vmem:[%s12232_s2] ss:$0 sm:$0xff] }
 0x1e6   : > { %9150 = vmatmul.mubr.msk.f32.gmra.mrb[28].mxu0 %vm257_vm0, %v10921_v9 }
 0x1e7   : > { %9152 = vmatprep.mubr.msk.f32.mxu0 %vm257_vm0, %v2730_v10 }
 0x1ea   : > { %9153 = vmatmul.mubr.msk.f32.gmra.mrb[30].mxu0 %vm257_vm0, %v2731_v11 }
 0x1eb   : > { %9157 = vmatprep.mubr.msk.f32.mxu0 %vm257_vm0, %v3087_v12 }
 0x1ee   : > { %9158 = vmatmul.mubr.msk.f32.vlgmr.msra.gmra.mrb[0].mxu0 %vm257_vm0, %v3088_v2 }
 0x1ef   : > { %9206 = vmatpush3.msra.mxu0 %v7876_v38  ;;  %9160 = vmatprep.mubr.msk.f32.mxu0 %vm257_vm0, %v3089_v1  ;;  %v4060_v38 = vld [vmem:[%s12233_s3] sm:$0xff] }
 0x1f2   : > { %9161 = vmatmul.mubr.msk.f32.gmra.mrb[2].mxu0 %vm257_vm0, %v3090_v8 }
 0x1f3   : > { %9163 = vmatprep.mubr.msk.f32.mxu0 %vm257_vm0, %v3091_v13 }
 0x1f6   : > { %9164 = vmatmul.mubr.msk.f32.gmra.mrb[4].mxu0 %vm257_vm0, %v3092_v14 }
 0x1f7   : > { %9166 = vmatprep.mubr.msk.f32.mxu0 %vm257_vm0, %v3093_v15 }
 0x1fa   : > { %9167 = vmatmul.mubr.msk.f32.gmra.mrb[6].mxu0 %vm257_vm0, %v3094_v17 }
 0x1fb   : > { %9169 = vmatprep.mubr.msk.f32.mxu0 %vm257_vm0, %v3095_v18 }
 0x1fe   : > { %9170 = vmatmul.mubr.msk.f32.gmra.mrb[8].mxu0 %vm257_vm0, %v3096_v20 }
 0x1ff   : > { %9172 = vmatprep.mubr.msk.f32.mxu0 %vm257_vm0, %v3097_v21 }
 0x202   : > { %9173 = vmatmul.mubr.msk.f32.gmra.mrb[10].mxu0 %vm257_vm0, %v3098_v22 }
 0x203   : > { %9175 = vmatprep.mubr.msk.f32.mxu0 %vm257_vm0, %v3099_v23 }
 0x206   : > { %9176 = vmatmul.mubr.msk.f32.gmra.mrb[12].mxu0 %vm257_vm0, %v3100_v24 }
 0x207   : > { %9178 = vmatprep.mubr.msk.f32.mxu0 %vm257_vm0, %v3101_v25 }
 0x20a   : > { %9179 = vmatmul.mubr.msk.f32.gmra.mrb[14].mxu0 %vm257_vm0, %v3102_v26 }
 0x20b   : > { %9181 = vmatprep.mubr.msk.f32.mxu0 %vm257_vm0, %v3103_v27 }
 0x20e   : > { %9182 = vmatmul.mubr.msk.f32.gmra.mrb[16].mxu0 %vm257_vm0, %v3104_v28 }
 0x20f   : > { %9184 = vmatprep.mubr.msk.f32.mxu0 %vm257_vm0, %v3105_v29 }
 0x212   : > { %9185 = vmatmul.mubr.msk.f32.gmra.mrb[18].mxu0 %vm257_vm0, %v10555_v57  ;;  %v3117_v57 = vld [vmem:[#allocation2 + $0x199] sm:$0xff] }
 0x213   : > { %9187 = vmatprep.mubr.msk.f32.mxu0 %vm257_vm0, %v10557_v58  ;;  %v3118_v58 = vld [vmem:[#allocation2 + $0x1a1] sm:$0xff] }
 0x216   : > { %9188 = vmatmul.mubr.msk.f32.gmra.mrb[20].mxu0 %vm257_vm0, %v10563_v59  ;;  %v12404_v59 = vld [vmem:[#allocation17_spill] sm:$0xff] }
 0x217   : > { %9190 = vmatprep.mubr.msk.f32.mxu0 %vm257_vm0, %v10565_v60  ;;  %v12405_v60 = vld [vmem:[#allocation18_spill] sm:$0xff] }
 0x21a   : > { %9191 = vmatmul.mubr.msk.f32.gmra.mrb[22].mxu0 %vm257_vm0, %v10571_v61  ;;  %v12406_v61 = vld [vmem:[#allocation19_spill] sm:$0xff] }
 0x21b   : > { %9193 = vmatprep.mubr.msk.f32.mxu0 %vm257_vm0, %v10573_v63  ;;  %v12407_v63 = vld [vmem:[#allocation20_spill] sm:$0xff] }
 0x21e   : > { %9194 = vmatmul.mubr.msk.f32.gmra.mrb[24].mxu0 %vm257_vm0, %v12376_v50 }
 0x21f   : > { %9196 = vmatprep.mubr.msk.f32.mxu0 %vm257_vm0, %v12377_v51 }
 0x222   : > { %9197 = vmatmul.mubr.msk.f32.gmra.mrb[26].mxu0 %vm257_vm0, %v12378_v62 }
 0x223   : > { %9199 = vmatprep.mubr.msk.f32.mxu0 %vm257_vm0, %v10986_v54 }
 0x226   : > { %9200 = vmatmul.mubr.msk.f32.gmra.mrb[28].mxu0 %vm257_vm0, %v10992_v4 }
 0x227   : > { %9202 = vmatprep.mubr.msk.f32.mxu0 %vm257_vm0, %v3117_v57 }
 0x22a   : > { %9203 = vmatmul.mubr.msk.f32.gmra.mrb[30].mxu0 %vm257_vm0, %v3118_v58 }
 0x22b   : > { %9207 = vmatprep.mubr.msk.f32.mxu0 %vm257_vm0, %v12381_v34 }
 0x22e   : > { %9208 = vmatmul.mubr.msk.f32.vlgmr.msra.gmra.mrb[0].mxu0 %vm257_vm0, %v12382_v41 }
 0x22f   : > { %9210 = vmatprep.mubr.msk.f32.mxu0 %vm257_vm0, %v12383_v43 }
 0x232   : > { %9211 = vmatmul.mubr.msk.f32.gmra.mrb[2].mxu0 %vm257_vm0, %v12384_v44 }
 0x233   : > { %9213 = vmatprep.mubr.msk.f32.mxu0 %vm257_vm0, %v12385_v45 }
 0x236   : > { %9214 = vmatmul.mubr.msk.f32.gmra.mrb[4].mxu0 %vm257_vm0, %v12386_v46 }
 0x237   : > { %9216 = vmatprep.mubr.msk.f32.mxu0 %vm257_vm0, %v12387_v47 }
 0x23a   : > { %9217 = vmatmul.mubr.msk.f32.gmra.mrb[6].mxu0 %vm257_vm0, %v12388_v48 }
 0x23b   : > { %9219 = vmatprep.mubr.msk.f32.mxu0 %vm257_vm0, %v12389_v49 }
 0x23e   : > { %9220 = vmatmul.mubr.msk.f32.gmra.mrb[8].mxu0 %vm257_vm0, %v12404_v59 }
 0x23f   : > { %9222 = vmatprep.mubr.msk.f32.mxu0 %vm257_vm0, %v12405_v60 }
 0x242   : > { %9223 = vmatmul.mubr.msk.f32.gmra.mrb[10].mxu0 %vm257_vm0, %v12406_v61 }
 0x243   : > { %9225 = vmatprep.mubr.msk.f32.mxu0 %vm257_vm0, %v12407_v63 }
 0x246   : > { %9226 = vmatmul.mubr.msk.f32.gmra.mrb[12].mxu0 %vm257_vm0, %v12394_v0 }
 0x247   : > { %9228 = vmatprep.mubr.msk.f32.mxu0 %vm257_vm0, %v12408_v30 }
 0x24a   : > { %9229 = vmatmul.mubr.msk.f32.gmra.mrb[14].mxu0 %vm257_vm0, %v12396_v16 }
 0x24b   : > { %9231 = vmatprep.mubr.msk.f32.mxu0 %vm257_vm0, %v12409_v32 }
 0x24e   : > { %9232 = vmatmul.mubr.msk.f32.gmra.mrb[16].mxu0 %vm257_vm0, %v12398_v52 }
 0x24f   : > { %9234 = vmatprep.mubr.msk.f32.mxu0 %vm257_vm0, %v12399_v53 }
 0x252   : > { %9235 = vmatmul.mubr.msk.f32.gmra.mrb[18].mxu0 %vm257_vm0, %v12410_v33 }
 0x253   : > { %9237 = vmatprep.mubr.msk.f32.mxu0 %vm257_vm0, %v12401_v56 }
 0x256   : > { %9238 = vmatmul.mubr.msk.f32.gmra.mrb[20].mxu0 %vm257_vm0, %v10825_v40  ;;  %v7910_v40 = vld [vmem:[%s12233_s3 + $0x8] sm:$0xff] }
 0x257   : > { %9240 = vmatprep.mubr.msk.f32.mxu0 %vm257_vm0, %v12411_v35  ;;  %9255 = vmatprep.subr.mxu1 %v7910_v40 }
 0x258   : > { %9256 = vmatpush3.msra.mxu1 %v7910_v40 }
 0x259   : > { %9305 = vmatprep.subr.mxu1 %v4060_v38 }
 0x25a   : > { %9241 = vmatmul.mubr.msk.f32.gmra.mrb[22].mxu0 %vm257_vm0, %v10833_v5  ;;  %v4061_v5 = vld [vmem:[#allocation2 + $0x1] sm:$0xff] }
 0x25b   : > { %9243 = vmatprep.mubr.msk.f32.mxu0 %vm257_vm0, %v12403_v31  ;;  %9257 = vmatprep.mubr.msk.f32.mxu1 %vm257_vm0, %v4061_v5 }
 0x25e   : > { %9244 = vmatmul.mubr.msk.f32.gmra.mrb[24].mxu0 %vm257_vm0, %v10841_v37  ;;  %v4062_v37 = vld [vmem:[#allocation2 + $0x9] sm:$0xff] }
 0x25f   : > { %9246 = vmatprep.mubr.msk.f32.mxu0 %vm257_vm0, %v12412_v39  ;;  %9258 = vmatmul.mubr.msk.f32.vlgmr.msra.gmra.mrb[0].mxu1 %vm257_vm0, %v4062_v37 }
 0x260   : > { %9306 = vmatpush3.msra.mxu1 %v4060_v38 }
 0x262   : > { %9247 = vmatmul.mubr.msk.f32.gmra.mrb[26].mxu0 %vm257_vm0, %v10849_v7  ;;  %v11248_v7 = vld [vmem:[%s12233_s3 + $0x10] sm:$0xff] }
 0x263   : > { %9249 = vmatprep.mubr.msk.f32.mxu0 %vm257_vm0, %v11057_v55  ;;  %9355 = vmatprep.subr.mxu1 %v11248_v7 }
 0x266   : > { %9250 = vmatmul.mubr.msk.f32.gmra.mrb[28].mxu0 %vm257_vm0, %v11063_v3 }
 0x267   : > { %9252 = vmatprep.mubr.msk.f32.mxu0 %vm257_vm0, %v3504_v42 }
 0x26a   : > { %9253 = vmatmul.mubr.msk.f32.gmra.mrb[30].mxu0 %vm257_vm0, %v3505_v36 }
 0x301   : > { %v9209_v9 = vpop.f32.mrb[0].mxu0 }
 0x302   : > { %v3869_v50 = vadd.f32 %v9209_v9, %v11254_v6  ;;  %v3670_v51 = vpop.f32.mrb[1].mxu0 }
 0x303   : > { %v3868_v54 = vadd.f32 %v11254_v6, %v3670_v51 }
 0x304   : > { %vm3901_vm4 = vcmp.ge.f32.partialorder %v3869_v50, 0.0  ;;  %v3933_v62 = vmul.f32 0.2, %v3869_v50 }
 0x305   : > { %vm3900_vm5 = vcmp.ge.f32.partialorder %v3868_v54, 0.0  ;;  %v3932_v4 = vmul.f32 0.2, %v3868_v54  ;;  %v9212_v19 = vpop.f32.mrb[2].mxu0 }
 0x306   : > { %v3965_v34 = vsel %vm3901_vm4, %v3869_v50, %v3933_v62  ;;  %v3871_v41 = vadd.f32 %v9212_v19, %v11254_v6  ;;  %v3680_v43 = vpop.f32.mrb[3].mxu0 }
 0x307   : > { %3997 = vst.msk [vmem:[#allocation2 + $0x21] sm:$0xff] %vm257_vm0, %v3965_v34  ;;  %v3964_v44 = vsel %vm3900_vm5, %v3868_v54, %v3932_v4  ;;  %v3870_v45 = vadd.f32 %v11254_v6, %v3680_v43 }
 0x308   : > { %3996 = vst.msk [vmem:[#allocation2 + $0x19] sm:$0xff] %vm257_vm0, %v3964_v44  ;;  %vm3903_vm6 = vcmp.ge.f32.partialorder %v3871_v41, 0.0  ;;  %v3935_v46 = vmul.f32 0.2, %v3871_v41 }
 0x309   : > { %vm3902_vm7 = vcmp.ge.f32.partialorder %v3870_v45, 0.0  ;;  %v3934_v47 = vmul.f32 0.2, %v3870_v45  ;;  %v9215_v48 = vpop.f32.mrb[4].mxu0 }
 0x30a   : > { %v3967_v49 = vsel %vm3903_vm6, %v3871_v41, %v3935_v46  ;;  %v3873_v52 = vadd.f32 %v9215_v48, %v11254_v6  ;;  %v3690_v53 = vpop.f32.mrb[5].mxu0 }
 0x30b   : > { %3999 = vst.msk [vmem:[#allocation2 + $0x39] sm:$0xff] %vm257_vm0, %v3967_v49  ;;  %v3966_v55 = vsel %vm3902_vm7, %v3870_v45, %v3934_v47  ;;  %v3872_v56 = vadd.f32 %v11254_v6, %v3690_v53 }
 0x30c   : > { %3998 = vst.msk [vmem:[#allocation2 + $0x31] sm:$0xff] %vm257_vm0, %v3966_v55  ;;  %vm3905_vm8 = vcmp.ge.f32.partialorder %v3873_v52, 0.0  ;;  %v3937_v0 = vmul.f32 0.2, %v3873_v52 }
 0x30d   : > { %vm3904_vm9 = vcmp.ge.f32.partialorder %v3872_v56, 0.0  ;;  %v3936_v3 = vmul.f32 0.2, %v3872_v56  ;;  %v9218_v16 = vpop.f32.mrb[6].mxu0 }
 0x30e   : > { %v3969_v31 = vsel %vm3905_vm8, %v3873_v52, %v3937_v0  ;;  %v3875_v10 = vadd.f32 %v9218_v16, %v11254_v6  ;;  %v3700_v11 = vpop.f32.mrb[7].mxu0  ;;  %v11274_v13 = vld [vmem:[#allocation2 + $0x21] sm:$0xff] }
 0x30f   : > { %4001 = vst.msk [vmem:[#allocation2 + $0x51] sm:$0xff] %vm257_vm0, %v3969_v31  ;;  %v3968_v12 = vsel %vm3904_vm9, %v3872_v56, %v3936_v3  ;;  %v3874_v2 = vadd.f32 %v11254_v6, %v3700_v11  ;;  %v11269_v1 = vld [vmem:[#allocation2 + $0x19] sm:$0xff] }
 0x310   : > { %4000 = vst.msk [vmem:[#allocation2 + $0x49] sm:$0xff] %vm257_vm0, %v3968_v12  ;;  %vm3907_vm10 = vcmp.ge.f32.partialorder %v3875_v10, 0.0  ;;  %v3939_v8 = vmul.f32 0.2, %v3875_v10  ;;  %9260 = vmatprep.mubr.msk.f32.mxu1 %vm257_vm0, %v11269_v1 }
 0x311   : > { %vm3906_vm11 = vcmp.ge.f32.partialorder %v3874_v2, 0.0  ;;  %v3938_v14 = vmul.f32 0.2, %v3874_v2  ;;  %v9221_v15 = vpop.f32.mrb[8].mxu0  ;;  %9261 = vmatmul.mubr.msk.f32.gmra.mrb[2].mxu1 %vm257_vm0, %v11274_v13 }
 0x312   : > { %v3971_v17 = vsel %vm3907_vm10, %v3875_v10, %v3939_v8  ;;  %v3877_v18 = vadd.f32 %v9221_v15, %v11254_v6  ;;  %v3710_v20 = vpop.f32.mrb[9].mxu0  ;;  %v11286_v25 = vld [vmem:[#allocation2 + $0x39] sm:$0xff] }
 0x313   : > { %4003 = vst.msk [vmem:[#allocation2 + $0x69] sm:$0xff] %vm257_vm0, %v3971_v17  ;;  %v3970_v21 = vsel %vm3906_vm11, %v3874_v2, %v3938_v14  ;;  %v3876_v22 = vadd.f32 %v11254_v6, %v3710_v20  ;;  %v11281_v23 = vld [vmem:[#allocation2 + $0x31] sm:$0xff] }
 0x314   : > { %4002 = vst.msk [vmem:[#allocation2 + $0x61] sm:$0xff] %vm257_vm0, %v3970_v21  ;;  %vm3909_vm12 = vcmp.ge.f32.partialorder %v3877_v18, 0.0  ;;  %v3941_v24 = vmul.f32 0.2, %v3877_v18  ;;  %9263 = vmatprep.mubr.msk.f32.mxu1 %vm257_vm0, %v11281_v23 }
 0x315   : > { %vm3908_vm13 = vcmp.ge.f32.partialorder %v3876_v22, 0.0  ;;  %v3940_v26 = vmul.f32 0.2, %v3876_v22  ;;  %v9224_v27 = vpop.f32.mrb[10].mxu0  ;;  %9264 = vmatmul.mubr.msk.f32.gmra.mrb[4].mxu1 %vm257_vm0, %v11286_v25 }
 0x316   : > { %v3973_v28 = vsel %vm3909_vm12, %v3877_v18, %v3941_v24  ;;  %v3879_v29 = vadd.f32 %v9224_v27, %v11254_v6  ;;  %v3720_v57 = vpop.f32.mrb[11].mxu0  ;;  %v11298_v63 = vld [vmem:[#allocation2 + $0x51] sm:$0xff] }
 0x317   : > { %4005 = vst.msk [vmem:[#allocation2 + $0x81] sm:$0xff] %vm257_vm0, %v3973_v28  ;;  %v3972_v58 = vsel %vm3908_vm13, %v3876_v22, %v3940_v26  ;;  %v3878_v59 = vadd.f32 %v11254_v6, %v3720_v57  ;;  %v11293_v60 = vld [vmem:[#allocation2 + $0x49] sm:$0xff] }
 0x318   : > { %4004 = vst.msk [vmem:[#allocation2 + $0x79] sm:$0xff] %vm257_vm0, %v3972_v58  ;;  %vm3911_vm14 = vcmp.ge.f32.partialorder %v3879_v29, 0.0  ;;  %v3943_v61 = vmul.f32 0.2, %v3879_v29  ;;  %9266 = vmatprep.mubr.msk.f32.mxu1 %vm257_vm0, %v11293_v60 }
 0x319   : > { %vm3910_vm15 = vcmp.ge.f32.partialorder %v3878_v59, 0.0  ;;  %v3942_v30 = vmul.f32 0.2, %v3878_v59  ;;  %v9227_v32 = vpop.f32.mrb[12].mxu0  ;;  %9267 = vmatmul.mubr.msk.f32.gmra.mrb[6].mxu1 %vm257_vm0, %v11298_v63 }
 0x31a   : > { %v3975_v33 = vsel %vm3911_vm14, %v3879_v29, %v3943_v61  ;;  %v3881_v35 = vadd.f32 %v9227_v32, %v11254_v6  ;;  %v3730_v39 = vpop.f32.mrb[13].mxu0  ;;  %v11310_v37 = vld [vmem:[#allocation2 + $0x69] sm:$0xff] }
 0x31b   : > { %4007 = vst.msk [vmem:[#allocation2 + $0x99] sm:$0xff] %vm257_vm0, %v3975_v33  ;;  %v3974_v42 = vsel %vm3910_vm15, %v3878_v59, %v3942_v30  ;;  %v3880_v36 = vadd.f32 %v11254_v6, %v3730_v39  ;;  %v11305_v40 = vld [vmem:[#allocation2 + $0x61] sm:$0xff] }
 0x31c   : > { %4006 = vst.msk [vmem:[#allocation2 + $0x91] sm:$0xff] %vm257_vm0, %v3974_v42  ;;  %vm3913_vm1 = vcmp.ge.f32.partialorder %v3881_v35, 0.0  ;;  %v3945_v5 = vmul.f32 0.2, %v3881_v35  ;;  %9269 = vmatprep.mubr.msk.f32.mxu1 %vm257_vm0, %v11305_v40 }
 0x31d   : > { %vm3912_vm2 = vcmp.ge.f32.partialorder %v3880_v36, 0.0  ;;  %v3944_v38 = vmul.f32 0.2, %v3880_v36  ;;  %v9230_v9 = vpop.f32.mrb[14].mxu0  ;;  %9270 = vmatmul.mubr.msk.f32.gmra.mrb[8].mxu1 %vm257_vm0, %v11310_v37 }
 0x31e   : > { %v3977_v50 = vsel %vm3913_vm1, %v3881_v35, %v3945_v5  ;;  %v3883_v51 = vadd.f32 %v9230_v9, %v11254_v6  ;;  %v3740_v54 = vpop.f32.mrb[15].mxu0  ;;  %v11322_v41 = vld [vmem:[#allocation2 + $0x81] sm:$0xff] }
 0x31f   : > { %4009 = vst.msk [vmem:[#allocation2 + $0xb1] sm:$0xff] %vm257_vm0, %v3977_v50  ;;  %v3976_v62 = vsel %vm3912_vm2, %v3880_v36, %v3944_v38  ;;  %v3882_v4 = vadd.f32 %v11254_v6, %v3740_v54  ;;  %v11317_v19 = vld [vmem:[#allocation2 + $0x79] sm:$0xff] }
 0x320   : > { %4008 = vst.msk [vmem:[#allocation2 + $0xa9] sm:$0xff] %vm257_vm0, %v3976_v62  ;;  %vm3915_vm3 = vcmp.ge.f32.partialorder %v3883_v51, 0.0  ;;  %v3947_v34 = vmul.f32 0.2, %v3883_v51  ;;  %9272 = vmatprep.mubr.msk.f32.mxu1 %vm257_vm0, %v11317_v19 }
 0x321   : > { %vm3914_vm4 = vcmp.ge.f32.partialorder %v3882_v4, 0.0  ;;  %v3946_v43 = vmul.f32 0.2, %v3882_v4  ;;  %v9233_v44 = vpop.f32.mrb[16].mxu0  ;;  %9273 = vmatmul.mubr.msk.f32.gmra.mrb[10].mxu1 %vm257_vm0, %v11322_v41 }
 0x322   : > { %v3979_v45 = vsel %vm3915_vm3, %v3883_v51, %v3947_v34  ;;  %v3885_v46 = vadd.f32 %v9233_v44, %v11254_v6  ;;  %v3750_v47 = vpop.f32.mrb[17].mxu0  ;;  %v11334_v55 = vld [vmem:[#allocation2 + $0x99] sm:$0xff] }
 0x323   : > { %4011 = vst.msk [vmem:[#allocation2 + $0xc9] sm:$0xff] %vm257_vm0, %v3979_v45  ;;  %v3978_v48 = vsel %vm3914_vm4, %v3882_v4, %v3946_v43  ;;  %v3884_v49 = vadd.f32 %v11254_v6, %v3750_v47  ;;  %v11329_v52 = vld [vmem:[#allocation2 + $0x91] sm:$0xff] }
 0x324   : > { %4010 = vst.msk [vmem:[#allocation2 + $0xc1] sm:$0xff] %vm257_vm0, %v3978_v48  ;;  %vm3917_vm5 = vcmp.ge.f32.partialorder %v3885_v46, 0.0  ;;  %v3949_v53 = vmul.f32 0.2, %v3885_v46  ;;  %9275 = vmatprep.mubr.msk.f32.mxu1 %vm257_vm0, %v11329_v52 }
 0x325   : > { %vm3916_vm6 = vcmp.ge.f32.partialorder %v3884_v49, 0.0  ;;  %v3948_v56 = vmul.f32 0.2, %v3884_v49  ;;  %v9236_v0 = vpop.f32.mrb[18].mxu0  ;;  %9276 = vmatmul.mubr.msk.f32.gmra.mrb[12].mxu1 %vm257_vm0, %v11334_v55 }
 0x326   : > { %v3981_v3 = vsel %vm3917_vm5, %v3885_v46, %v3949_v53  ;;  %v3887_v16 = vadd.f32 %v9236_v0, %v11254_v6  ;;  %v3760_v31 = vpop.f32.mrb[19].mxu0  ;;  %v11346_v8 = vld [vmem:[#allocation2 + $0xb1] sm:$0xff] }
 0x327   : > { %4013 = vst.msk [vmem:[#allocation2 + $0xe1] sm:$0xff] %vm257_vm0, %v3981_v3  ;;  %v3980_v10 = vsel %vm3916_vm6, %v3884_v49, %v3948_v56  ;;  %v3886_v11 = vadd.f32 %v11254_v6, %v3760_v31  ;;  %v11341_v12 = vld [vmem:[#allocation2 + $0xa9] sm:$0xff] }
 0x328   : > { %4012 = vst.msk [vmem:[#allocation2 + $0xd9] sm:$0xff] %vm257_vm0, %v3980_v10  ;;  %vm3919_vm7 = vcmp.ge.f32.partialorder %v3887_v16, 0.0  ;;  %v3951_v2 = vmul.f32 0.2, %v3887_v16  ;;  %9278 = vmatprep.mubr.msk.f32.mxu1 %vm257_vm0, %v11341_v12 }
 0x329   : > { %vm3918_vm8 = vcmp.ge.f32.partialorder %v3886_v11, 0.0  ;;  %v3950_v14 = vmul.f32 0.2, %v3886_v11  ;;  %v9239_v15 = vpop.f32.mrb[20].mxu0  ;;  %9279 = vmatmul.mubr.msk.f32.gmra.mrb[14].mxu1 %vm257_vm0, %v11346_v8 }
 0x32a   : > { %v3983_v17 = vsel %vm3919_vm7, %v3887_v16, %v3951_v2  ;;  %v3889_v18 = vadd.f32 %v9239_v15, %v11254_v6  ;;  %v3770_v20 = vpop.f32.mrb[21].mxu0  ;;  %v11358_v27 = vld [vmem:[#allocation2 + $0xc9] sm:$0xff] }
 0x32b   : > { %4015 = vst.msk [vmem:[#allocation2 + $0xf9] sm:$0xff] %vm257_vm0, %v3983_v17  ;;  %v3982_v21 = vsel %vm3918_vm8, %v3886_v11, %v3950_v14  ;;  %v3888_v22 = vadd.f32 %v11254_v6, %v3770_v20  ;;  %v11353_v24 = vld [vmem:[#allocation2 + $0xc1] sm:$0xff] }
 0x32c   : > { %4014 = vst.msk [vmem:[#allocation2 + $0xf1] sm:$0xff] %vm257_vm0, %v3982_v21  ;;  %vm3921_vm9 = vcmp.ge.f32.partialorder %v3889_v18, 0.0  ;;  %v3953_v26 = vmul.f32 0.2, %v3889_v18  ;;  %9281 = vmatprep.mubr.msk.f32.mxu1 %vm257_vm0, %v11353_v24 }
 0x32d   : > { %vm3920_vm10 = vcmp.ge.f32.partialorder %v3888_v22, 0.0  ;;  %v3952_v28 = vmul.f32 0.2, %v3888_v22  ;;  %v9242_v29 = vpop.f32.mrb[22].mxu0  ;;  %9282 = vmatmul.mubr.msk.f32.gmra.mrb[16].mxu1 %vm257_vm0, %v11358_v27 }
 0x32e   : > { %v3985_v57 = vsel %vm3921_vm9, %v3889_v18, %v3953_v26  ;;  %v3891_v58 = vadd.f32 %v9242_v29, %v11254_v6  ;;  %v3780_v59 = vpop.f32.mrb[23].mxu0  ;;  %v11370_v35 = vld [vmem:[#allocation2 + $0xe1] sm:$0xff] }
 0x32f   : > { %4017 = vst.msk [vmem:[#allocation2 + $0x111] sm:$0xff] %vm257_vm0, %v3985_v57  ;;  %v3984_v61 = vsel %vm3920_vm10, %v3888_v22, %v3952_v28  ;;  %v3890_v30 = vadd.f32 %v11254_v6, %v3780_v59  ;;  %v11365_v32 = vld [vmem:[#allocation2 + $0xd9] sm:$0xff] }
 0x330   : > { %4016 = vst.msk [vmem:[#allocation2 + $0x109] sm:$0xff] %vm257_vm0, %v3984_v61  ;;  %vm3923_vm11 = vcmp.ge.f32.partialorder %v3891_v58, 0.0  ;;  %v3955_v33 = vmul.f32 0.2, %v3891_v58  ;;  %9284 = vmatprep.mubr.msk.f32.mxu1 %vm257_vm0, %v11365_v32 }
 0x331   : > { %vm3922_vm12 = vcmp.ge.f32.partialorder %v3890_v30, 0.0  ;;  %v3954_v39 = vmul.f32 0.2, %v3890_v30  ;;  %v9245_v42 = vpop.f32.mrb[24].mxu0  ;;  %9285 = vmatmul.mubr.msk.f32.gmra.mrb[18].mxu1 %vm257_vm0, %v11370_v35 }
 0x332   : > { %v3987_v36 = vsel %vm3923_vm11, %v3891_v58, %v3955_v33  ;;  %v3893_v5 = vadd.f32 %v9245_v42, %v11254_v6  ;;  %v3790_v38 = vpop.f32.mrb[25].mxu0  ;;  %v11382_v62 = vld [vmem:[#allocation2 + $0xf9] sm:$0xff] }
 0x333   : > { %4019 = vst.msk [vmem:[#allocation2 + $0x129] sm:$0xff] %vm257_vm0, %v3987_v36  ;;  %v3986_v9 = vsel %vm3922_vm12, %v3890_v30, %v3954_v39  ;;  %v3892_v50 = vadd.f32 %v11254_v6, %v3790_v38  ;;  %v11377_v51 = vld [vmem:[#allocation2 + $0xf1] sm:$0xff]  ;;  %v4028_v42 = vld [vmem:[#allocation2] sm:$0xff] }
 0x334   : > { %4018 = vst.msk [vmem:[#allocation2 + $0x121] sm:$0xff] %vm257_vm0, %v3986_v9  ;;  %vm3925_vm13 = vcmp.ge.f32.partialorder %v3893_v5, 0.0  ;;  %v3957_v54 = vmul.f32 0.2, %v3893_v5  ;;  %9287 = vmatprep.mubr.msk.f32.mxu1 %vm257_vm0, %v11377_v51  ;;  %v11444_v38 = vld [vmem:[%s12233_s3 + $0x18] sm:$0xff] }
 0x335   : > { %vm3924_vm14 = vcmp.ge.f32.partialorder %v3892_v50, 0.0  ;;  %v3956_v4 = vmul.f32 0.2, %v3892_v50  ;;  %v9248_v34 = vpop.f32.mrb[26].mxu0  ;;  %9288 = vmatmul.mubr.msk.f32.gmra.mrb[20].mxu1 %vm257_vm0, %v11382_v62  ;;  %v11447_v9 = vld [vmem:[#allocation2 + $0x18] sm:$0xff] }
 0x336   : > { %v3989_v43 = vsel %vm3925_vm13, %v3893_v5, %v3957_v54  ;;  %v3895_v44 = vadd.f32 %v9248_v34, %v11254_v6  ;;  %v3800_v45 = vpop.f32.mrb[27].mxu0  ;;  %v11394_v53 = vld [vmem:[#allocation2 + $0x111] sm:$0xff]  ;;  %v4029_v5 = vld [vmem:[#allocation2 + $0x8] sm:$0xff] }
 0x337   : > { %4021 = vst.msk [vmem:[#allocation2 + $0x141] sm:$0xff] %vm257_vm0, %v3989_v43  ;;  %v3988_v46 = vsel %vm3924_vm14, %v3892_v50, %v3956_v4  ;;  %v3894_v47 = vadd.f32 %v11254_v6, %v3800_v45  ;;  %v11389_v48 = vld [vmem:[#allocation2 + $0x109] sm:$0xff]  ;;  %v11453_v50 = vld [vmem:[#allocation2 + $0x20] sm:$0xff]  ;;  %v11461_v4 = vld [vmem:[#allocation2 + $0x38] sm:$0xff] }
 0x338   : > { %4020 = vst.msk [vmem:[#allocation2 + $0x139] sm:$0xff] %vm257_vm0, %v3988_v46  ;;  %vm3927_vm15 = vcmp.ge.f32.partialorder %v3895_v44, 0.0  ;;  %v3959_v49 = vmul.f32 0.2, %v3895_v44  ;;  %9290 = vmatprep.mubr.msk.f32.mxu1 %vm257_vm0, %v11389_v48  ;;  %v11457_v54 = vld [vmem:[#allocation2 + $0x30] sm:$0xff]  ;;  %v11473_v43 = vld [vmem:[#allocation2 + $0x60] sm:$0xff] }
 0x339   : > { %vm3926_vm1 = vcmp.ge.f32.partialorder %v3894_v47, 0.0  ;;  %v3958_v56 = vmul.f32 0.2, %v3894_v47  ;;  %v9251_v0 = vpop.f32.mrb[28].mxu0  ;;  %9291 = vmatmul.mubr.msk.f32.gmra.mrb[22].mxu1 %vm257_vm0, %v11394_v53  ;;  %v11469_v34 = vld [vmem:[#allocation2 + $0x50] sm:$0xff]  ;;  %v11481_v45 = vld [vmem:[#allocation2 + $0x78] sm:$0xff] }
 0x33a   : > { %v3991_v3 = vsel %vm3927_vm15, %v3895_v44, %v3959_v49  ;;  %v3897_v16 = vadd.f32 %v9251_v0, %v11254_v6  ;;  %v3810_v31 = vpop.f32.mrb[29].mxu0  ;;  %v11406_v15 = vld [vmem:[#allocation2 + $0x129] sm:$0xff]  ;;  %v11485_v46 = vld [vmem:[#allocation2 + $0x80] sm:$0xff]  ;;  %v11493_v49 = vld [vmem:[#allocation2 + $0x98] sm:$0xff] }
 0x33b   : > { %4023 = vst.msk [vmem:[#allocation2 + $0x159] sm:$0xff] %vm257_vm0, %v3991_v3  ;;  %v3990_v10 = vsel %vm3926_vm1, %v3894_v47, %v3958_v56  ;;  %v3896_v11 = vadd.f32 %v11254_v6, %v3810_v31  ;;  %v11401_v2 = vld [vmem:[#allocation2 + $0x121] sm:$0xff]  ;;  %v11489_v47 = vld [vmem:[#allocation2 + $0x90] sm:$0xff]  ;;  %v11513_v31 = vld [vmem:[#allocation2 + $0xd8] sm:$0xff] }
 0x33c   : > { %4022 = vst.msk [vmem:[#allocation2 + $0x151] sm:$0xff] %vm257_vm0, %v3990_v10  ;;  %vm3929_vm2 = vcmp.ge.f32.partialorder %v3897_v16, 0.0  ;;  %v3961_v14 = vmul.f32 0.2, %v3897_v16  ;;  %9293 = vmatprep.mubr.msk.f32.mxu1 %vm257_vm0, %v11401_v2  ;;  %v11477_v44 = vld [vmem:[#allocation2 + $0x68] sm:$0xff]  ;;  %v11501_v0 = vld [vmem:[#allocation2 + $0xb0] sm:$0xff] }
 0x33d   : > { %vm3928_vm3 = vcmp.ge.f32.partialorder %v3896_v11, 0.0  ;;  %v3960_v17 = vmul.f32 0.2, %v3896_v11  ;;  %v9254_v18 = vpop.f32.mrb[30].mxu0  ;;  %9294 = vmatmul.mubr.msk.f32.gmra.mrb[24].mxu1 %vm257_vm0, %v11406_v15  ;;  %v11497_v56 = vld [vmem:[#allocation2 + $0xa8] sm:$0xff]  ;;  %v11505_v3 = vld [vmem:[#allocation2 + $0xc0] sm:$0xff] }
 0x33e   : > { %v3993_v20 = vsel %vm3929_vm2, %v3897_v16, %v3961_v14  ;;  %v3899_v21 = vadd.f32 %v9254_v18, %v11254_v6  ;;  %v3820_v22 = vpop.f32.mrb[31].mxu0  ;;  %v11418_v58 = vld [vmem:[#allocation2 + $0x141] sm:$0xff]  ;;  %v11525_v14 = vld [vmem:[#allocation2 + $0xf8] sm:$0xff]  ;;  %v11533_v18 = vld [vmem:[#allocation2 + $0x110] sm:$0xff] }
 0x33f   : > { %4025 = vst.msk [vmem:[#allocation2 + $0x171] sm:$0xff] %vm257_vm0, %v3993_v20  ;;  %v3992_v26 = vsel %vm3928_vm3, %v3896_v11, %v3960_v17  ;;  %v3898_v28 = vadd.f32 %v11254_v6, %v3820_v22  ;;  %v11413_v29 = vld [vmem:[#allocation2 + $0x139] sm:$0xff]  ;;  %v11509_v16 = vld [vmem:[#allocation2 + $0xc8] sm:$0xff]  ;;  %v11521_v11 = vld [vmem:[#allocation2 + $0xf0] sm:$0xff] }
 0x340   : > { %4024 = vst.msk [vmem:[#allocation2 + $0x169] sm:$0xff] %vm257_vm0, %v3992_v26  ;;  %vm3931_vm4 = vcmp.ge.f32.partialorder %v3899_v21, 0.0  ;;  %v3963_v57 = vmul.f32 0.2, %v3899_v21  ;;  %9296 = vmatprep.mubr.msk.f32.mxu1 %vm257_vm0, %v11413_v29  ;;  %v11517_v10 = vld [vmem:[#allocation2 + $0xe0] sm:$0xff]  ;;  %v11529_v17 = vld [vmem:[#allocation2 + $0x108] sm:$0xff] }
 0x341   : > { %vm3930_vm5 = vcmp.ge.f32.partialorder %v3898_v28, 0.0  ;;  %v3962_v59 = vmul.f32 0.2, %v3898_v28  ;;  %9297 = vmatmul.mubr.msk.f32.gmra.mrb[26].mxu1 %vm257_vm0, %v11418_v58  ;;  %v11537_v20 = vld [vmem:[#allocation2 + $0x120] sm:$0xff]  ;;  %v11545_v22 = vld [vmem:[#allocation2 + $0x138] sm:$0xff] }
 0x342   : > { %v3995_v61 = vsel %vm3931_vm4, %v3899_v21, %v3963_v57  ;;  %v11428_v33 = vld [vmem:[#allocation2 + $0x159] sm:$0xff]  ;;  %v11541_v21 = vld [vmem:[#allocation2 + $0x128] sm:$0xff] }
 0x343   : > { %4027 = vst.msk [vmem:[#allocation2 + $0x189] sm:$0xff] %vm257_vm0, %v3995_v61  ;;  %v3994_v6 = vsel %vm3930_vm5, %v3898_v28, %v3962_v59  ;;  %v11423_v30 = vld [vmem:[#allocation2 + $0x151] sm:$0xff]  ;;  %v11549_v26 = vld [vmem:[#allocation2 + $0x140] sm:$0xff] }
 0x344   : > { %4026 = vst.msk [vmem:[#allocation2 + $0x181] sm:$0xff] %vm257_vm0, %v3994_v6  ;;  %9299 = vmatprep.mubr.msk.f32.mxu1 %vm257_vm0, %v11423_v30  ;;  %v11553_v28 = vld [vmem:[#allocation2 + $0x150] sm:$0xff]  ;;  %v11557_v57 = vld [vmem:[#allocation2 + $0x158] sm:$0xff]  ;;  %v4737_v61 = vld [vmem:[#allocation2 + $0x2] sm:$0xff] }
 0x345   : > { %9300 = vmatmul.mubr.msk.f32.gmra.mrb[28].mxu1 %vm257_vm0, %v11428_v33 }
 0x346   : > { %v11436_v36 = vld [vmem:[#allocation2 + $0x171] sm:$0xff] }
 0x347   : > { %v11432_v39 = vld [vmem:[#allocation2 + $0x169] sm:$0xff]  ;;  %12414 = vst [vmem:[#allocation4_spill] sm:$0xff] %v11436_v36 }
 0x348   : > { %12413 = vst [vmem:[#allocation3_spill] sm:$0xff] %v11432_v39  ;;  %9302 = vmatprep.mubr.msk.f32.mxu1 %vm257_vm0, %v11432_v39  ;;  %v11561_v59 = vld [vmem:[#allocation2 + $0x168] sm:$0xff]  ;;  %v11565_v6 = vld [vmem:[#allocation2 + $0x170] sm:$0xff] }
 0x349   : > { %9303 = vmatmul.mubr.msk.f32.gmra.mrb[30].mxu1 %vm257_vm0, %v11436_v36  ;;  %v11576_v36 = vld [vmem:[#allocation2 + $0x1a] sm:$0xff]  ;;  %v11582_v39 = vld [vmem:[#allocation2 + $0x22] sm:$0xff] }
 0x34a   : > { %9307 = vmatprep.mubr.msk.f32.mxu1 %vm257_vm0, %v4028_v42  ;;  %v4738_v42 = vld [vmem:[#allocation2 + $0xa] sm:$0xff]  ;;  %12415 = vst [vmem:[#allocation5_spill] sm:$0xff] %v11576_v36  ;;  %12416 = vst [vmem:[#allocation6_spill] sm:$0xff] %v11582_v39 }
 0x34d   : > { %9308 = vmatmul.mubr.msk.f32.vlgmr.msra.gmra.mrb[0].mxu1 %vm257_vm0, %v4029_v5  ;;  %v11573_v5 = vld [vmem:[%s12233_s3 + $0x20] sm:$0xff] }
 0x34e   : > { %9356 = vmatpush3.msra.mxu1 %v11248_v7  ;;  %9310 = vmatprep.mubr.msk.f32.mxu1 %vm257_vm0, %v11447_v9  ;;  %v11465_v7 = vld [vmem:[#allocation2 + $0x48] sm:$0xff] }
 0x34f   : > { %9405 = vmatprep.subr.mxu1 %v11444_v38 }
 0x351   : > { %9311 = vmatmul.mubr.msk.f32.gmra.mrb[2].mxu1 %vm257_vm0, %v11453_v50 }
 0x352   : > { %9313 = vmatprep.mubr.msk.f32.mxu1 %vm257_vm0, %v11457_v54 }
 0x355   : > { %9314 = vmatmul.mubr.msk.f32.gmra.mrb[4].mxu1 %vm257_vm0, %v11461_v4 }
 0x356   : > { %9316 = vmatprep.mubr.msk.f32.mxu1 %vm257_vm0, %v11465_v7 }
 0x359   : > { %9317 = vmatmul.mubr.msk.f32.gmra.mrb[6].mxu1 %vm257_vm0, %v11469_v34 }
 0x35a   : > { %9319 = vmatprep.mubr.msk.f32.mxu1 %vm257_vm0, %v11473_v43 }
 0x35d   : > { %9320 = vmatmul.mubr.msk.f32.gmra.mrb[8].mxu1 %vm257_vm0, %v11477_v44 }
 0x35e   : > { %9322 = vmatprep.mubr.msk.f32.mxu1 %vm257_vm0, %v11481_v45 }
 0x361   : > { %9323 = vmatmul.mubr.msk.f32.gmra.mrb[10].mxu1 %vm257_vm0, %v11485_v46 }
 0x362   : > { %9325 = vmatprep.mubr.msk.f32.mxu1 %vm257_vm0, %v11489_v47 }
 0x365   : > { %9326 = vmatmul.mubr.msk.f32.gmra.mrb[12].mxu1 %vm257_vm0, %v11493_v49 }
 0x366   : > { %9328 = vmatprep.mubr.msk.f32.mxu1 %vm257_vm0, %v11497_v56 }
 0x369   : > { %9329 = vmatmul.mubr.msk.f32.gmra.mrb[14].mxu1 %vm257_vm0, %v11501_v0 }
 0x36a   : > { %9331 = vmatprep.mubr.msk.f32.mxu1 %vm257_vm0, %v11505_v3 }
 0x36d   : > { %9332 = vmatmul.mubr.msk.f32.gmra.mrb[16].mxu1 %vm257_vm0, %v11509_v16 }
 0x36e   : > { %9334 = vmatprep.mubr.msk.f32.mxu1 %vm257_vm0, %v11513_v31 }
 0x371   : > { %9335 = vmatmul.mubr.msk.f32.gmra.mrb[18].mxu1 %vm257_vm0, %v11517_v10 }
 0x372   : > { %9337 = vmatprep.mubr.msk.f32.mxu1 %vm257_vm0, %v11521_v11 }
 0x375   : > { %9338 = vmatmul.mubr.msk.f32.gmra.mrb[20].mxu1 %vm257_vm0, %v11525_v14 }
 0x376   : > { %9340 = vmatprep.mubr.msk.f32.mxu1 %vm257_vm0, %v11529_v17 }
 0x379   : > { %9341 = vmatmul.mubr.msk.f32.gmra.mrb[22].mxu1 %vm257_vm0, %v11533_v18 }
 0x37a   : > { %9343 = vmatprep.mubr.msk.f32.mxu1 %vm257_vm0, %v11537_v20 }
 0x37d   : > { %9344 = vmatmul.mubr.msk.f32.gmra.mrb[24].mxu1 %vm257_vm0, %v11541_v21 }
 0x37e   : > { %9346 = vmatprep.mubr.msk.f32.mxu1 %vm257_vm0, %v11545_v22 }
 0x381   : > { %9347 = vmatmul.mubr.msk.f32.gmra.mrb[26].mxu1 %vm257_vm0, %v11549_v26 }
 0x382   : > { %9349 = vmatprep.mubr.msk.f32.mxu1 %vm257_vm0, %v11553_v28 }
 0x385   : > { %9350 = vmatmul.mubr.msk.f32.gmra.mrb[28].mxu1 %vm257_vm0, %v11557_v57 }
 0x386   : > { %9352 = vmatprep.mubr.msk.f32.mxu1 %vm257_vm0, %v11561_v59 }
 0x389   : > { %9353 = vmatmul.mubr.msk.f32.gmra.mrb[30].mxu1 %vm257_vm0, %v11565_v6 }
 0x38a   : > { %9357 = vmatprep.mubr.msk.f32.mxu1 %vm257_vm0, %v4737_v61  ;;  %v11586_v61 = vld [vmem:[#allocation2 + $0x32] sm:$0xff] }
 0x38b   : > { %12417 = vst [vmem:[#allocation7_spill] sm:$0xff] %v11586_v61 }
 0x38d   : > { %9358 = vmatmul.mubr.msk.f32.vlgmr.msra.gmra.mrb[0].mxu1 %vm257_vm0, %v4738_v42  ;;  %v11590_v42 = vld [vmem:[#allocation2 + $0x3a] sm:$0xff] }
 0x38e   : > { %9406 = vmatpush3.msra.mxu1 %v11444_v38  ;;  %9360 = vmatprep.mubr.msk.f32.mxu1 %vm257_vm0, %v11576_v36  ;;  %12418 = vst [vmem:[#allocation8_spill] sm:$0xff] %v11590_v42  ;;  %v11594_v38 = vld [vmem:[#allocation2 + $0x4a] sm:$0xff]  ;;  %v11598_v36 = vld [vmem:[#allocation2 + $0x52] sm:$0xff] }
 0x38f   : > { %9455 = vmatprep.subr.mxu1 %v11573_v5  ;;  %12419 = vst [vmem:[#allocation9_spill] sm:$0xff] %v11594_v38  ;;  %12420 = vst [vmem:[#allocation10_spill] sm:$0xff] %v11598_v36 }
 0x391   : > { %9361 = vmatmul.mubr.msk.f32.gmra.mrb[2].mxu1 %vm257_vm0, %v11582_v39  ;;  %v11602_v39 = vld [vmem:[#allocation2 + $0x62] sm:$0xff] }
 0x392   : > { %9363 = vmatprep.mubr.msk.f32.mxu1 %vm257_vm0, %v11586_v61  ;;  %12421 = vst [vmem:[#allocation11_spill] sm:$0xff] %v11602_v39  ;;  %v11606_v61 = vld [vmem:[#allocation2 + $0x6a] sm:$0xff] }
 0x393   : > { %12422 = vst [vmem:[#allocation12_spill] sm:$0xff] %v11606_v61 }
 0x395   : > { %9364 = vmatmul.mubr.msk.f32.gmra.mrb[4].mxu1 %vm257_vm0, %v11590_v42  ;;  %v11610_v42 = vld [vmem:[#allocation2 + $0x7a] sm:$0xff] }
 0x396   : > { %9366 = vmatprep.mubr.msk.f32.mxu1 %vm257_vm0, %v11594_v38  ;;  %12423 = vst [vmem:[#allocation13_spill] sm:$0xff] %v11610_v42  ;;  %v11614_v38 = vld [vmem:[#allocation2 + $0x82] sm:$0xff] }
 0x397   : > { %12424 = vst [vmem:[#allocation14_spill] sm:$0xff] %v11614_v38 }
 0x399   : > { %9367 = vmatmul.mubr.msk.f32.gmra.mrb[6].mxu1 %vm257_vm0, %v11598_v36  ;;  %v11618_v36 = vld [vmem:[#allocation2 + $0x92] sm:$0xff] }
 0x39a   : > { %9369 = vmatprep.mubr.msk.f32.mxu1 %vm257_vm0, %v11602_v39  ;;  %12425 = vst [vmem:[#allocation15_spill] sm:$0xff] %v11618_v36  ;;  %v11622_v39 = vld [vmem:[#allocation2 + $0x9a] sm:$0xff] }
 0x39b   : > { %12426 = vst [vmem:[#allocation16_spill] sm:$0xff] %v11622_v39 }
 0x39d   : > { %9370 = vmatmul.mubr.msk.f32.gmra.mrb[8].mxu1 %vm257_vm0, %v11606_v61  ;;  %v11626_v61 = vld [vmem:[#allocation2 + $0xaa] sm:$0xff] }
 0x39e   : > { %9372 = vmatprep.mubr.msk.f32.mxu1 %vm257_vm0, %v11610_v42  ;;  %12427 = vst [vmem:[#allocation21_spill] sm:$0xff] %v11626_v61  ;;  %v11630_v42 = vld [vmem:[#allocation2 + $0xb2] sm:$0xff] }
 0x39f   : > { %12428 = vst [vmem:[#allocation23_spill] sm:$0xff] %v11630_v42 }
 0x3a1   : > { %9373 = vmatmul.mubr.msk.f32.gmra.mrb[10].mxu1 %vm257_vm0, %v11614_v38  ;;  %v11634_v38 = vld [vmem:[#allocation2 + $0xc2] sm:$0xff] }
 0x3a2   : > { %9375 = vmatprep.mubr.msk.f32.mxu1 %vm257_vm0, %v11618_v36  ;;  %12429 = vst [vmem:[#allocation25_spill] sm:$0xff] %v11634_v38  ;;  %v11638_v36 = vld [vmem:[#allocation2 + $0xca] sm:$0xff] }
 0x3a3   : > { %12430 = vst [vmem:[#allocation26_spill] sm:$0xff] %v11638_v36 }
 0x3a5   : > { %9376 = vmatmul.mubr.msk.f32.gmra.mrb[12].mxu1 %vm257_vm0, %v11622_v39  ;;  %v11642_v39 = vld [vmem:[#allocation2 + $0xda] sm:$0xff] }
 0x3a6   : > { %9378 = vmatprep.mubr.msk.f32.mxu1 %vm257_vm0, %v11626_v61  ;;  %12431 = vst [vmem:[#allocation28_spill] sm:$0xff] %v11642_v39  ;;  %v11646_v61 = vld [vmem:[#allocation2 + $0xe2] sm:$0xff] }
 0x3a7   : > { %12432 = vst [vmem:[#allocation30_spill] sm:$0xff] %v11646_v61 }
 0x3a9   : > { %9379 = vmatmul.mubr.msk.f32.gmra.mrb[14].mxu1 %vm257_vm0, %v11630_v42  ;;  %v11650_v42 = vld [vmem:[#allocation2 + $0xf2] sm:$0xff] }
 0x3aa   : > { %9381 = vmatprep.mubr.msk.f32.mxu1 %vm257_vm0, %v11634_v38  ;;  %12433 = vst [vmem:[#allocation17_spill] sm:$0xff] %v11650_v42  ;;  %v11654_v38 = vld [vmem:[#allocation2 + $0xfa] sm:$0xff] }
 0x3ab   : > { %12434 = vst [vmem:[#allocation18_spill] sm:$0xff] %v11654_v38 }
 0x3ad   : > { %9382 = vmatmul.mubr.msk.f32.gmra.mrb[16].mxu1 %vm257_vm0, %v11638_v36  ;;  %v11658_v36 = vld [vmem:[#allocation2 + $0x10a] sm:$0xff] }
 0x3ae   : > { %9384 = vmatprep.mubr.msk.f32.mxu1 %vm257_vm0, %v11642_v39  ;;  %12435 = vst [vmem:[#allocation19_spill] sm:$0xff] %v11658_v36  ;;  %v11662_v39 = vld [vmem:[#allocation2 + $0x112] sm:$0xff] }
 0x3af   : > { %12436 = vst [vmem:[#allocation20_spill] sm:$0xff] %v11662_v39 }
 0x3b1   : > { %9385 = vmatmul.mubr.msk.f32.gmra.mrb[18].mxu1 %vm257_vm0, %v11646_v61  ;;  %v11666_v61 = vld [vmem:[#allocation2 + $0x122] sm:$0xff] }
 0x3b2   : > { %9387 = vmatprep.mubr.msk.f32.mxu1 %vm257_vm0, %v11650_v42  ;;  %12437 = vst [vmem:[#allocation22_spill] sm:$0xff] %v11666_v61  ;;  %v11670_v42 = vld [vmem:[#allocation2 + $0x12a] sm:$0xff] }
 0x3b3   : > { %12438 = vst [vmem:[#allocation24_spill] sm:$0xff] %v11670_v42 }
 0x3b5   : > { %9388 = vmatmul.mubr.msk.f32.gmra.mrb[20].mxu1 %vm257_vm0, %v11654_v38  ;;  %v11674_v38 = vld [vmem:[#allocation2 + $0x13a] sm:$0xff] }
 0x3b6   : > { %9390 = vmatprep.mubr.msk.f32.mxu1 %vm257_vm0, %v11658_v36  ;;  %12439 = vst [vmem:[#allocation27_spill] sm:$0xff] %v11674_v38  ;;  %v11678_v36 = vld [vmem:[#allocation2 + $0x142] sm:$0xff] }
 0x3b9   : > { %9391 = vmatmul.mubr.msk.f32.gmra.mrb[22].mxu1 %vm257_vm0, %v11662_v39  ;;  %v11682_v39 = vld [vmem:[#allocation2 + $0x152] sm:$0xff] }
 0x3ba   : > { %9393 = vmatprep.mubr.msk.f32.mxu1 %vm257_vm0, %v11666_v61  ;;  %12440 = vst [vmem:[#allocation29_spill] sm:$0xff] %v11682_v39  ;;  %v11686_v61 = vld [vmem:[#allocation2 + $0x15a] sm:$0xff] }
 0x3bd   : > { %9394 = vmatmul.mubr.msk.f32.gmra.mrb[24].mxu1 %vm257_vm0, %v11670_v42  ;;  %v11690_v42 = vld [vmem:[#allocation2 + $0x16a] sm:$0xff] }
 0x3be   : > { %9396 = vmatprep.mubr.msk.f32.mxu1 %vm257_vm0, %v11674_v38  ;;  %12441 = vst [vmem:[#allocation31_spill] sm:$0xff] %v11690_v42  ;;  %v11694_v38 = vld [vmem:[#allocation2 + $0x172] sm:$0xff] }
 0x3c1   : > { %9397 = vmatmul.mubr.msk.f32.gmra.mrb[26].mxu1 %vm257_vm0, %v11678_v36 }
 0x3c2   : > { %9399 = vmatprep.mubr.msk.f32.mxu1 %vm257_vm0, %v11682_v39  ;;  %v8074_v39 = vld [vmem:[%s12233_s3 + $0x28] sm:$0xff] }
 0x3c5   : > { %9400 = vmatmul.mubr.msk.f32.gmra.mrb[28].mxu1 %vm257_vm0, %v11686_v61 }
 0x3c6   : > { %9402 = vmatprep.mubr.msk.f32.mxu1 %vm257_vm0, %v11690_v42 }
 0x3c9   : > { %9403 = vmatmul.mubr.msk.f32.gmra.mrb[30].mxu1 %vm257_vm0, %v11694_v38 }
 0x3ca   : > { %9407 = vmatprep.mubr.msk.f32.mxu1 %vm257_vm0, %v11447_v9  ;;  %v11762_v9 = vld [vmem:[#allocation2 + $0x180] sm:$0xff] }
 0x3cd   : > { %9408 = vmatmul.mubr.msk.f32.vlgmr.msra.gmra.mrb[0].mxu1 %vm257_vm0, %v11453_v50  ;;  %v11766_v50 = vld [vmem:[#allocation2 + $0x188] sm:$0xff] }
 0x3ce   : > { %9456 = vmatpush3.msra.mxu1 %v11573_v5  ;;  %9410 = vmatprep.mubr.msk.f32.mxu1 %vm257_vm0, %v11457_v54  ;;  %v8107_v5 = vld [vmem:[%s12233_s3 + $0x30] sm:$0xff] }
 0x3cf   : > { %9505 = vmatprep.subr.mxu1 %v8074_v39 }
 0x3d1   : > { %9411 = vmatmul.mubr.msk.f32.gmra.mrb[2].mxu1 %vm257_vm0, %v11461_v4 }
 0x3d2   : > { %9413 = vmatprep.mubr.msk.f32.mxu1 %vm257_vm0, %v11465_v7 }
 0x3d5   : > { %9414 = vmatmul.mubr.msk.f32.gmra.mrb[4].mxu1 %vm257_vm0, %v11469_v34 }
 0x3d6   : > { %9416 = vmatprep.mubr.msk.f32.mxu1 %vm257_vm0, %v11473_v43 }
 0x3d9   : > { %9417 = vmatmul.mubr.msk.f32.gmra.mrb[6].mxu1 %vm257_vm0, %v11477_v44 }
 0x3da   : > { %9419 = vmatprep.mubr.msk.f32.mxu1 %vm257_vm0, %v11481_v45 }
 0x3dd   : > { %9420 = vmatmul.mubr.msk.f32.gmra.mrb[8].mxu1 %vm257_vm0, %v11485_v46 }
 0x3de   : > { %9422 = vmatprep.mubr.msk.f32.mxu1 %vm257_vm0, %v11489_v47 }
 0x3e1   : > { %9423 = vmatmul.mubr.msk.f32.gmra.mrb[10].mxu1 %vm257_vm0, %v11493_v49 }
 0x3e2   : > { %9425 = vmatprep.mubr.msk.f32.mxu1 %vm257_vm0, %v11497_v56 }
 0x3e5   : > { %9426 = vmatmul.mubr.msk.f32.gmra.mrb[12].mxu1 %vm257_vm0, %v11501_v0 }
 0x3e6   : > { %9428 = vmatprep.mubr.msk.f32.mxu1 %vm257_vm0, %v11505_v3 }
 0x3e9   : > { %9429 = vmatmul.mubr.msk.f32.gmra.mrb[14].mxu1 %vm257_vm0, %v11509_v16 }
 0x3ea   : > { %9431 = vmatprep.mubr.msk.f32.mxu1 %vm257_vm0, %v11513_v31 }
 0x3ed   : > { %9432 = vmatmul.mubr.msk.f32.gmra.mrb[16].mxu1 %vm257_vm0, %v11517_v10 }
 0x3ee   : > { %9434 = vmatprep.mubr.msk.f32.mxu1 %vm257_vm0, %v11521_v11 }
 0x3f1   : > { %9435 = vmatmul.mubr.msk.f32.gmra.mrb[18].mxu1 %vm257_vm0, %v11525_v14 }
 0x3f2   : > { %9437 = vmatprep.mubr.msk.f32.mxu1 %vm257_vm0, %v11529_v17 }
 0x3f5   : > { %9438 = vmatmul.mubr.msk.f32.gmra.mrb[20].mxu1 %vm257_vm0, %v11533_v18 }
 0x3f6   : > { %9440 = vmatprep.mubr.msk.f32.mxu1 %vm257_vm0, %v11537_v20 }
 0x3f9   : > { %9441 = vmatmul.mubr.msk.f32.gmra.mrb[22].mxu1 %vm257_vm0, %v11541_v21 }
 0x3fa   : > { %9443 = vmatprep.mubr.msk.f32.mxu1 %vm257_vm0, %v11545_v22 }
 0x3fd   : > { %9444 = vmatmul.mubr.msk.f32.gmra.mrb[24].mxu1 %vm257_vm0, %v11549_v26 }
 0x3fe   : > { %9446 = vmatprep.mubr.msk.f32.mxu1 %vm257_vm0, %v11553_v28 }
 0x401   : > { %9447 = vmatmul.mubr.msk.f32.gmra.mrb[26].mxu1 %vm257_vm0, %v11557_v57 }
 0x402   : > { %9449 = vmatprep.mubr.msk.f32.mxu1 %vm257_vm0, %v11561_v59 }
 0x405   : > { %9450 = vmatmul.mubr.msk.f32.gmra.mrb[28].mxu1 %vm257_vm0, %v11565_v6 }
 0x406   : > { %9452 = vmatprep.mubr.msk.f32.mxu1 %vm257_vm0, %v11762_v9 }
 0x409   : > { %9453 = vmatmul.mubr.msk.f32.gmra.mrb[30].mxu1 %vm257_vm0, %v11766_v50 }
 0x40a   : > { %9457 = vmatprep.mubr.msk.f32.mxu1 %vm257_vm0, %v11269_v1  ;;  %v12442_v1 = vld [vmem:[#allocation3_spill] sm:$0xff] }
 0x40d   : > { %9458 = vmatmul.mubr.msk.f32.vlgmr.msra.gmra.mrb[0].mxu1 %vm257_vm0, %v11274_v13  ;;  %v12443_v13 = vld [vmem:[#allocation4_spill] sm:$0xff] }
 0x40e   : > { %9506 = vmatpush3.msra.mxu1 %v8074_v39  ;;  %9460 = vmatprep.mubr.msk.f32.mxu1 %vm257_vm0, %v11281_v23  ;;  %v11833_v23 = vld [vmem:[#allocation2 + $0x181] sm:$0xff]  ;;  %v12455_v39 = vld [vmem:[#allocation16_spill] sm:$0xff] }
 0x40f   : > { %9555 = vmatprep.subr.mxu1 %v8107_v5 }
 0x411   : > { %9461 = vmatmul.mubr.msk.f32.gmra.mrb[2].mxu1 %vm257_vm0, %v11286_v25  ;;  %v11837_v25 = vld [vmem:[#allocation2 + $0x189] sm:$0xff] }
 0x412   : > { %9463 = vmatprep.mubr.msk.f32.mxu1 %vm257_vm0, %v11293_v60  ;;  %v12444_v60 = vld [vmem:[#allocation5_spill] sm:$0xff] }
 0x415   : > { %9464 = vmatmul.mubr.msk.f32.gmra.mrb[4].mxu1 %vm257_vm0, %v11298_v63  ;;  %v8140_v63 = vld [vmem:[%s12233_s3 + $0x38] sm:$0xff] }
 0x416   : > { %9466 = vmatprep.mubr.msk.f32.mxu1 %vm257_vm0, %v11305_v40  ;;  %v12445_v40 = vld [vmem:[#allocation6_spill] sm:$0xff] }
 0x419   : > { %9467 = vmatmul.mubr.msk.f32.gmra.mrb[6].mxu1 %vm257_vm0, %v11310_v37  ;;  %v12446_v37 = vld [vmem:[#allocation7_spill] sm:$0xff] }
 0x41a   : > { %9469 = vmatprep.mubr.msk.f32.mxu1 %vm257_vm0, %v11317_v19  ;;  %v12447_v19 = vld [vmem:[#allocation8_spill] sm:$0xff] }
 0x41d   : > { %9470 = vmatmul.mubr.msk.f32.gmra.mrb[8].mxu1 %vm257_vm0, %v11322_v41  ;;  %v12448_v41 = vld [vmem:[#allocation9_spill] sm:$0xff] }
 0x41e   : > { %9472 = vmatprep.mubr.msk.f32.mxu1 %vm257_vm0, %v11329_v52  ;;  %v12449_v52 = vld [vmem:[#allocation10_spill] sm:$0xff] }
 0x421   : > { %9473 = vmatmul.mubr.msk.f32.gmra.mrb[10].mxu1 %vm257_vm0, %v11334_v55  ;;  %v12450_v55 = vld [vmem:[#allocation11_spill] sm:$0xff] }
 0x422   : > { %9475 = vmatprep.mubr.msk.f32.mxu1 %vm257_vm0, %v11341_v12  ;;  %v12451_v12 = vld [vmem:[#allocation12_spill] sm:$0xff] }
 0x425   : > { %9476 = vmatmul.mubr.msk.f32.gmra.mrb[12].mxu1 %vm257_vm0, %v11346_v8  ;;  %v12452_v8 = vld [vmem:[#allocation13_spill] sm:$0xff] }
 0x426   : > { %9478 = vmatprep.mubr.msk.f32.mxu1 %vm257_vm0, %v11353_v24  ;;  %v12453_v24 = vld [vmem:[#allocation14_spill] sm:$0xff] }
 0x429   : > { %9479 = vmatmul.mubr.msk.f32.gmra.mrb[14].mxu1 %vm257_vm0, %v11358_v27  ;;  %v12454_v27 = vld [vmem:[#allocation15_spill] sm:$0xff] }
 0x42a   : > { %9481 = vmatprep.mubr.msk.f32.mxu1 %vm257_vm0, %v11365_v32 }
 0x42d   : > { %9482 = vmatmul.mubr.msk.f32.gmra.mrb[16].mxu1 %vm257_vm0, %v11370_v35 }
 0x42e   : > { %9484 = vmatprep.mubr.msk.f32.mxu1 %vm257_vm0, %v11377_v51 }
 0x431   : > { %9485 = vmatmul.mubr.msk.f32.gmra.mrb[18].mxu1 %vm257_vm0, %v11382_v62 }
 0x432   : > { %9487 = vmatprep.mubr.msk.f32.mxu1 %vm257_vm0, %v11389_v48 }
 0x435   : > { %9488 = vmatmul.mubr.msk.f32.gmra.mrb[20].mxu1 %vm257_vm0, %v11394_v53 }
 0x436   : > { %9490 = vmatprep.mubr.msk.f32.mxu1 %vm257_vm0, %v11401_v2 }
 0x439   : > { %9491 = vmatmul.mubr.msk.f32.gmra.mrb[22].mxu1 %vm257_vm0, %v11406_v15 }
 0x43a   : > { %9493 = vmatprep.mubr.msk.f32.mxu1 %vm257_vm0, %v11413_v29 }
 0x43d   : > { %9494 = vmatmul.mubr.msk.f32.gmra.mrb[24].mxu1 %vm257_vm0, %v11418_v58 }
 0x43e   : > { %9496 = vmatprep.mubr.msk.f32.mxu1 %vm257_vm0, %v11423_v30 }
 0x441   : > { %9497 = vmatmul.mubr.msk.f32.gmra.mrb[26].mxu1 %vm257_vm0, %v11428_v33 }
 0x442   : > { %9499 = vmatprep.mubr.msk.f32.mxu1 %vm257_vm0, %v12442_v1 }
 0x445   : > { %9500 = vmatmul.mubr.msk.f32.gmra.mrb[28].mxu1 %vm257_vm0, %v12443_v13 }
 0x446   : > { %9502 = vmatprep.mubr.msk.f32.mxu1 %vm257_vm0, %v11833_v23 }
 0x449   : > { %9503 = vmatmul.mubr.msk.f32.gmra.mrb[30].mxu1 %vm257_vm0, %v11837_v25 }
 0x44a   : > { %9507 = vmatprep.mubr.msk.f32.mxu1 %vm257_vm0, %v12444_v60  ;;  %v12457_v60 = vld [vmem:[#allocation23_spill] sm:$0xff] }
 0x44d   : > { %9508 = vmatmul.mubr.msk.f32.vlgmr.msra.gmra.mrb[0].mxu1 %vm257_vm0, %v12445_v40  ;;  %v12458_v40 = vld [vmem:[#allocation25_spill] sm:$0xff] }
 0x44e   : > { %9556 = vmatpush3.msra.mxu1 %v8107_v5  ;;  %9510 = vmatprep.mubr.msk.f32.mxu1 %vm257_vm0, %v12446_v37  ;;  %v12456_v5 = vld [vmem:[#allocation21_spill] sm:$0xff] }
 0x44f   : > { %9605 = vmatprep.subr.mxu1 %v8140_v63 }
 0x451   : > { %9511 = vmatmul.mubr.msk.f32.gmra.mrb[2].mxu1 %vm257_vm0, %v12447_v19 }
 0x452   : > { %9513 = vmatprep.mubr.msk.f32.mxu1 %vm257_vm0, %v12448_v41 }
 0x455   : > { %9514 = vmatmul.mubr.msk.f32.gmra.mrb[4].mxu1 %vm257_vm0, %v12449_v52 }
 0x456   : > { %9516 = vmatprep.mubr.msk.f32.mxu1 %vm257_vm0, %v12450_v55 }
 0x459   : > { %9517 = vmatmul.mubr.msk.f32.gmra.mrb[6].mxu1 %vm257_vm0, %v12451_v12  ;;  %v12459_v12 = vld [vmem:[#allocation26_spill] sm:$0xff] }
 0x45a   : > { %9519 = vmatprep.mubr.msk.f32.mxu1 %vm257_vm0, %v12452_v8  ;;  %v12460_v8 = vld [vmem:[#allocation28_spill] sm:$0xff] }
 0x45d   : > { %9520 = vmatmul.mubr.msk.f32.gmra.mrb[8].mxu1 %vm257_vm0, %v12453_v24  ;;  %v12461_v24 = vld [vmem:[#allocation30_spill] sm:$0xff] }
 0x45e   : > { %9522 = vmatprep.mubr.msk.f32.mxu1 %vm257_vm0, %v12454_v27  ;;  %v12462_v27 = vld [vmem:[#allocation17_spill] sm:$0xff] }
 0x461   : > { %9523 = vmatmul.mubr.msk.f32.gmra.mrb[10].mxu1 %vm257_vm0, %v12455_v39  ;;  %v12463_v39 = vld [vmem:[#allocation18_spill] sm:$0xff] }
 0x462   : > { %9525 = vmatprep.mubr.msk.f32.mxu1 %vm257_vm0, %v12456_v5  ;;  %v12464_v5 = vld [vmem:[#allocation19_spill] sm:$0xff] }
 0x465   : > { %9526 = vmatmul.mubr.msk.f32.gmra.mrb[12].mxu1 %vm257_vm0, %v12457_v60  ;;  %v12465_v60 = vld [vmem:[#allocation20_spill] sm:$0xff] }
 0x466   : > { %9528 = vmatprep.mubr.msk.f32.mxu1 %vm257_vm0, %v12458_v40  ;;  %v12466_v40 = vld [vmem:[#allocation22_spill] sm:$0xff] }
 0x469   : > { %9529 = vmatmul.mubr.msk.f32.gmra.mrb[14].mxu1 %vm257_vm0, %v12459_v12  ;;  %v12467_v12 = vld [vmem:[#allocation24_spill] sm:$0xff] }
 0x46a   : > { %9531 = vmatprep.mubr.msk.f32.mxu1 %vm257_vm0, %v12460_v8  ;;  %v12468_v8 = vld [vmem:[#allocation27_spill] sm:$0xff] }
 0x46d   : > { %9532 = vmatmul.mubr.msk.f32.gmra.mrb[16].mxu1 %vm257_vm0, %v12461_v24 }
 0x46e   : > { %9534 = vmatprep.mubr.msk.f32.mxu1 %vm257_vm0, %v12462_v27  ;;  %v12469_v27 = vld [vmem:[#allocation29_spill] sm:$0xff] }
 0x471   : > { %9535 = vmatmul.mubr.msk.f32.gmra.mrb[18].mxu1 %vm257_vm0, %v12463_v39 }
 0x472   : > { %9537 = vmatprep.mubr.msk.f32.mxu1 %vm257_vm0, %v12464_v5 }
 0x475   : > { %9538 = vmatmul.mubr.msk.f32.gmra.mrb[20].mxu1 %vm257_vm0, %v12465_v60 }
 0x476   : > { %9540 = vmatprep.mubr.msk.f32.mxu1 %vm257_vm0, %v12466_v40  ;;  %v11904_v40 = vld [vmem:[#allocation2 + $0x182] sm:$0xff] }
 0x479   : > { %9541 = vmatmul.mubr.msk.f32.gmra.mrb[22].mxu1 %vm257_vm0, %v12467_v12 }
 0x47a   : > { %9543 = vmatprep.mubr.msk.f32.mxu1 %vm257_vm0, %v12468_v8  ;;  %v11908_v8 = vld [vmem:[#allocation2 + $0x18a] sm:$0xff] }
 0x47d   : > { %9544 = vmatmul.mubr.msk.f32.gmra.mrb[24].mxu1 %vm257_vm0, %v11678_v36 }
 0x47e   : > { %9546 = vmatprep.mubr.msk.f32.mxu1 %vm257_vm0, %v12469_v27 }
 0x481   : > { %9547 = vmatmul.mubr.msk.f32.gmra.mrb[26].mxu1 %vm257_vm0, %v11686_v61 }
 0x482   : > { %9549 = vmatprep.mubr.msk.f32.mxu1 %vm257_vm0, %v11690_v42  ;;  %v8173_v42 = vld [vmem:[%s12233_s3 + $0x40] sm:$0xff] }
 0x485   : > { %9550 = vmatmul.mubr.msk.f32.gmra.mrb[28].mxu1 %vm257_vm0, %v11694_v38 }
 0x486   : > { %9552 = vmatprep.mubr.msk.f32.mxu1 %vm257_vm0, %v11904_v40 }
 0x489   : > { %9553 = vmatmul.mubr.msk.f32.gmra.mrb[30].mxu1 %vm257_vm0, %v11908_v8 }
 0x48a   : > { %9557 = vmatprep.mubr.msk.f32.mxu1 %vm257_vm0, %v11457_v54  ;;  %v6315_v54 = vld [vmem:[#allocation2 + $0x198] sm:$0xff] }
 0x48d   : > { %9558 = vmatmul.mubr.msk.f32.vlgmr.msra.gmra.mrb[0].mxu1 %vm257_vm0, %v11461_v4  ;;  %v6316_v4 = vld [vmem:[#allocation2 + $0x1a0] sm:$0xff] }
 0x48e   : > { %9606 = vmatpush3.msra.mxu1 %v8140_v63  ;;  %9560 = vmatprep.mubr.msk.f32.mxu1 %vm257_vm0, %v11465_v7  ;;  %v6672_v7 = vld [vmem:[#allocation2 + $0x31] sm:$0xff] }
 0x48f   : > { %9655 = vmatprep.subr.mxu1 %v8173_v42 }
 0x491   : > { %9561 = vmatmul.mubr.msk.f32.gmra.mrb[2].mxu1 %vm257_vm0, %v11469_v34  ;;  %v6673_v34 = vld [vmem:[#allocation2 + $0x39] sm:$0xff] }
 0x492   : > { %9563 = vmatprep.mubr.msk.f32.mxu1 %vm257_vm0, %v11473_v43  ;;  %v6674_v43 = vld [vmem:[#allocation2 + $0x49] sm:$0xff] }
 0x495   : > { %9564 = vmatmul.mubr.msk.f32.gmra.mrb[4].mxu1 %vm257_vm0, %v11477_v44  ;;  %v6675_v44 = vld [vmem:[#allocation2 + $0x51] sm:$0xff] }
 0x496   : > { %9566 = vmatprep.mubr.msk.f32.mxu1 %vm257_vm0, %v11481_v45  ;;  %v6676_v45 = vld [vmem:[#allocation2 + $0x61] sm:$0xff] }
 0x499   : > { %9567 = vmatmul.mubr.msk.f32.gmra.mrb[6].mxu1 %vm257_vm0, %v11485_v46  ;;  %v6677_v46 = vld [vmem:[#allocation2 + $0x69] sm:$0xff] }
 0x49a   : > { %9569 = vmatprep.mubr.msk.f32.mxu1 %vm257_vm0, %v11489_v47  ;;  %v6678_v47 = vld [vmem:[#allocation2 + $0x79] sm:$0xff] }
 0x49d   : > { %9570 = vmatmul.mubr.msk.f32.gmra.mrb[8].mxu1 %vm257_vm0, %v11493_v49  ;;  %v6679_v49 = vld [vmem:[#allocation2 + $0x81] sm:$0xff] }
 0x49e   : > { %9572 = vmatprep.mubr.msk.f32.mxu1 %vm257_vm0, %v11497_v56  ;;  %v6680_v56 = vld [vmem:[#allocation2 + $0x91] sm:$0xff] }
 0x4a1   : > { %9573 = vmatmul.mubr.msk.f32.gmra.mrb[10].mxu1 %vm257_vm0, %v11501_v0  ;;  %v6681_v0 = vld [vmem:[#allocation2 + $0x99] sm:$0xff] }
 0x4a2   : > { %9575 = vmatprep.mubr.msk.f32.mxu1 %vm257_vm0, %v11505_v3  ;;  %v6682_v3 = vld [vmem:[#allocation2 + $0xa9] sm:$0xff] }
 0x4a5   : > { %9576 = vmatmul.mubr.msk.f32.gmra.mrb[12].mxu1 %vm257_vm0, %v11509_v16  ;;  %v6683_v16 = vld [vmem:[#allocation2 + $0xb1] sm:$0xff] }
 0x4a6   : > { %9578 = vmatprep.mubr.msk.f32.mxu1 %vm257_vm0, %v11513_v31  ;;  %v6684_v31 = vld [vmem:[#allocation2 + $0xc1] sm:$0xff] }
 0x4a9   : > { %9579 = vmatmul.mubr.msk.f32.gmra.mrb[14].mxu1 %vm257_vm0, %v11517_v10  ;;  %v6685_v10 = vld [vmem:[#allocation2 + $0xc9] sm:$0xff] }
 0x4aa   : > { %9581 = vmatprep.mubr.msk.f32.mxu1 %vm257_vm0, %v11521_v11  ;;  %v12480_v11 = vld [vmem:[#allocation17_spill] sm:$0xff] }
 0x4ad   : > { %9582 = vmatmul.mubr.msk.f32.gmra.mrb[16].mxu1 %vm257_vm0, %v11525_v14  ;;  %v12481_v14 = vld [vmem:[#allocation22_spill] sm:$0xff] }
 0x4ae   : > { %9584 = vmatprep.mubr.msk.f32.mxu1 %vm257_vm0, %v11529_v17  ;;  %v12482_v17 = vld [vmem:[#allocation27_spill] sm:$0xff] }
 0x4b1   : > { %9585 = vmatmul.mubr.msk.f32.gmra.mrb[18].mxu1 %vm257_vm0, %v11533_v18  ;;  %v12483_v18 = vld [vmem:[#allocation31_spill] sm:$0xff] }
 0x4b2   : > { %9587 = vmatprep.mubr.msk.f32.mxu1 %vm257_vm0, %v11537_v20  ;;  %v7089_v20 = vld [vmem:[#allocation2 + $0x19a] sm:$0xff] }
 0x4b5   : > { %9588 = vmatmul.mubr.msk.f32.gmra.mrb[20].mxu1 %vm257_vm0, %v11541_v21  ;;  %v12090_v21 = vld [vmem:[%s12234_s4] ss:$0 sm:$0xff] }
 0x4b6   : > { %9590 = vmatprep.mubr.msk.f32.mxu1 %vm257_vm0, %v11545_v22 }
 0x4b9   : > { %9591 = vmatmul.mubr.msk.f32.gmra.mrb[22].mxu1 %vm257_vm0, %v11549_v26 }
 0x4ba   : > { %9593 = vmatprep.mubr.msk.f32.mxu1 %vm257_vm0, %v11553_v28 }
 0x4bd   : > { %9594 = vmatmul.mubr.msk.f32.gmra.mrb[24].mxu1 %vm257_vm0, %v11557_v57 }
 0x4be   : > { %9596 = vmatprep.mubr.msk.f32.mxu1 %vm257_vm0, %v11561_v59  ;;  %v10226_v59 = vld [vmem:[%s10386_s28 + $0x8] sm:$0xff] }
 0x4c1   : > { %9597 = vmatmul.mubr.msk.f32.gmra.mrb[26].mxu1 %vm257_vm0, %v11565_v6 }
 0x4c2   : > { %9599 = vmatprep.mubr.msk.f32.mxu1 %vm257_vm0, %v11762_v9 }
 0x4c5   : > { %9600 = vmatmul.mubr.msk.f32.gmra.mrb[28].mxu1 %vm257_vm0, %v11766_v50 }
 0x4c6   : > { %9602 = vmatprep.mubr.msk.f32.mxu1 %vm257_vm0, %v6315_v54 }
 0x4c9   : > { %9603 = vmatmul.mubr.msk.f32.gmra.mrb[30].mxu1 %vm257_vm0, %v6316_v4  ;;  %v10233_v4 = vld [vmem:[%s10386_s28 + $0x30] sm:$0xff] }
 0x4ca   : > { %9607 = vmatprep.mubr.msk.f32.mxu1 %vm257_vm0, %v6672_v7 }
 0x4cd   : > { %9608 = vmatmul.mubr.msk.f32.vlgmr.msra.gmra.mrb[0].mxu1 %vm257_vm0, %v6673_v34 }
 0x4ce   : > { %9656 = vmatpush3.msra.mxu1 %v8173_v42  ;;  %9610 = vmatprep.mubr.msk.f32.mxu1 %vm257_vm0, %v6674_v43 }
 0x4d1   : > { %9611 = vmatmul.mubr.msk.f32.gmra.mrb[2].mxu1 %vm257_vm0, %v6675_v44 }
 0x4d2   : > { %9613 = vmatprep.mubr.msk.f32.mxu1 %vm257_vm0, %v6676_v45 }
 0x4d5   : > { %9614 = vmatmul.mubr.msk.f32.gmra.mrb[4].mxu1 %vm257_vm0, %v6677_v46  ;;  %v10234_v46 = vld [vmem:[%s10386_s28 + $0x48] sm:$0xff] }
 0x4d6   : > { %9616 = vmatprep.mubr.msk.f32.mxu1 %vm257_vm0, %v6678_v47 }
 0x4d9   : > { %9617 = vmatmul.mubr.msk.f32.gmra.mrb[6].mxu1 %vm257_vm0, %v6679_v49  ;;  %v10235_v49 = vld [vmem:[%s10386_s28 + $0x40] sm:$0xff] }
 0x4da   : > { %9619 = vmatprep.mubr.msk.f32.mxu1 %vm257_vm0, %v6680_v56 }
 0x4dd   : > { %9620 = vmatmul.mubr.msk.f32.gmra.mrb[8].mxu1 %vm257_vm0, %v6681_v0 }
 0x4de   : > { %9622 = vmatprep.mubr.msk.f32.mxu1 %vm257_vm0, %v6682_v3 }
 0x4e1   : > { %9623 = vmatmul.mubr.msk.f32.gmra.mrb[10].mxu1 %vm257_vm0, %v6683_v16 }
 0x4e2   : > { %9625 = vmatprep.mubr.msk.f32.mxu1 %vm257_vm0, %v6684_v31 }
 0x4e5   : > { %9626 = vmatmul.mubr.msk.f32.gmra.mrb[12].mxu1 %vm257_vm0, %v6685_v10  ;;  %v10236_v10 = vld [vmem:[%s10386_s28 + $0x58] sm:$0xff] }
 0x4e6   : > { %9628 = vmatprep.mubr.msk.f32.mxu1 %vm257_vm0, %v11365_v32  ;;  %v6702_v32 = vld [vmem:[#allocation2 + $0x199] sm:$0xff] }
 0x4e9   : > { %9629 = vmatmul.mubr.msk.f32.gmra.mrb[14].mxu1 %vm257_vm0, %v11370_v35  ;;  %v6703_v35 = vld [vmem:[#allocation2 + $0x1a1] sm:$0xff] }
 0x4ea   : > { %9631 = vmatprep.mubr.msk.f32.mxu1 %vm257_vm0, %v11377_v51  ;;  %v12470_v51 = vld [vmem:[#allocation12_spill] sm:$0xff] }
 0x4ed   : > { %9632 = vmatmul.mubr.msk.f32.gmra.mrb[16].mxu1 %vm257_vm0, %v11382_v62  ;;  %v12471_v62 = vld [vmem:[#allocation13_spill] sm:$0xff] }
 0x4ee   : > { %9634 = vmatprep.mubr.msk.f32.mxu1 %vm257_vm0, %v11389_v48  ;;  %v12472_v48 = vld [vmem:[#allocation14_spill] sm:$0xff] }
 0x4f1   : > { %9635 = vmatmul.mubr.msk.f32.gmra.mrb[18].mxu1 %vm257_vm0, %v11394_v53  ;;  %v12473_v53 = vld [vmem:[#allocation15_spill] sm:$0xff] }
 0x4f2   : > { %9637 = vmatprep.mubr.msk.f32.mxu1 %vm257_vm0, %v11401_v2  ;;  %v12474_v2 = vld [vmem:[#allocation16_spill] sm:$0xff] }
 0x4f5   : > { %9638 = vmatmul.mubr.msk.f32.gmra.mrb[20].mxu1 %vm257_vm0, %v11406_v15  ;;  %v12475_v15 = vld [vmem:[#allocation21_spill] sm:$0xff] }
 0x4f6   : > { %9640 = vmatprep.mubr.msk.f32.mxu1 %vm257_vm0, %v11413_v29  ;;  %v12476_v29 = vld [vmem:[#allocation23_spill] sm:$0xff] }
 0x4f9   : > { %9641 = vmatmul.mubr.msk.f32.gmra.mrb[22].mxu1 %vm257_vm0, %v11418_v58  ;;  %v12477_v58 = vld [vmem:[#allocation25_spill] sm:$0xff] }
 0x4fa   : > { %9643 = vmatprep.mubr.msk.f32.mxu1 %vm257_vm0, %v11423_v30  ;;  %v12478_v30 = vld [vmem:[#allocation26_spill] sm:$0xff] }
 0x4fd   : > { %9644 = vmatmul.mubr.msk.f32.gmra.mrb[24].mxu1 %vm257_vm0, %v11428_v33  ;;  %v12479_v33 = vld [vmem:[#allocation28_spill] sm:$0xff] }
 0x4fe   : > { %9646 = vmatprep.mubr.msk.f32.mxu1 %vm257_vm0, %v12442_v1 }
 0x501   : > { %9647 = vmatmul.mubr.msk.f32.gmra.mrb[26].mxu1 %vm257_vm0, %v12443_v13  ;;  %v10228_v13 = vld [vmem:[%s10386_s28 + $0x18] sm:$0xff] }
 0x502   : > { %9649 = vmatprep.mubr.msk.f32.mxu1 %vm257_vm0, %v11833_v23 }
 0x505   : > { %9650 = vmatmul.mubr.msk.f32.gmra.mrb[28].mxu1 %vm257_vm0, %v11837_v25  ;;  %v10229_v25 = vld [vmem:[%s10386_s28 + $0x10] sm:$0xff] }
 0x506   : > { %9652 = vmatprep.mubr.msk.f32.mxu1 %vm257_vm0, %v6702_v32 }
 0x509   : > { %9653 = vmatmul.mubr.msk.f32.gmra.mrb[30].mxu1 %vm257_vm0, %v6703_v35  ;;  %v10237_v35 = vld [vmem:[%s10386_s28 + $0x50] sm:$0xff] }
 0x50a   : > { %9657 = vmatprep.mubr.msk.f32.mxu1 %vm257_vm0, %v12446_v37 }
 0x50d   : > { %9658 = vmatmul.mubr.msk.f32.vlgmr.msra.gmra.mrb[0].mxu1 %vm257_vm0, %v12447_v19 }
 0x50e   : > { %9660 = vmatprep.mubr.msk.f32.mxu1 %vm257_vm0, %v12448_v41 }
 0x511   : > { %9661 = vmatmul.mubr.msk.f32.gmra.mrb[2].mxu1 %vm257_vm0, %v12449_v52 }
 0x512   : > { %9663 = vmatprep.mubr.msk.f32.mxu1 %vm257_vm0, %v12450_v55  ;;  %v10230_v55 = vld [vmem:[%s10386_s28 + $0x28] sm:$0xff] }
 0x515   : > { %9664 = vmatmul.mubr.msk.f32.gmra.mrb[4].mxu1 %vm257_vm0, %v12470_v51 }
 0x516   : > { %9666 = vmatprep.mubr.msk.f32.mxu1 %vm257_vm0, %v12471_v62 }
 0x519   : > { %9667 = vmatmul.mubr.msk.f32.gmra.mrb[6].mxu1 %vm257_vm0, %v12472_v48 }
 0x51a   : > { %9669 = vmatprep.mubr.msk.f32.mxu1 %vm257_vm0, %v12473_v53 }
 0x51d   : > { %9670 = vmatmul.mubr.msk.f32.gmra.mrb[8].mxu1 %vm257_vm0, %v12474_v2 }
 0x51e   : > { %9672 = vmatprep.mubr.msk.f32.mxu1 %vm257_vm0, %v12475_v15  ;;  %v10238_v15 = vld [vmem:[%s10386_s28 + $0x68] sm:$0xff] }
 0x521   : > { %9673 = vmatmul.mubr.msk.f32.gmra.mrb[10].mxu1 %vm257_vm0, %v12476_v29 }
 0x522   : > { %9675 = vmatprep.mubr.msk.f32.mxu1 %vm257_vm0, %v12477_v58  ;;  %v10239_v58 = vld [vmem:[%s10386_s28 + $0x60] sm:$0xff] }
 0x525   : > { %9676 = vmatmul.mubr.msk.f32.gmra.mrb[12].mxu1 %vm257_vm0, %v12478_v30 }
 0x526   : > { %9678 = vmatprep.mubr.msk.f32.mxu1 %vm257_vm0, %v12479_v33 }
 0x529   : > { %9679 = vmatmul.mubr.msk.f32.gmra.mrb[14].mxu1 %vm257_vm0, %v12461_v24 }
 0x52a   : > { %9681 = vmatprep.mubr.msk.f32.mxu1 %vm257_vm0, %v12480_v11 }
 0x52d   : > { %9682 = vmatmul.mubr.msk.f32.gmra.mrb[16].mxu1 %vm257_vm0, %v12463_v39 }
 0x52e   : > { %9684 = vmatprep.mubr.msk.f32.mxu1 %vm257_vm0, %v12464_v5 }
 0x531   : > { %9685 = vmatmul.mubr.msk.f32.gmra.mrb[18].mxu1 %vm257_vm0, %v12465_v60 }
 0x532   : > { %9687 = vmatprep.mubr.msk.f32.mxu1 %vm257_vm0, %v12481_v14 }
 0x535   : > { %9688 = vmatmul.mubr.msk.f32.gmra.mrb[20].mxu1 %vm257_vm0, %v12467_v12 }
 0x536   : > { %9690 = vmatprep.mubr.msk.f32.mxu1 %vm257_vm0, %v12482_v17 }
 0x539   : > { %9691 = vmatmul.mubr.msk.f32.gmra.mrb[22].mxu1 %vm257_vm0, %v11678_v36  ;;  %v7090_v36 = vld [vmem:[#allocation2 + $0x1a2] sm:$0xff] }
 0x53a   : > { %9693 = vmatprep.mubr.msk.f32.mxu1 %vm257_vm0, %v12469_v27 }
 0x53d   : > { %9694 = vmatmul.mubr.msk.f32.gmra.mrb[24].mxu1 %vm257_vm0, %v11686_v61  ;;  %v10227_v61 = vld [vmem:[%s10386_s28] sm:$0xff] }
 0x53e   : > { %9696 = vmatprep.mubr.msk.f32.mxu1 %vm257_vm0, %v12483_v18  ;;  %v10240_v18 = vld [vmem:[%s10386_s28 + $0x78] sm:$0xff] }
 0x541   : > { %9697 = vmatmul.mubr.msk.f32.gmra.mrb[26].mxu1 %vm257_vm0, %v11694_v38 }
 0x542   : > { %9699 = vmatprep.mubr.msk.f32.mxu1 %vm257_vm0, %v11904_v40  ;;  %v10232_v40 = vld [vmem:[%s10386_s28 + $0x38] sm:$0xff] }
 0x545   : > { %9700 = vmatmul.mubr.msk.f32.gmra.mrb[28].mxu1 %vm257_vm0, %v11908_v8  ;;  %v10231_v8 = vld [vmem:[%s10386_s28 + $0x20] sm:$0xff] }
 0x546   : > { %9702 = vmatprep.mubr.msk.f32.mxu1 %vm257_vm0, %v7089_v20 }
 0x549   : > { %9703 = vmatmul.mubr.msk.f32.gmra.mrb[30].mxu1 %vm257_vm0, %v7090_v36  ;;  %v10241_v36 = vld [vmem:[%s10386_s28 + $0x70] sm:$0xff] }
 0x5e0   : > { %v9659_v22 = vpop.f32.mrb[0].mxu1 }
 0x5e1   : > { %v7454_v26 = vadd.f32 %v9659_v22, %v12090_v21  ;;  %v7255_v28 = vpop.f32.mrb[1].mxu1 }
 0x5e2   : > { %v7453_v57 = vadd.f32 %v12090_v21, %v7255_v28 }
 0x5e3   : > { %v7486_v6 = vadd.f32 %v10226_v59, %v7454_v26 }
 0x5e4   : > { %v7485_v42 = vadd.f32 %v10227_v61, %v7453_v57  ;;  %v9662_v38 = vpop.f32.mrb[2].mxu1 }
 0x5e5   : > { %7518 = vst.msk [vmem:[%s12098_s23 + $0x8] sm:$0xff] %vm257_vm0, %v7486_v6  ;;  %v7456_v9 = vadd.f32 %v9662_v38, %v12090_v21  ;;  %v7265_v50 = vpop.f32.mrb[3].mxu1  ;;  %v10242_v6 = vld [vmem:[%s10386_s28 + $0x88] sm:$0xff] }
 0x5e6   : > { %7517 = vst.msk [vmem:[%s12098_s23] sm:$0xff] %vm257_vm0, %v7485_v42  ;;  %v7455_v1 = vadd.f32 %v12090_v21, %v7265_v50  ;;  %v10243_v42 = vld [vmem:[%s10386_s28 + $0x80] sm:$0xff] }
 0x5e7   : > { %v7488_v23 = vadd.f32 %v10228_v13, %v7456_v9 }
 0x5e8   : > { %v7487_v63 = vadd.f32 %v10229_v25, %v7455_v1  ;;  %v9665_v37 = vpop.f32.mrb[4].mxu1 }
 0x5e9   : > { %7520 = vst.msk [vmem:[%s12098_s23 + $0x18] sm:$0xff] %vm257_vm0, %v7488_v23  ;;  %v7458_v19 = vadd.f32 %v9665_v37, %v12090_v21  ;;  %v7275_v41 = vpop.f32.mrb[5].mxu1  ;;  %v10244_v23 = vld [vmem:[%s10386_s28 + $0x98] sm:$0xff] }
 0x5ea   : > { %7519 = vst.msk [vmem:[%s12098_s23 + $0x10] sm:$0xff] %vm257_vm0, %v7487_v63  ;;  %v7457_v52 = vadd.f32 %v12090_v21, %v7275_v41  ;;  %v10245_v63 = vld [vmem:[%s10386_s28 + $0x90] sm:$0xff] }
 0x5eb   : > { %v7490_v12 = vadd.f32 %v10230_v55, %v7458_v19 }
 0x5ec   : > { %v7489_v24 = vadd.f32 %v10231_v8, %v7457_v52  ;;  %v9668_v27 = vpop.f32.mrb[6].mxu1 }
 0x5ed   : > { %7522 = vst.msk [vmem:[%s12098_s23 + $0x28] sm:$0xff] %vm257_vm0, %v7490_v12  ;;  %v7460_v39 = vadd.f32 %v9668_v27, %v12090_v21  ;;  %v7285_v5 = vpop.f32.mrb[7].mxu1  ;;  %v10246_v12 = vld [vmem:[%s10386_s28 + $0xa8] sm:$0xff] }
 0x5ee   : > { %7521 = vst.msk [vmem:[%s12098_s23 + $0x20] sm:$0xff] %vm257_vm0, %v7489_v24  ;;  %v7459_v60 = vadd.f32 %v12090_v21, %v7285_v5  ;;  %v10247_v24 = vld [vmem:[%s10386_s28 + $0xa0] sm:$0xff] }
 0x5ef   : > { %v7492_v54 = vadd.f32 %v10232_v40, %v7460_v39 }
 0x5f0   : > { %v7491_v7 = vadd.f32 %v10233_v4, %v7459_v60  ;;  %v9671_v34 = vpop.f32.mrb[8].mxu1 }
 0x5f1   : > { %7524 = vst.msk [vmem:[%s12098_s23 + $0x38] sm:$0xff] %vm257_vm0, %v7492_v54  ;;  %v7462_v43 = vadd.f32 %v9671_v34, %v12090_v21  ;;  %v7295_v44 = vpop.f32.mrb[9].mxu1  ;;  %v10248_v54 = vld [vmem:[%s10386_s28 + $0xb8] sm:$0xff] }
 0x5f2   : > { %7523 = vst.msk [vmem:[%s12098_s23 + $0x30] sm:$0xff] %vm257_vm0, %v7491_v7  ;;  %v7461_v45 = vadd.f32 %v12090_v21, %v7295_v44  ;;  %v10249_v7 = vld [vmem:[%s10386_s28 + $0xb0] sm:$0xff] }
 0x5f3   : > { %v7494_v47 = vadd.f32 %v10234_v46, %v7462_v43 }
 0x5f4   : > { %v7493_v56 = vadd.f32 %v10235_v49, %v7461_v45  ;;  %v9674_v0 = vpop.f32.mrb[10].mxu1 }
 0x5f5   : > { %7526 = vst.msk [vmem:[%s12098_s23 + $0x48] sm:$0xff] %vm257_vm0, %v7494_v47  ;;  %v7464_v3 = vadd.f32 %v9674_v0, %v12090_v21  ;;  %v7305_v16 = vpop.f32.mrb[11].mxu1  ;;  %v10250_v47 = vld [vmem:[%s10386_s28 + $0xc8] sm:$0xff] }
 0x5f6   : > { %7525 = vst.msk [vmem:[%s12098_s23 + $0x40] sm:$0xff] %vm257_vm0, %v7493_v56  ;;  %v7463_v31 = vadd.f32 %v12090_v21, %v7305_v16  ;;  %v10251_v56 = vld [vmem:[%s10386_s28 + $0xc0] sm:$0xff] }
 0x5f7   : > { %v7496_v32 = vadd.f32 %v10236_v10, %v7464_v3 }
 0x5f8   : > { %v7495_v51 = vadd.f32 %v10237_v35, %v7463_v31  ;;  %v9677_v62 = vpop.f32.mrb[12].mxu1 }
 0x5f9   : > { %7528 = vst.msk [vmem:[%s12098_s23 + $0x58] sm:$0xff] %vm257_vm0, %v7496_v32  ;;  %v7466_v48 = vadd.f32 %v9677_v62, %v12090_v21  ;;  %v7315_v53 = vpop.f32.mrb[13].mxu1  ;;  %v10252_v32 = vld [vmem:[%s10386_s28 + $0xd8] sm:$0xff] }
 0x5fa   : > { %7527 = vst.msk [vmem:[%s12098_s23 + $0x50] sm:$0xff] %vm257_vm0, %v7495_v51  ;;  %v7465_v2 = vadd.f32 %v12090_v21, %v7315_v53  ;;  %v10253_v51 = vld [vmem:[%s10386_s28 + $0xd0] sm:$0xff] }
 0x5fb   : > { %v7498_v29 = vadd.f32 %v10238_v15, %v7466_v48 }
 0x5fc   : > { %v7497_v30 = vadd.f32 %v10239_v58, %v7465_v2  ;;  %v9680_v33 = vpop.f32.mrb[14].mxu1 }
 0x5fd   : > { %7530 = vst.msk [vmem:[%s12098_s23 + $0x68] sm:$0xff] %vm257_vm0, %v7498_v29  ;;  %v7468_v11 = vadd.f32 %v9680_v33, %v12090_v21  ;;  %v7325_v14 = vpop.f32.mrb[15].mxu1  ;;  %v10254_v29 = vld [vmem:[%s10386_s28 + $0xe8] sm:$0xff] }
 0x5fe   : > { %7529 = vst.msk [vmem:[%s12098_s23 + $0x60] sm:$0xff] %vm257_vm0, %v7497_v30  ;;  %v7467_v17 = vadd.f32 %v12090_v21, %v7325_v14  ;;  %v10255_v30 = vld [vmem:[%s10386_s28 + $0xe0] sm:$0xff] }
 0x5ff   : > { %v7500_v20 = vadd.f32 %v10240_v18, %v7468_v11 }
 0x600   : > { %v7499_v22 = vadd.f32 %v10241_v36, %v7467_v17  ;;  %v9683_v26 = vpop.f32.mrb[16].mxu1 }
 0x601   : > { %7532 = vst.msk [vmem:[%s12098_s23 + $0x78] sm:$0xff] %vm257_vm0, %v7500_v20  ;;  %v7470_v28 = vadd.f32 %v9683_v26, %v12090_v21  ;;  %v7335_v57 = vpop.f32.mrb[17].mxu1  ;;  %v10256_v20 = vld [vmem:[%s10386_s28 + $0xf8] sm:$0xff] }
 0x602   : > { %7531 = vst.msk [vmem:[%s12098_s23 + $0x70] sm:$0xff] %vm257_vm0, %v7499_v22  ;;  %v7469_v59 = vadd.f32 %v12090_v21, %v7335_v57  ;;  %v10257_v22 = vld [vmem:[%s10386_s28 + $0xf0] sm:$0xff] }
 0x603   : > { %v7502_v61 = vadd.f32 %v10242_v6, %v7470_v28 }
 0x604   : > { %v7501_v38 = vadd.f32 %v10243_v42, %v7469_v59  ;;  %v9686_v9 = vpop.f32.mrb[18].mxu1 }
 0x605   : > { %7534 = vst.msk [vmem:[%s12098_s23 + $0x88] sm:$0xff] %vm257_vm0, %v7502_v61  ;;  %v7472_v50 = vadd.f32 %v9686_v9, %v12090_v21  ;;  %v7345_v1 = vpop.f32.mrb[19].mxu1 }
 0x606   : > { %7533 = vst.msk [vmem:[%s12098_s23 + $0x80] sm:$0xff] %vm257_vm0, %v7501_v38  ;;  %v7471_v13 = vadd.f32 %v12090_v21, %v7345_v1 }
 0x607   : > { %v7504_v25 = vadd.f32 %v10244_v23, %v7472_v50 }
 0x608   : > { %v7503_v37 = vadd.f32 %v10245_v63, %v7471_v13  ;;  %v9689_v19 = vpop.f32.mrb[20].mxu1 }
 0x609   : > { %7536 = vst.msk [vmem:[%s12098_s23 + $0x98] sm:$0xff] %vm257_vm0, %v7504_v25  ;;  %v7474_v41 = vadd.f32 %v9689_v19, %v12090_v21  ;;  %v7355_v52 = vpop.f32.mrb[21].mxu1 }
 0x60a   : > { %7535 = vst.msk [vmem:[%s12098_s23 + $0x90] sm:$0xff] %vm257_vm0, %v7503_v37  ;;  %v7473_v55 = vadd.f32 %v12090_v21, %v7355_v52 }
 0x60b   : > { %v7506_v8 = vadd.f32 %v10246_v12, %v7474_v41 }
 0x60c   : > { %v7505_v27 = vadd.f32 %v10247_v24, %v7473_v55  ;;  %v9692_v39 = vpop.f32.mrb[22].mxu1 }
 0x60d   : > { %7538 = vst.msk [vmem:[%s12098_s23 + $0xa8] sm:$0xff] %vm257_vm0, %v7506_v8  ;;  %v7476_v5 = vadd.f32 %v9692_v39, %v12090_v21  ;;  %v7365_v60 = vpop.f32.mrb[23].mxu1 }
 0x60e   : > { %7537 = vst.msk [vmem:[%s12098_s23 + $0xa0] sm:$0xff] %vm257_vm0, %v7505_v27  ;;  %v7475_v40 = vadd.f32 %v12090_v21, %v7365_v60 }
 0x60f   : > { %v7508_v4 = vadd.f32 %v10248_v54, %v7476_v5 }
 0x610   : > { %v7507_v34 = vadd.f32 %v10249_v7, %v7475_v40  ;;  %v9695_v43 = vpop.f32.mrb[24].mxu1 }
 0x611   : > { %7540 = vst.msk [vmem:[%s12098_s23 + $0xb8] sm:$0xff] %vm257_vm0, %v7508_v4  ;;  %v7478_v44 = vadd.f32 %v9695_v43, %v12090_v21  ;;  %v7375_v45 = vpop.f32.mrb[25].mxu1 }
 0x612   : > { %7539 = vst.msk [vmem:[%s12098_s23 + $0xb0] sm:$0xff] %vm257_vm0, %v7507_v34  ;;  %v7477_v46 = vadd.f32 %v12090_v21, %v7375_v45 }
 0x613   : > { %v7510_v49 = vadd.f32 %v10250_v47, %v7478_v44 }
 0x614   : > { %v7509_v0 = vadd.f32 %v10251_v56, %v7477_v46  ;;  %v9698_v3 = vpop.f32.mrb[26].mxu1 }
 0x615   : > { %7542 = vst.msk [vmem:[%s12098_s23 + $0xc8] sm:$0xff] %vm257_vm0, %v7510_v49  ;;  %v7480_v16 = vadd.f32 %v9698_v3, %v12090_v21  ;;  %v7385_v31 = vpop.f32.mrb[27].mxu1 }
 0x616   : > { %7541 = vst.msk [vmem:[%s12098_s23 + $0xc0] sm:$0xff] %vm257_vm0, %v7509_v0  ;;  %v7479_v10 = vadd.f32 %v12090_v21, %v7385_v31 }
 0x617   : > { %v7512_v35 = vadd.f32 %v10252_v32, %v7480_v16 }
 0x618   : > { %v7511_v62 = vadd.f32 %v10253_v51, %v7479_v10  ;;  %v9701_v48 = vpop.f32.mrb[28].mxu1 }
 0x619   : > { %7544 = vst.msk [vmem:[%s12098_s23 + $0xd8] sm:$0xff] %vm257_vm0, %v7512_v35  ;;  %v7482_v53 = vadd.f32 %v9701_v48, %v12090_v21  ;;  %v7395_v2 = vpop.f32.mrb[29].mxu1 }
 0x61a   : > { %7543 = vst.msk [vmem:[%s12098_s23 + $0xd0] sm:$0xff] %vm257_vm0, %v7511_v62  ;;  %v7481_v15 = vadd.f32 %v12090_v21, %v7395_v2 }
 0x61b   : > { %v7514_v58 = vadd.f32 %v10254_v29, %v7482_v53 }
 0x61c   : > { %v7513_v33 = vadd.f32 %v10255_v30, %v7481_v15  ;;  %v9704_v11 = vpop.f32.mrb[30].mxu1 }
 0x61d   : > { %7546 = vst.msk [vmem:[%s12098_s23 + $0xe8] sm:$0xff] %vm257_vm0, %v7514_v58  ;;  %v7484_v14 = vadd.f32 %v9704_v11, %v12090_v21  ;;  %v7405_v17 = vpop.f32.mrb[31].mxu1 }
 0x61e   : > { %7545 = vst.msk [vmem:[%s12098_s23 + $0xe0] sm:$0xff] %vm257_vm0, %v7513_v33  ;;  %v7483_v18 = vadd.f32 %v12090_v21, %v7405_v17 }
 0x61f   : > { %v7516_v36 = vadd.f32 %v10256_v20, %v7484_v14 }
 0x620   : > { %v7515_v26 = vadd.f32 %v10257_v22, %v7483_v18 }
 0x621   : > { %7548 = vst.msk [vmem:[%s12098_s23 + $0xf8] sm:$0xff] %vm257_vm0, %v7516_v36 }
 0x622   : > { %7547 = vst.msk [vmem:[%s12098_s23 + $0xf0] sm:$0xff] %vm257_vm0, %v7515_v26 }
 0x623 PF: > { %s15_s18 = sadd.s32 1, %s10264_s18  }
 0x624   : > { %p12_p4 = scmp.ge.s32.totalorder %s15_s18, 4  }
 0x626   :  { %14 = sbr.rel (!%p12_p4) target bundleno = 1 (0x1), region = 88 }

</bundles_post_ra>
